<compile_context>
chip_gen: v5e
topology: v5e:2x2
jax: 0.10.0
libtpu: 0.0.40
codegen_flags: <defaults>
</compile_context>

<pallas_src>
import jax
import jax.numpy as jnp
import numpy as np
from jax import lax
from jax.experimental import pallas as pl
from jax.experimental.pallas import tpu as pltpu


# ---------------------------------------------------------------------------
# Fused Pallas kernel (one (image, row-tile) block per grid step)
# ---------------------------------------------------------------------------

def make_adown_kernel(cin, cout, TH, Wh):
    Wo = Wh                      # output cols = W // 2
    M = TH * Wo                  # rows of the im2col matmul
    K1 = 9 * cin                 # contraction dim of the fused 3x3 conv

    def kernel(xt_ref, xa_ref, xb_ref, w1_ref, b1_ref, w2_ref, b2_ref,
               out_ref, s_eo, s_oe, s_oo, s_col):
        t = pl.program_id(1)
        last = pl.num_programs(1) - 1
        f32 = jnp.float32
        dt = xt_ref.dtype

        def planes(ref, half):
            # (x00, x01, x10, x11) planes of one channel half; each slice is a
            # contiguous slab of width cin in the half-major packed layout.
            def p(k):
                off = (half * 4 + k) * cin
                return ref[0, :, :, off:off + cin]
            return p(0), p(1), p(2), p(3)

        def build_taps(half, pad_val):
            """Builds the padded avg-pooled planes for one channel half in the
            shared scratch buffers and returns tap(ki, kj) -> (TH, Wo, cin)
            slab of the padded pooled tensor at offset (2*ho-1+ki, 2*wo-1+kj).
            """
            x00, x01, x10, x11 = planes(xt_ref, half)          # (TH, Wh, cin)

            # avg_pool2d(2,1,0) decomposed by output (row, col) parity;
            # every access below is a contiguous static slice.
            y_ee = 0.25 * (x00 + x01 + x10 + x11)                                     # (TH,   Wo)
            y_eo = 0.25 * (x01[:, :-1] + x11[:, :-1] + x00[:, 1:] + x10[:, 1:])       # (TH,   Wo-1)
            y_oe = 0.25 * (x10[:-1] + x11[:-1] + x00[1:] + x01[1:])                   # (TH-1, Wo)
            y_oo = 0.25 * (x11[:-1, :-1] + x01[1:, :-1] + x10[:-1, 1:] + x00[1:, 1:]) # (TH-1, Wo-1)

            # even-row plane: only the two pad columns + interior (no full fill)
            s_eo[:, 0:1, :] = jnp.full((TH, 1, cin), pad_val, dt)
            s_eo[:, Wo:Wo + 1, :] = jnp.full((TH, 1, cin), pad_val, dt)
            s_eo[:, 1:Wo, :] = y_eo

            # odd-row planes: interior rows come from the tile itself
            s_oe[1:TH, :, :] = y_oe
            s_oo[:, 0:1, :] = jnp.full((TH + 1, 1, cin), pad_val, dt)
            s_oo[:, Wo:Wo + 1, :] = jnp.full((TH + 1, 1, cin), pad_val, dt)
            s_oo[1:TH, 1:Wo, :] = y_oo

            # top boundary row: 1-row halo above, or the image pad for tile 0
            @pl.when(t > 0)
            def _():
                a00, a01, a10, a11 = planes(xa_ref, half)       # (1, Wh, cin)
                s_oe[0:1, :, :] = 0.25 * (a10 + a11 + x00[0:1] + x01[0:1])
                s_oo[0:1, 1:Wo, :] = 0.25 * (a11[:, :-1] + a10[:, 1:]
                                             + x01[0:1, :-1] + x00[0:1, 1:])

            @pl.when(t == 0)
            def _():
                s_oe[0:1, :, :] = jnp.full((1, Wo, cin), pad_val, dt)
                s_oo[0:1, 1:Wo, :] = jnp.full((1, Wo - 1, cin), pad_val, dt)

            # bottom boundary row: 1-row halo below, or the image pad for the last tile
            @pl.when(t < last)
            def _():
                b00, b01, b10, b11 = planes(xb_ref, half)       # (1, Wh, cin)
                s_oe[TH:TH + 1, :, :] = 0.25 * (x10[TH - 1:TH] + x11[TH - 1:TH]
                                                + b00 + b01)
                s_oo[TH:TH + 1, 1:Wo, :] = 0.25 * (x11[TH - 1:TH, :-1]
                                                   + x10[TH - 1:TH, 1:]
                                                   + b01[:, :-1] + b00[:, 1:])

            @pl.when(t == last)
            def _():
                s_oe[TH:TH + 1, :, :] = jnp.full((1, Wo, cin), pad_val, dt)
                s_oo[TH:TH + 1, 1:Wo, :] = jnp.full((1, Wo - 1, cin), pad_val, dt)

            def tap(ki, kj):
                if (ki, kj) == (1, 1):
                    return y_ee
                if ki == 1:                       # even row, odd col
                    co = kj // 2
                    return s_eo[:, co:co + Wo, :]
                if kj == 1:                       # odd row, even col
                    ro = ki // 2
                    return s_oe[ro:ro + TH, :, :]
                ro, co = ki // 2, kj // 2         # odd row, odd col
                return s_oo[ro:ro + TH, co:co + Wo, :]
            return tap

        # ---- branch 1: cv1 = Conv2d(3,3,s2,p1) (BN folded) + SiLU, ONE matmul ----
        tap1 = build_taps(0, 0.0)
        for ki in range(3):
            for kj in range(3):
                k = ki * 3 + kj
                s_col[:, :, k * cin:(k + 1) * cin] = tap1(ki, kj)
        z1 = jnp.dot(s_col[...].reshape(M, K1), w1_ref[...],
                     preferred_element_type=f32) + b1_ref[...]
        a1 = z1 * jax.nn.sigmoid(z1)
        out_ref[0, :, :, 0:cout] = a1.reshape(TH, Wo, cout).astype(out_ref.dtype)

        # ---- branch 2: max_pool2d(3,2,1) + cv2 1x1 (BN folded) + SiLU ------------
        tap2 = build_taps(1, float('-inf'))       # -inf pad == PyTorch maxpool pad
        mx = tap2(0, 0)
        for ki in range(3):
            for kj in range(3):
                if (ki, kj) != (0, 0):
                    mx = jnp.maximum(mx, tap2(ki, kj))
        z2 = jnp.dot(mx.reshape(M, cin), w2_ref[...],
                     preferred_element_type=f32) + b2_ref[...]
        a2 = z2 * jax.nn.sigmoid(z2)
        out_ref[0, :, :, cout:2 * cout] = a2.reshape(TH, Wo, cout).astype(out_ref.dtype)

    return kernel


# ---------------------------------------------------------------------------
# Wrapper
# ---------------------------------------------------------------------------

def _vmem_capacity_bytes():
    try:
        return int(pltpu.get_tpu_info().vmem_capacity_bytes)
    except Exception:
        return 64 * 1024 * 1024


def _pick_row_tile(Hh, Wh, C1, cout, itemsize, vmem_budget):
    """Largest row tile dividing Hh whose estimated per-step footprint fits."""
    cin = C1 // 2
    best = None
    for th in range(2, Hh + 1):
        if Hh % th:
            continue
        per = 2 * th * Wh * 4 * C1 * itemsize            # input tile, double-buffered
        per += 2 * 2 * Wh * 4 * C1 * itemsize            # two 1-row halos, double-buffered
        per += 2 * th * Wh * 2 * cout * itemsize         # output tile, double-buffered
        per += th * Wh * 9 * cin * itemsize              # im2col scratch
        per += 3 * (th + 1) * (Wh + 1) * cin * itemsize  # padded pooled planes
        per += 3 * th * Wh * 9 * cin * 4                 # f32 working values (rough)
        if per <= vmem_budget:
            best = th
    return best if best is not None else (2 if Hh % 2 == 0 else Hh)


def adown_forward(x_nchw, w1f, b1f, w2f, b2f, *, row_tile=None):
    N, C1, H, W = x_nchw.shape
    assert C1 % 2 == 0 and H % 2 == 0 and W % 2 == 0 and H >= 4 and W >= 4
    cin = C1 // 2
    cout = w1f.shape[0]
    Hh, Wh = H // 2, W // 2
    Ho, Wo = Hh, Wh
    dt = x_nchw.dtype
    itemsize = x_nchw.dtype.itemsize
    C8 = 8 * cin

    # Per-generation VMEM budget (~48 MiB on v7x, ~96 MiB on v5e/v6e).
    vmem_limit = int(_vmem_capacity_bytes() * 3 // 4)
    if row_tile is None:
        row_tile = _pick_row_tile(Hh, Wh, C1, cout, itemsize, vmem_limit // 2)
    TH = int(row_tile)
    assert 2 <= TH <= Hh and Hh % TH == 0, (TH, Hh)
    nT = Hh // TH

    # Single layout pass: NCHW -> half-major, plane-contiguous, parity-packed NHWC
    #   xs[n, i, j, (h*4 + 2*pr + pc)*cin + c] = x[n, h*cin + c, 2i + pr, 2j + pc]
    xs = x_nchw.reshape(N, 2, cin, Hh, 2, Wh, 2)
    xs = jnp.transpose(xs, (0, 3, 5, 1, 4, 6, 2)).reshape(N, Hh, Wh, C8)

    # cv1 weights packed for a single im2col matmul: row index = (ki*3+kj)*cin + c
    w1k = jnp.transpose(w1f, (2, 3, 1, 0)).reshape(9 * cin, cout).astype(dt)
    w2m = jnp.transpose(w2f.reshape(cout, cin), (1, 0)).astype(dt)
    b1m = b1f.reshape(1, cout).astype(jnp.float32)
    b2m = b2f.reshape(1, cout).astype(jnp.float32)

    kernel = make_adown_kernel(cin, cout, TH, Wh)

    out = pl.pallas_call(
        kernel,
        grid=(N, nT),
        in_specs=[
            # row tile of the packed input
            pl.BlockSpec((1, TH, Wh, C8), lambda n, t: (n, t, 0, 0)),
            # 1-row halos above / below (clamped at the image border; the kernel
            # only consumes them when valid, gated by pl.when on the tile index)
            pl.BlockSpec((1, 1, Wh, C8),
                         lambda n, t: (n, jnp.maximum(t * TH - 1, 0), 0, 0)),
            pl.BlockSpec((1, 1, Wh, C8),
                         lambda n, t: (n, jnp.minimum((t + 1) * TH, Hh - 1), 0, 0)),
            # weights / biases stay resident in VMEM (constant block index)
            pl.BlockSpec((9 * cin, cout), lambda n, t: (0, 0)),
            pl.BlockSpec((1, cout), lambda n, t: (0, 0)),
            pl.BlockSpec((cin, cout), lambda n, t: (0, 0)),
            pl.BlockSpec((1, cout), lambda n, t: (0, 0)),
        ],
        out_specs=pl.BlockSpec((1, TH, Wo, 2 * cout), lambda n, t: (n, t, 0, 0)),
        out_shape=jax.ShapeDtypeStruct((N, Ho, Wo, 2 * cout), dt),
        scratch_shapes=[
            pltpu.VMEM((TH, Wo + 1, cin), dt),        # s_eo  (even row, odd col)
            pltpu.VMEM((TH + 1, Wo, cin), dt),        # s_oe  (odd row, even col)
            pltpu.VMEM((TH + 1, Wo + 1, cin), dt),    # s_oo  (odd row, odd col)
            pltpu.VMEM((TH, Wo, 9 * cin), dt),        # s_col (im2col for cv1)
        ],
        compiler_params=pltpu.CompilerParams(
            dimension_semantics=("parallel", "parallel"),
            vmem_limit_bytes=vmem_limit,
        ),
    )(xs, xs, xs, w1k, b1m, w2m, b2m)

    # Branch-1 channels occupy [:cout], branch-2 [cout:]; only the NCHW
    # transpose remains on the wrapper side (module contract).
    return jnp.transpose(out, (0, 3, 1, 2))


# ---------------------------------------------------------------------------
# Reference (pure JAX) + synthetic parameter setup
# ---------------------------------------------------------------------------

def fold_bn(w, gamma, beta, mean, var, eps=1e-3):
    scale = gamma / jnp.sqrt(var + eps)
    return w * scale[:, None, None, None], beta - mean * scale


def adown_reference(x, w1f, b1f, w2f, b2f):
    y = lax.reduce_window(x, 0.0, lax.add, (1, 1, 2, 2), (1, 1, 1, 1), 'VALID') * 0.25
    c = x.shape[1] // 2
    x1, x2 = y[:, :c], y[:, c:]
    dn = ('NCHW', 'OIHW', 'NCHW')
    z1 = lax.conv_general_dilated(x1, w1f, (2, 2), ((1, 1), (1, 1)),
                                  dimension_numbers=dn) + b1f[None, :, None, None]
    a1 = z1 * jax.nn.sigmoid(z1)
    x2p = lax.reduce_window(x2, -jnp.inf, lax.max, (1, 1, 3, 3), (1, 1, 2, 2),
                            ((0, 0), (0, 0), (1, 1), (1, 1)))
    z2 = lax.conv_general_dilated(x2p, w2f, (1, 1), ((0, 0), (0, 0)),
                                  dimension_numbers=dn) + b2f[None, :, None, None]
    a2 = z2 * jax.nn.sigmoid(z2)
    return jnp.concatenate([a1, a2], axis=1)


if __name__ == "__main__":
    key = jax.random.PRNGKey(0)
    N, C1, H, W = 2, 4, 16, 16          # x: (2, 4, 16, 16) NCHW
    C2 = 8
    cout, cin = C2 // 2, C1 // 2

    ks = jax.random.split(key, 11)
    x = jax.random.normal(ks[0], (N, C1, H, W), jnp.float32)

    # cv1 = Conv2d(cin, cout, 3, 2, 1, bias=False) + BN + SiLU
    w1 = 0.3 * jax.random.normal(ks[1], (cout, cin, 3, 3), jnp.float32)
    g1 = 0.5 + jax.random.uniform(ks[2], (cout,), jnp.float32)
    be1 = 0.1 * jax.random.normal(ks[3], (cout,), jnp.float32)
    m1 = 0.1 * jax.random.normal(ks[4], (cout,), jnp.float32)
    v1 = 0.5 + jax.random.uniform(ks[5], (cout,), jnp.float32)

    # cv2 = Conv2d(cin, cout, 1, 1, 0, bias=False) + BN + SiLU
    w2 = 0.3 * jax.random.normal(ks[6], (cout, cin, 1, 1), jnp.float32)
    g2 = 0.5 + jax.random.uniform(ks[7], (cout,), jnp.float32)
    be2 = 0.1 * jax.random.normal(ks[8], (cout,), jnp.float32)
    m2 = 0.1 * jax.random.normal(ks[9], (cout,), jnp.float32)
    v2 = 0.5 + jax.random.uniform(ks[10], (cout,), jnp.float32)

    w1f, b1f = fold_bn(w1, g1, be1, m1, v1)
    w2f, b2f = fold_bn(w2, g2, be2, m2, v2)

    ref = jax.block_until_ready(adown_reference(x, w1f, b1f, w2f, b2f))

    # f32, auto row tile (single tile at this size)
    out = jax.block_until_ready(adown_forward(x, w1f, b1f, w2f, b2f))
    assert out.shape == (N, C2, H // 2, W // 2), out.shape
    np.testing.assert_allclose(np.asarray(out), np.asarray(ref),
                               rtol=1e-5, atol=1e-5)

    # f32, forced multi-tile: exercises the 1-row-halo row-tiling path
    for rt in (4, 2):
        out_rt = jax.block_until_ready(
            adown_forward(x, w1f, b1f, w2f, b2f, row_tile=rt))
        np.testing.assert_allclose(np.asarray(out_rt), np.asarray(ref),
                                   rtol=1e-5, atol=1e-5)

    # bf16 fast path (halves HBM/VMEM traffic, 2x MXU): loose-tolerance smoke test
    out_bf16 = jax.block_until_ready(
        adown_forward(x.astype(jnp.bfloat16), w1f, b1f, w2f, b2f, row_tile=4))
    np.testing.assert_allclose(np.asarray(out_bf16.astype(jnp.float32)),
                               np.asarray(ref), rtol=1e-1, atol=1e-1)

    print("KERNEL_OK")
</pallas_src>

<mosaic_0001>
module attributes {stable_mosaic.version = 11 : i64} {
  func.func @kernel(%arg0: i32, %arg1: i32, %arg2: memref<1x8x8x16xf32, #tpu.memory_space<vmem>>, %arg3: memref<1x1x8x16xf32, #tpu.memory_space<vmem>>, %arg4: memref<1x1x8x16xf32, #tpu.memory_space<vmem>>, %arg5: memref<18x4xf32, #tpu.memory_space<vmem>>, %arg6: memref<1x4xf32, #tpu.memory_space<vmem>>, %arg7: memref<2x4xf32, #tpu.memory_space<vmem>>, %arg8: memref<1x4xf32, #tpu.memory_space<vmem>>, %arg9: memref<1x8x8x8xf32, #tpu.memory_space<vmem>>, %arg10: memref<8x9x2xf32, #tpu.memory_space<vmem>>, %arg11: memref<9x8x2xf32, #tpu.memory_space<vmem>>, %arg12: memref<9x9x2xf32, #tpu.memory_space<vmem>>, %arg13: memref<8x8x18xf32, #tpu.memory_space<vmem>>) attributes {dimension_semantics = [#tpu.dimension_semantics<parallel>, #tpu.dimension_semantics<parallel>], iteration_bounds = array<i64: 2, 1>, scalar_prefetch = 0 : i64, scratch_operands = 4 : i64, tpu.core_type = #tpu.core_type<tc>, window_params = [{transform_indices = @transform_0, window_bounds = array<i64: 1, 8, 8, 16>}, {transform_indices = @transform_1, window_bounds = array<i64: 1, 1, 8, 16>}, {transform_indices = @transform_2, window_bounds = array<i64: 1, 1, 8, 16>}, {pipeline_mode = #tpu.pipeline_mode<synchronous>, transform_indices = @transform_3, window_bounds = array<i64: 18, 4>}, {pipeline_mode = #tpu.pipeline_mode<synchronous>, transform_indices = @transform_4, window_bounds = array<i64: 1, 4>}, {pipeline_mode = #tpu.pipeline_mode<synchronous>, transform_indices = @transform_5, window_bounds = array<i64: 2, 4>}, {pipeline_mode = #tpu.pipeline_mode<synchronous>, transform_indices = @transform_6, window_bounds = array<i64: 1, 4>}, {transform_indices = @transform_7, window_bounds = array<i64: 1, 8, 8, 8>}]} {
    %c0 = arith.constant 0 : index
    %c0_0 = arith.constant 0 : index
    %c0_1 = arith.constant 0 : index
    %c0_2 = arith.constant 0 : index
    %0 = vector.load %arg2[%c0, %c0_0, %c0_1, %c0_2] : memref<1x8x8x16xf32, #tpu.memory_space<vmem>>, vector<1x8x8x2xf32>
    %1 = vector.shape_cast %0 : vector<1x8x8x2xf32> to vector<8x8x2xf32>
    %c0_3 = arith.constant 0 : index
    %c0_4 = arith.constant 0 : index
    %c0_5 = arith.constant 0 : index
    %c2 = arith.constant 2 : index
    %2 = vector.load %arg2[%c0_3, %c0_4, %c0_5, %c2] : memref<1x8x8x16xf32, #tpu.memory_space<vmem>>, vector<1x8x8x2xf32>
    %3 = vector.shape_cast %2 : vector<1x8x8x2xf32> to vector<8x8x2xf32>
    %c0_6 = arith.constant 0 : index
    %c0_7 = arith.constant 0 : index
    %c0_8 = arith.constant 0 : index
    %c4 = arith.constant 4 : index
    %4 = vector.load %arg2[%c0_6, %c0_7, %c0_8, %c4] : memref<1x8x8x16xf32, #tpu.memory_space<vmem>>, vector<1x8x8x2xf32>
    %5 = vector.shape_cast %4 : vector<1x8x8x2xf32> to vector<8x8x2xf32>
    %c0_9 = arith.constant 0 : index
    %c0_10 = arith.constant 0 : index
    %c0_11 = arith.constant 0 : index
    %c6 = arith.constant 6 : index
    %6 = vector.load %arg2[%c0_9, %c0_10, %c0_11, %c6] : memref<1x8x8x16xf32, #tpu.memory_space<vmem>>, vector<1x8x8x2xf32>
    %7 = vector.shape_cast %6 : vector<1x8x8x2xf32> to vector<8x8x2xf32>
    %8 = arith.addf %1, %3 : vector<8x8x2xf32>
    %9 = arith.addf %8, %5 : vector<8x8x2xf32>
    %10 = arith.addf %9, %7 : vector<8x8x2xf32>
    %cst = arith.constant 2.500000e-01 : f32
    %11 = vector.broadcast %cst : f32 to vector<8x8x2xf32>
    %12 = arith.mulf %11, %10 : vector<8x8x2xf32>
    %13 = vector.extract_strided_slice %3 {offsets = [0, 0, 0], sizes = [8, 7, 2], strides = [1, 1, 1]} : vector<8x8x2xf32> to vector<8x7x2xf32>
    %14 = vector.extract_strided_slice %7 {offsets = [0, 0, 0], sizes = [8, 7, 2], strides = [1, 1, 1]} : vector<8x8x2xf32> to vector<8x7x2xf32>
    %15 = arith.addf %13, %14 : vector<8x7x2xf32>
    %16 = vector.extract_strided_slice %1 {offsets = [0, 1, 0], sizes = [8, 7, 2], strides = [1, 1, 1]} : vector<8x8x2xf32> to vector<8x7x2xf32>
    %17 = arith.addf %15, %16 : vector<8x7x2xf32>
    %18 = vector.extract_strided_slice %5 {offsets = [0, 1, 0], sizes = [8, 7, 2], strides = [1, 1, 1]} : vector<8x8x2xf32> to vector<8x7x2xf32>
    %19 = arith.addf %17, %18 : vector<8x7x2xf32>
    %cst_12 = arith.constant 2.500000e-01 : f32
    %20 = vector.broadcast %cst_12 : f32 to vector<8x7x2xf32>
    %21 = arith.mulf %20, %19 : vector<8x7x2xf32>
    %22 = vector.extract_strided_slice %5 {offsets = [0, 0, 0], sizes = [7, 8, 2], strides = [1, 1, 1]} : vector<8x8x2xf32> to vector<7x8x2xf32>
    %23 = vector.extract_strided_slice %7 {offsets = [0, 0, 0], sizes = [7, 8, 2], strides = [1, 1, 1]} : vector<8x8x2xf32> to vector<7x8x2xf32>
    %24 = arith.addf %22, %23 : vector<7x8x2xf32>
    %25 = vector.extract_strided_slice %1 {offsets = [1, 0, 0], sizes = [7, 8, 2], strides = [1, 1, 1]} : vector<8x8x2xf32> to vector<7x8x2xf32>
    %26 = arith.addf %24, %25 : vector<7x8x2xf32>
    %27 = vector.extract_strided_slice %3 {offsets = [1, 0, 0], sizes = [7, 8, 2], strides = [1, 1, 1]} : vector<8x8x2xf32> to vector<7x8x2xf32>
    %28 = arith.addf %26, %27 : vector<7x8x2xf32>
    %cst_13 = arith.constant 2.500000e-01 : f32
    %29 = vector.broadcast %cst_13 : f32 to vector<7x8x2xf32>
    %30 = arith.mulf %29, %28 : vector<7x8x2xf32>
    %31 = vector.extract_strided_slice %7 {offsets = [0, 0, 0], sizes = [7, 7, 2], strides = [1, 1, 1]} : vector<8x8x2xf32> to vector<7x7x2xf32>
    %32 = vector.extract_strided_slice %3 {offsets = [1, 0, 0], sizes = [7, 7, 2], strides = [1, 1, 1]} : vector<8x8x2xf32> to vector<7x7x2xf32>
    %33 = arith.addf %31, %32 : vector<7x7x2xf32>
    %34 = vector.extract_strided_slice %5 {offsets = [0, 1, 0], sizes = [7, 7, 2], strides = [1, 1, 1]} : vector<8x8x2xf32> to vector<7x7x2xf32>
    %35 = arith.addf %33, %34 : vector<7x7x2xf32>
    %36 = vector.extract_strided_slice %1 {offsets = [1, 1, 0], sizes = [7, 7, 2], strides = [1, 1, 1]} : vector<8x8x2xf32> to vector<7x7x2xf32>
    %37 = arith.addf %35, %36 : vector<7x7x2xf32>
    %cst_14 = arith.constant 2.500000e-01 : f32
    %38 = vector.broadcast %cst_14 : f32 to vector<7x7x2xf32>
    %39 = arith.mulf %38, %37 : vector<7x7x2xf32>
    %cst_15 = arith.constant 0.000000e+00 : f32
    %40 = vector.broadcast %cst_15 : f32 to vector<8x1x2xf32>
    %c0_16 = arith.constant 0 : index
    %c0_17 = arith.constant 0 : index
    %c0_18 = arith.constant 0 : index
    %41 = vector.load %arg10[%c0_16, %c0_17, %c0_18] : memref<8x9x2xf32, #tpu.memory_space<vmem>>, vector<8x1x2xf32>
    tpu.vector_store %arg10[%c0_16, %c0_17, %c0_18], %40 {strides = array<i32>} : memref<8x9x2xf32, #tpu.memory_space<vmem>>, vector<8x1x2xf32>,
    %cst_19 = arith.constant 0.000000e+00 : f32
    %42 = vector.broadcast %cst_19 : f32 to vector<8x1x2xf32>
    %c0_20 = arith.constant 0 : index
    %c8 = arith.constant 8 : index
    %c0_21 = arith.constant 0 : index
    %43 = vector.load %arg10[%c0_20, %c8, %c0_21] : memref<8x9x2xf32, #tpu.memory_space<vmem>>, vector<8x1x2xf32>
    tpu.vector_store %arg10[%c0_20, %c8, %c0_21], %42 {strides = array<i32>} : memref<8x9x2xf32, #tpu.memory_space<vmem>>, vector<8x1x2xf32>,
    %c0_22 = arith.constant 0 : index
    %c1 = arith.constant 1 : index
    %c0_23 = arith.constant 0 : index
    %44 = vector.load %arg10[%c0_22, %c1, %c0_23] : memref<8x9x2xf32, #tpu.memory_space<vmem>>, vector<8x7x2xf32>
    tpu.vector_store %arg10[%c0_22, %c1, %c0_23], %21 {strides = array<i32>} : memref<8x9x2xf32, #tpu.memory_space<vmem>>, vector<8x7x2xf32>,
    %c1_24 = arith.constant 1 : index
    %c0_25 = arith.constant 0 : index
    %c0_26 = arith.constant 0 : index
    %45 = vector.load %arg11[%c1_24, %c0_25, %c0_26] : memref<9x8x2xf32, #tpu.memory_space<vmem>>, vector<7x8x2xf32>
    tpu.vector_store %arg11[%c1_24, %c0_25, %c0_26], %30 {strides = array<i32>} : memref<9x8x2xf32, #tpu.memory_space<vmem>>, vector<7x8x2xf32>,
    %cst_27 = arith.constant 0.000000e+00 : f32
    %46 = vector.broadcast %cst_27 : f32 to vector<9x1x2xf32>
    %c0_28 = arith.constant 0 : index
    %c0_29 = arith.constant 0 : index
    %c0_30 = arith.constant 0 : index
    %47 = vector.load %arg12[%c0_28, %c0_29, %c0_30] : memref<9x9x2xf32, #tpu.memory_space<vmem>>, vector<9x1x2xf32>
    tpu.vector_store %arg12[%c0_28, %c0_29, %c0_30], %46 {strides = array<i32>} : memref<9x9x2xf32, #tpu.memory_space<vmem>>, vector<9x1x2xf32>,
    %cst_31 = arith.constant 0.000000e+00 : f32
    %48 = vector.broadcast %cst_31 : f32 to vector<9x1x2xf32>
    %c0_32 = arith.constant 0 : index
    %c8_33 = arith.constant 8 : index
    %c0_34 = arith.constant 0 : index
    %49 = vector.load %arg12[%c0_32, %c8_33, %c0_34] : memref<9x9x2xf32, #tpu.memory_space<vmem>>, vector<9x1x2xf32>
    tpu.vector_store %arg12[%c0_32, %c8_33, %c0_34], %48 {strides = array<i32>} : memref<9x9x2xf32, #tpu.memory_space<vmem>>, vector<9x1x2xf32>,
    %c1_35 = arith.constant 1 : index
    %c1_36 = arith.constant 1 : index
    %c0_37 = arith.constant 0 : index
    %50 = vector.load %arg12[%c1_35, %c1_36, %c0_37] : memref<9x9x2xf32, #tpu.memory_space<vmem>>, vector<7x7x2xf32>
    tpu.vector_store %arg12[%c1_35, %c1_36, %c0_37], %39 {strides = array<i32>} : memref<9x9x2xf32, #tpu.memory_space<vmem>>, vector<7x7x2xf32>,
    %c0_i32 = arith.constant 0 : i32
    %51 = arith.cmpi sgt, %arg1, %c0_i32 : i32
    %52 = arith.extui %51 : i1 to i32
    %c0_i32_38 = arith.constant 0 : i32
    %53 = arith.cmpi ne, %52, %c0_i32_38 : i32
    scf.if %53 {
      %c0_192 = arith.constant 0 : index
      %c0_193 = arith.constant 0 : index
      %c0_194 = arith.constant 0 : index
      %c4_195 = arith.constant 4 : index
      %192 = vector.load %arg3[%c0_192, %c0_193, %c0_194, %c4_195] : memref<1x1x8x16xf32, #tpu.memory_space<vmem>>, vector<1x1x8x2xf32>
      %193 = vector.shape_cast %192 : vector<1x1x8x2xf32> to vector<1x8x2xf32>
      %c0_196 = arith.constant 0 : index
      %c0_197 = arith.constant 0 : index
      %c0_198 = arith.constant 0 : index
      %c6_199 = arith.constant 6 : index
      %194 = vector.load %arg3[%c0_196, %c0_197, %c0_198, %c6_199] : memref<1x1x8x16xf32, #tpu.memory_space<vmem>>, vector<1x1x8x2xf32>
      %195 = vector.shape_cast %194 : vector<1x1x8x2xf32> to vector<1x8x2xf32>
      %196 = arith.addf %193, %195 : vector<1x8x2xf32>
      %197 = vector.extract_strided_slice %1 {offsets = [0, 0, 0], sizes = [1, 8, 2], strides = [1, 1, 1]} : vector<8x8x2xf32> to vector<1x8x2xf32>
      %198 = arith.addf %196, %197 : vector<1x8x2xf32>
      %199 = vector.extract_strided_slice %3 {offsets = [0, 0, 0], sizes = [1, 8, 2], strides = [1, 1, 1]} : vector<8x8x2xf32> to vector<1x8x2xf32>
      %200 = arith.addf %198, %199 : vector<1x8x2xf32>
      %cst_200 = arith.constant 2.500000e-01 : f32
      %201 = vector.broadcast %cst_200 : f32 to vector<1x8x2xf32>
      %202 = arith.mulf %201, %200 : vector<1x8x2xf32>
      %c0_201 = arith.constant 0 : index
      %c0_202 = arith.constant 0 : index
      %c0_203 = arith.constant 0 : index
      %203 = vector.load %arg11[%c0_201, %c0_202, %c0_203] : memref<9x8x2xf32, #tpu.memory_space<vmem>>, vector<1x8x2xf32>
      tpu.vector_store %arg11[%c0_201, %c0_202, %c0_203], %202 {strides = array<i32>} : memref<9x8x2xf32, #tpu.memory_space<vmem>>, vector<1x8x2xf32>,
      %204 = vector.extract_strided_slice %195 {offsets = [0, 0, 0], sizes = [1, 7, 2], strides = [1, 1, 1]} : vector<1x8x2xf32> to vector<1x7x2xf32>
      %205 = vector.extract_strided_slice %193 {offsets = [0, 1, 0], sizes = [1, 7, 2], strides = [1, 1, 1]} : vector<1x8x2xf32> to vector<1x7x2xf32>
      %206 = arith.addf %204, %205 : vector<1x7x2xf32>
      %207 = vector.extract_strided_slice %3 {offsets = [0, 0, 0], sizes = [1, 7, 2], strides = [1, 1, 1]} : vector<8x8x2xf32> to vector<1x7x2xf32>
      %208 = arith.addf %206, %207 : vector<1x7x2xf32>
      %209 = vector.extract_strided_slice %1 {offsets = [0, 1, 0], sizes = [1, 7, 2], strides = [1, 1, 1]} : vector<8x8x2xf32> to vector<1x7x2xf32>
      %210 = arith.addf %208, %209 : vector<1x7x2xf32>
      %cst_204 = arith.constant 2.500000e-01 : f32
      %211 = vector.broadcast %cst_204 : f32 to vector<1x7x2xf32>
      %212 = arith.mulf %211, %210 : vector<1x7x2xf32>
      %c0_205 = arith.constant 0 : index
      %c1_206 = arith.constant 1 : index
      %c0_207 = arith.constant 0 : index
      %213 = vector.load %arg12[%c0_205, %c1_206, %c0_207] : memref<9x9x2xf32, #tpu.memory_space<vmem>>, vector<1x7x2xf32>
      tpu.vector_store %arg12[%c0_205, %c1_206, %c0_207], %212 {strides = array<i32>} : memref<9x9x2xf32, #tpu.memory_space<vmem>>, vector<1x7x2xf32>,
    } else {
    }
    %c0_i32_39 = arith.constant 0 : i32
    %54 = arith.cmpi eq, %arg1, %c0_i32_39 : i32
    %55 = arith.extui %54 : i1 to i32
    %c0_i32_40 = arith.constant 0 : i32
    %56 = arith.cmpi ne, %55, %c0_i32_40 : i32
    scf.if %56 {
      %cst_192 = arith.constant 0.000000e+00 : f32
      %192 = vector.broadcast %cst_192 : f32 to vector<1x8x2xf32>
      %c0_193 = arith.constant 0 : index
      %c0_194 = arith.constant 0 : index
      %c0_195 = arith.constant 0 : index
      %193 = vector.load %arg11[%c0_193, %c0_194, %c0_195] : memref<9x8x2xf32, #tpu.memory_space<vmem>>, vector<1x8x2xf32>
      tpu.vector_store %arg11[%c0_193, %c0_194, %c0_195], %192 {strides = array<i32>} : memref<9x8x2xf32, #tpu.memory_space<vmem>>, vector<1x8x2xf32>,
      %cst_196 = arith.constant 0.000000e+00 : f32
      %194 = vector.broadcast %cst_196 : f32 to vector<1x7x2xf32>
      %c0_197 = arith.constant 0 : index
      %c1_198 = arith.constant 1 : index
      %c0_199 = arith.constant 0 : index
      %195 = vector.load %arg12[%c0_197, %c1_198, %c0_199] : memref<9x9x2xf32, #tpu.memory_space<vmem>>, vector<1x7x2xf32>
      tpu.vector_store %arg12[%c0_197, %c1_198, %c0_199], %194 {strides = array<i32>} : memref<9x9x2xf32, #tpu.memory_space<vmem>>, vector<1x7x2xf32>,
    } else {
    }
    %c0_i32_41 = arith.constant 0 : i32
    %57 = arith.cmpi slt, %arg1, %c0_i32_41 : i32
    %58 = arith.extui %57 : i1 to i32
    %c0_i32_42 = arith.constant 0 : i32
    %59 = arith.cmpi ne, %58, %c0_i32_42 : i32
    scf.if %59 {
      %c0_192 = arith.constant 0 : index
      %c0_193 = arith.constant 0 : index
      %c0_194 = arith.constant 0 : index
      %c0_195 = arith.constant 0 : index
      %192 = vector.load %arg4[%c0_192, %c0_193, %c0_194, %c0_195] : memref<1x1x8x16xf32, #tpu.memory_space<vmem>>, vector<1x1x8x2xf32>
      %193 = vector.shape_cast %192 : vector<1x1x8x2xf32> to vector<1x8x2xf32>
      %c0_196 = arith.constant 0 : index
      %c0_197 = arith.constant 0 : index
      %c0_198 = arith.constant 0 : index
      %c2_199 = arith.constant 2 : index
      %194 = vector.load %arg4[%c0_196, %c0_197, %c0_198, %c2_199] : memref<1x1x8x16xf32, #tpu.memory_space<vmem>>, vector<1x1x8x2xf32>
      %195 = vector.shape_cast %194 : vector<1x1x8x2xf32> to vector<1x8x2xf32>
      %196 = vector.extract_strided_slice %5 {offsets = [7, 0, 0], sizes = [1, 8, 2], strides = [1, 1, 1]} : vector<8x8x2xf32> to vector<1x8x2xf32>
      %197 = vector.extract_strided_slice %7 {offsets = [7, 0, 0], sizes = [1, 8, 2], strides = [1, 1, 1]} : vector<8x8x2xf32> to vector<1x8x2xf32>
      %198 = arith.addf %196, %197 : vector<1x8x2xf32>
      %199 = arith.addf %198, %193 : vector<1x8x2xf32>
      %200 = arith.addf %199, %195 : vector<1x8x2xf32>
      %cst_200 = arith.constant 2.500000e-01 : f32
      %201 = vector.broadcast %cst_200 : f32 to vector<1x8x2xf32>
      %202 = arith.mulf %201, %200 : vector<1x8x2xf32>
      %c8_201 = arith.constant 8 : index
      %c0_202 = arith.constant 0 : index
      %c0_203 = arith.constant 0 : index
      %203 = vector.load %arg11[%c8_201, %c0_202, %c0_203] : memref<9x8x2xf32, #tpu.memory_space<vmem>>, vector<1x8x2xf32>
      tpu.vector_store %arg11[%c8_201, %c0_202, %c0_203], %202 {strides = array<i32>} : memref<9x8x2xf32, #tpu.memory_space<vmem>>, vector<1x8x2xf32>,
      %204 = vector.extract_strided_slice %7 {offsets = [7, 0, 0], sizes = [1, 7, 2], strides = [1, 1, 1]} : vector<8x8x2xf32> to vector<1x7x2xf32>
      %205 = vector.extract_strided_slice %5 {offsets = [7, 1, 0], sizes = [1, 7, 2], strides = [1, 1, 1]} : vector<8x8x2xf32> to vector<1x7x2xf32>
      %206 = arith.addf %204, %205 : vector<1x7x2xf32>
      %207 = vector.extract_strided_slice %195 {offsets = [0, 0, 0], sizes = [1, 7, 2], strides = [1, 1, 1]} : vector<1x8x2xf32> to vector<1x7x2xf32>
      %208 = arith.addf %206, %207 : vector<1x7x2xf32>
      %209 = vector.extract_strided_slice %193 {offsets = [0, 1, 0], sizes = [1, 7, 2], strides = [1, 1, 1]} : vector<1x8x2xf32> to vector<1x7x2xf32>
      %210 = arith.addf %208, %209 : vector<1x7x2xf32>
      %cst_204 = arith.constant 2.500000e-01 : f32
      %211 = vector.broadcast %cst_204 : f32 to vector<1x7x2xf32>
      %212 = arith.mulf %211, %210 : vector<1x7x2xf32>
      %c8_205 = arith.constant 8 : index
      %c1_206 = arith.constant 1 : index
      %c0_207 = arith.constant 0 : index
      %213 = vector.load %arg12[%c8_205, %c1_206, %c0_207] : memref<9x9x2xf32, #tpu.memory_space<vmem>>, vector<1x7x2xf32>
      tpu.vector_store %arg12[%c8_205, %c1_206, %c0_207], %212 {strides = array<i32>} : memref<9x9x2xf32, #tpu.memory_space<vmem>>, vector<1x7x2xf32>,
    } else {
    }
    %c0_i32_43 = arith.constant 0 : i32
    %60 = arith.cmpi eq, %arg1, %c0_i32_43 : i32
    %61 = arith.extui %60 : i1 to i32
    %c0_i32_44 = arith.constant 0 : i32
    %62 = arith.cmpi ne, %61, %c0_i32_44 : i32
    scf.if %62 {
      %cst_192 = arith.constant 0.000000e+00 : f32
      %192 = vector.broadcast %cst_192 : f32 to vector<1x8x2xf32>
      %c8_193 = arith.constant 8 : index
      %c0_194 = arith.constant 0 : index
      %c0_195 = arith.constant 0 : index
      %193 = vector.load %arg11[%c8_193, %c0_194, %c0_195] : memref<9x8x2xf32, #tpu.memory_space<vmem>>, vector<1x8x2xf32>
      tpu.vector_store %arg11[%c8_193, %c0_194, %c0_195], %192 {strides = array<i32>} : memref<9x8x2xf32, #tpu.memory_space<vmem>>, vector<1x8x2xf32>,
      %cst_196 = arith.constant 0.000000e+00 : f32
      %194 = vector.broadcast %cst_196 : f32 to vector<1x7x2xf32>
      %c8_197 = arith.constant 8 : index
      %c1_198 = arith.constant 1 : index
      %c0_199 = arith.constant 0 : index
      %195 = vector.load %arg12[%c8_197, %c1_198, %c0_199] : memref<9x9x2xf32, #tpu.memory_space<vmem>>, vector<1x7x2xf32>
      tpu.vector_store %arg12[%c8_197, %c1_198, %c0_199], %194 {strides = array<i32>} : memref<9x9x2xf32, #tpu.memory_space<vmem>>, vector<1x7x2xf32>,
    } else {
    }
    %c0_45 = arith.constant 0 : index
    %c0_46 = arith.constant 0 : index
    %c0_47 = arith.constant 0 : index
    %63 = vector.load %arg12[%c0_45, %c0_46, %c0_47] : memref<9x9x2xf32, #tpu.memory_space<vmem>>, vector<8x8x2xf32>
    %c0_48 = arith.constant 0 : index
    %c0_49 = arith.constant 0 : index
    %c0_50 = arith.constant 0 : index
    %64 = vector.load %arg13[%c0_48, %c0_49, %c0_50] : memref<8x8x18xf32, #tpu.memory_space<vmem>>, vector<8x8x2xf32>
    tpu.vector_store %arg13[%c0_48, %c0_49, %c0_50], %63 {strides = array<i32>} : memref<8x8x18xf32, #tpu.memory_space<vmem>>, vector<8x8x2xf32>,
    %c0_51 = arith.constant 0 : index
    %c0_52 = arith.constant 0 : index
    %c0_53 = arith.constant 0 : index
    %65 = vector.load %arg11[%c0_51, %c0_52, %c0_53] : memref<9x8x2xf32, #tpu.memory_space<vmem>>, vector<8x8x2xf32>
    %c0_54 = arith.constant 0 : index
    %c0_55 = arith.constant 0 : index
    %c2_56 = arith.constant 2 : index
    %66 = vector.load %arg13[%c0_54, %c0_55, %c2_56] : memref<8x8x18xf32, #tpu.memory_space<vmem>>, vector<8x8x2xf32>
    tpu.vector_store %arg13[%c0_54, %c0_55, %c2_56], %65 {strides = array<i32>} : memref<8x8x18xf32, #tpu.memory_space<vmem>>, vector<8x8x2xf32>,
    %c0_57 = arith.constant 0 : index
    %c1_58 = arith.constant 1 : index
    %c0_59 = arith.constant 0 : index
    %67 = vector.load %arg12[%c0_57, %c1_58, %c0_59] : memref<9x9x2xf32, #tpu.memory_space<vmem>>, vector<8x8x2xf32>
    %c0_60 = arith.constant 0 : index
    %c0_61 = arith.constant 0 : index
    %c4_62 = arith.constant 4 : index
    %68 = vector.load %arg13[%c0_60, %c0_61, %c4_62] : memref<8x8x18xf32, #tpu.memory_space<vmem>>, vector<8x8x2xf32>
    tpu.vector_store %arg13[%c0_60, %c0_61, %c4_62], %67 {strides = array<i32>} : memref<8x8x18xf32, #tpu.memory_space<vmem>>, vector<8x8x2xf32>,
    %c0_63 = arith.constant 0 : index
    %c0_64 = arith.constant 0 : index
    %c0_65 = arith.constant 0 : index
    %69 = vector.load %arg10[%c0_63, %c0_64, %c0_65] : memref<8x9x2xf32, #tpu.memory_space<vmem>>, vector<8x8x2xf32>
    %c0_66 = arith.constant 0 : index
    %c0_67 = arith.constant 0 : index
    %c6_68 = arith.constant 6 : index
    %70 = vector.load %arg13[%c0_66, %c0_67, %c6_68] : memref<8x8x18xf32, #tpu.memory_space<vmem>>, vector<8x8x2xf32>
    tpu.vector_store %arg13[%c0_66, %c0_67, %c6_68], %69 {strides = array<i32>} : memref<8x8x18xf32, #tpu.memory_space<vmem>>, vector<8x8x2xf32>,
    %c0_69 = arith.constant 0 : index
    %c0_70 = arith.constant 0 : index
    %c8_71 = arith.constant 8 : index
    %71 = vector.load %arg13[%c0_69, %c0_70, %c8_71] : memref<8x8x18xf32, #tpu.memory_space<vmem>>, vector<8x8x2xf32>
    tpu.vector_store %arg13[%c0_69, %c0_70, %c8_71], %12 {strides = array<i32>} : memref<8x8x18xf32, #tpu.memory_space<vmem>>, vector<8x8x2xf32>,
    %c0_72 = arith.constant 0 : index
    %c1_73 = arith.constant 1 : index
    %c0_74 = arith.constant 0 : index
    %72 = vector.load %arg10[%c0_72, %c1_73, %c0_74] : memref<8x9x2xf32, #tpu.memory_space<vmem>>, vector<8x8x2xf32>
    %c0_75 = arith.constant 0 : index
    %c0_76 = arith.constant 0 : index
    %c10 = arith.constant 10 : index
    %73 = vector.load %arg13[%c0_75, %c0_76, %c10] : memref<8x8x18xf32, #tpu.memory_space<vmem>>, vector<8x8x2xf32>
    tpu.vector_store %arg13[%c0_75, %c0_76, %c10], %72 {strides = array<i32>} : memref<8x8x18xf32, #tpu.memory_space<vmem>>, vector<8x8x2xf32>,
    %c1_77 = arith.constant 1 : index
    %c0_78 = arith.constant 0 : index
    %c0_79 = arith.constant 0 : index
    %74 = vector.load %arg12[%c1_77, %c0_78, %c0_79] : memref<9x9x2xf32, #tpu.memory_space<vmem>>, vector<8x8x2xf32>
    %c0_80 = arith.constant 0 : index
    %c0_81 = arith.constant 0 : index
    %c12 = arith.constant 12 : index
    %75 = vector.load %arg13[%c0_80, %c0_81, %c12] : memref<8x8x18xf32, #tpu.memory_space<vmem>>, vector<8x8x2xf32>
    tpu.vector_store %arg13[%c0_80, %c0_81, %c12], %74 {strides = array<i32>} : memref<8x8x18xf32, #tpu.memory_space<vmem>>, vector<8x8x2xf32>,
    %c1_82 = arith.constant 1 : index
    %c0_83 = arith.constant 0 : index
    %c0_84 = arith.constant 0 : index
    %76 = vector.load %arg11[%c1_82, %c0_83, %c0_84] : memref<9x8x2xf32, #tpu.memory_space<vmem>>, vector<8x8x2xf32>
    %c0_85 = arith.constant 0 : index
    %c0_86 = arith.constant 0 : index
    %c14 = arith.constant 14 : index
    %77 = vector.load %arg13[%c0_85, %c0_86, %c14] : memref<8x8x18xf32, #tpu.memory_space<vmem>>, vector<8x8x2xf32>
    tpu.vector_store %arg13[%c0_85, %c0_86, %c14], %76 {strides = array<i32>} : memref<8x8x18xf32, #tpu.memory_space<vmem>>, vector<8x8x2xf32>,
    %c1_87 = arith.constant 1 : index
    %c1_88 = arith.constant 1 : index
    %c0_89 = arith.constant 0 : index
    %78 = vector.load %arg12[%c1_87, %c1_88, %c0_89] : memref<9x9x2xf32, #tpu.memory_space<vmem>>, vector<8x8x2xf32>
    %c0_90 = arith.constant 0 : index
    %c0_91 = arith.constant 0 : index
    %c16 = arith.constant 16 : index
    %79 = vector.load %arg13[%c0_90, %c0_91, %c16] : memref<8x8x18xf32, #tpu.memory_space<vmem>>, vector<8x8x2xf32>
    tpu.vector_store %arg13[%c0_90, %c0_91, %c16], %78 {strides = array<i32>} : memref<8x8x18xf32, #tpu.memory_space<vmem>>, vector<8x8x2xf32>,
    %c0_92 = arith.constant 0 : index
    %c0_93 = arith.constant 0 : index
    %c0_94 = arith.constant 0 : index
    %80 = vector.load %arg13[%c0_92, %c0_93, %c0_94] : memref<8x8x18xf32, #tpu.memory_space<vmem>>, vector<8x8x18xf32>
    %81 = vector.shape_cast %80 : vector<8x8x18xf32> to vector<64x18xf32>
    %c0_95 = arith.constant 0 : index
    %c0_96 = arith.constant 0 : index
    %82 = vector.load %arg5[%c0_95, %c0_96] : memref<18x4xf32, #tpu.memory_space<vmem>>, vector<18x4xf32>
    %cst_97 = arith.constant dense<0.000000e+00> : vector<64x4xf32>
    %83 = tpu.matmul %81, %82, %cst_97 {dimension_numbers = #tpu.dot_dimension_numbers<[1], [0], [0], [1], [0, 0, 1, 1], [], []>} : vector<64x18xf32>, vector<18x4xf32>, vector<64x4xf32> -> vector<64x4xf32>
    %c0_98 = arith.constant 0 : index
    %c0_99 = arith.constant 0 : index
    %84 = vector.load %arg6[%c0_98, %c0_99] : memref<1x4xf32, #tpu.memory_space<vmem>>, vector<1x4xf32>
    %85 = vector.broadcast %84 : vector<1x4xf32> to vector<64x4xf32>
    %86 = arith.addf %83, %85 : vector<64x4xf32>
    %87 = arith.negf %86 : vector<64x4xf32>
    %88 = math.exp %87 : vector<64x4xf32>
    %cst_100 = arith.constant 1.000000e+00 : f32
    %89 = vector.broadcast %cst_100 : f32 to vector<64x4xf32>
    %90 = arith.addf %89, %88 : vector<64x4xf32>
    %91 = arith.divf %89, %90 : vector<64x4xf32>
    %92 = arith.mulf %86, %91 : vector<64x4xf32>
    %93 = vector.shape_cast %92 : vector<64x4xf32> to vector<8x8x4xf32>
    %c0_101 = arith.constant 0 : index
    %c0_102 = arith.constant 0 : index
    %c0_103 = arith.constant 0 : index
    %c0_104 = arith.constant 0 : index
    %94 = vector.load %arg9[%c0_101, %c0_102, %c0_103, %c0_104] : memref<1x8x8x8xf32, #tpu.memory_space<vmem>>, vector<1x8x8x4xf32>
    %95 = vector.shape_cast %94 : vector<1x8x8x4xf32> to vector<8x8x4xf32>
    %96 = vector.shape_cast %93 : vector<8x8x4xf32> to vector<1x8x8x4xf32>
    tpu.vector_store %arg9[%c0_101, %c0_102, %c0_103, %c0_104], %96 {strides = array<i32>} : memref<1x8x8x8xf32, #tpu.memory_space<vmem>>, vector<1x8x8x4xf32>,
    %c0_105 = arith.constant 0 : index
    %c0_106 = arith.constant 0 : index
    %c0_107 = arith.constant 0 : index
    %c8_108 = arith.constant 8 : index
    %97 = vector.load %arg2[%c0_105, %c0_106, %c0_107, %c8_108] : memref<1x8x8x16xf32, #tpu.memory_space<vmem>>, vector<1x8x8x2xf32>
    %98 = vector.shape_cast %97 : vector<1x8x8x2xf32> to vector<8x8x2xf32>
    %c0_109 = arith.constant 0 : index
    %c0_110 = arith.constant 0 : index
    %c0_111 = arith.constant 0 : index
    %c10_112 = arith.constant 10 : index
    %99 = vector.load %arg2[%c0_109, %c0_110, %c0_111, %c10_112] : memref<1x8x8x16xf32, #tpu.memory_space<vmem>>, vector<1x8x8x2xf32>
    %100 = vector.shape_cast %99 : vector<1x8x8x2xf32> to vector<8x8x2xf32>
    %c0_113 = arith.constant 0 : index
    %c0_114 = arith.constant 0 : index
    %c0_115 = arith.constant 0 : index
    %c12_116 = arith.constant 12 : index
    %101 = vector.load %arg2[%c0_113, %c0_114, %c0_115, %c12_116] : memref<1x8x8x16xf32, #tpu.memory_space<vmem>>, vector<1x8x8x2xf32>
    %102 = vector.shape_cast %101 : vector<1x8x8x2xf32> to vector<8x8x2xf32>
    %c0_117 = arith.constant 0 : index
    %c0_118 = arith.constant 0 : index
    %c0_119 = arith.constant 0 : index
    %c14_120 = arith.constant 14 : index
    %103 = vector.load %arg2[%c0_117, %c0_118, %c0_119, %c14_120] : memref<1x8x8x16xf32, #tpu.memory_space<vmem>>, vector<1x8x8x2xf32>
    %104 = vector.shape_cast %103 : vector<1x8x8x2xf32> to vector<8x8x2xf32>
    %105 = arith.addf %98, %100 : vector<8x8x2xf32>
    %106 = arith.addf %105, %102 : vector<8x8x2xf32>
    %107 = arith.addf %106, %104 : vector<8x8x2xf32>
    %cst_121 = arith.constant 2.500000e-01 : f32
    %108 = vector.broadcast %cst_121 : f32 to vector<8x8x2xf32>
    %109 = arith.mulf %108, %107 : vector<8x8x2xf32>
    %110 = vector.extract_strided_slice %100 {offsets = [0, 0, 0], sizes = [8, 7, 2], strides = [1, 1, 1]} : vector<8x8x2xf32> to vector<8x7x2xf32>
    %111 = vector.extract_strided_slice %104 {offsets = [0, 0, 0], sizes = [8, 7, 2], strides = [1, 1, 1]} : vector<8x8x2xf32> to vector<8x7x2xf32>
    %112 = arith.addf %110, %111 : vector<8x7x2xf32>
    %113 = vector.extract_strided_slice %98 {offsets = [0, 1, 0], sizes = [8, 7, 2], strides = [1, 1, 1]} : vector<8x8x2xf32> to vector<8x7x2xf32>
    %114 = arith.addf %112, %113 : vector<8x7x2xf32>
    %115 = vector.extract_strided_slice %102 {offsets = [0, 1, 0], sizes = [8, 7, 2], strides = [1, 1, 1]} : vector<8x8x2xf32> to vector<8x7x2xf32>
    %116 = arith.addf %114, %115 : vector<8x7x2xf32>
    %cst_122 = arith.constant 2.500000e-01 : f32
    %117 = vector.broadcast %cst_122 : f32 to vector<8x7x2xf32>
    %118 = arith.mulf %117, %116 : vector<8x7x2xf32>
    %119 = vector.extract_strided_slice %102 {offsets = [0, 0, 0], sizes = [7, 8, 2], strides = [1, 1, 1]} : vector<8x8x2xf32> to vector<7x8x2xf32>
    %120 = vector.extract_strided_slice %104 {offsets = [0, 0, 0], sizes = [7, 8, 2], strides = [1, 1, 1]} : vector<8x8x2xf32> to vector<7x8x2xf32>
    %121 = arith.addf %119, %120 : vector<7x8x2xf32>
    %122 = vector.extract_strided_slice %98 {offsets = [1, 0, 0], sizes = [7, 8, 2], strides = [1, 1, 1]} : vector<8x8x2xf32> to vector<7x8x2xf32>
    %123 = arith.addf %121, %122 : vector<7x8x2xf32>
    %124 = vector.extract_strided_slice %100 {offsets = [1, 0, 0], sizes = [7, 8, 2], strides = [1, 1, 1]} : vector<8x8x2xf32> to vector<7x8x2xf32>
    %125 = arith.addf %123, %124 : vector<7x8x2xf32>
    %cst_123 = arith.constant 2.500000e-01 : f32
    %126 = vector.broadcast %cst_123 : f32 to vector<7x8x2xf32>
    %127 = arith.mulf %126, %125 : vector<7x8x2xf32>
    %128 = vector.extract_strided_slice %104 {offsets = [0, 0, 0], sizes = [7, 7, 2], strides = [1, 1, 1]} : vector<8x8x2xf32> to vector<7x7x2xf32>
    %129 = vector.extract_strided_slice %100 {offsets = [1, 0, 0], sizes = [7, 7, 2], strides = [1, 1, 1]} : vector<8x8x2xf32> to vector<7x7x2xf32>
    %130 = arith.addf %128, %129 : vector<7x7x2xf32>
    %131 = vector.extract_strided_slice %102 {offsets = [0, 1, 0], sizes = [7, 7, 2], strides = [1, 1, 1]} : vector<8x8x2xf32> to vector<7x7x2xf32>
    %132 = arith.addf %130, %131 : vector<7x7x2xf32>
    %133 = vector.extract_strided_slice %98 {offsets = [1, 1, 0], sizes = [7, 7, 2], strides = [1, 1, 1]} : vector<8x8x2xf32> to vector<7x7x2xf32>
    %134 = arith.addf %132, %133 : vector<7x7x2xf32>
    %cst_124 = arith.constant 2.500000e-01 : f32
    %135 = vector.broadcast %cst_124 : f32 to vector<7x7x2xf32>
    %136 = arith.mulf %135, %134 : vector<7x7x2xf32>
    %cst_125 = arith.constant 0xFF800000 : f32
    %137 = vector.broadcast %cst_125 : f32 to vector<8x1x2xf32>
    %c0_126 = arith.constant 0 : index
    %c0_127 = arith.constant 0 : index
    %c0_128 = arith.constant 0 : index
    %138 = vector.load %arg10[%c0_126, %c0_127, %c0_128] : memref<8x9x2xf32, #tpu.memory_space<vmem>>, vector<8x1x2xf32>
    tpu.vector_store %arg10[%c0_126, %c0_127, %c0_128], %137 {strides = array<i32>} : memref<8x9x2xf32, #tpu.memory_space<vmem>>, vector<8x1x2xf32>,
    %cst_129 = arith.constant 0xFF800000 : f32
    %139 = vector.broadcast %cst_129 : f32 to vector<8x1x2xf32>
    %c0_130 = arith.constant 0 : index
    %c8_131 = arith.constant 8 : index
    %c0_132 = arith.constant 0 : index
    %140 = vector.load %arg10[%c0_130, %c8_131, %c0_132] : memref<8x9x2xf32, #tpu.memory_space<vmem>>, vector<8x1x2xf32>
    tpu.vector_store %arg10[%c0_130, %c8_131, %c0_132], %139 {strides = array<i32>} : memref<8x9x2xf32, #tpu.memory_space<vmem>>, vector<8x1x2xf32>,
    %c0_133 = arith.constant 0 : index
    %c1_134 = arith.constant 1 : index
    %c0_135 = arith.constant 0 : index
    %141 = vector.load %arg10[%c0_133, %c1_134, %c0_135] : memref<8x9x2xf32, #tpu.memory_space<vmem>>, vector<8x7x2xf32>
    tpu.vector_store %arg10[%c0_133, %c1_134, %c0_135], %118 {strides = array<i32>} : memref<8x9x2xf32, #tpu.memory_space<vmem>>, vector<8x7x2xf32>,
    %c1_136 = arith.constant 1 : index
    %c0_137 = arith.constant 0 : index
    %c0_138 = arith.constant 0 : index
    %142 = vector.load %arg11[%c1_136, %c0_137, %c0_138] : memref<9x8x2xf32, #tpu.memory_space<vmem>>, vector<7x8x2xf32>
    tpu.vector_store %arg11[%c1_136, %c0_137, %c0_138], %127 {strides = array<i32>} : memref<9x8x2xf32, #tpu.memory_space<vmem>>, vector<7x8x2xf32>,
    %cst_139 = arith.constant 0xFF800000 : f32
    %143 = vector.broadcast %cst_139 : f32 to vector<9x1x2xf32>
    %c0_140 = arith.constant 0 : index
    %c0_141 = arith.constant 0 : index
    %c0_142 = arith.constant 0 : index
    %144 = vector.load %arg12[%c0_140, %c0_141, %c0_142] : memref<9x9x2xf32, #tpu.memory_space<vmem>>, vector<9x1x2xf32>
    tpu.vector_store %arg12[%c0_140, %c0_141, %c0_142], %143 {strides = array<i32>} : memref<9x9x2xf32, #tpu.memory_space<vmem>>, vector<9x1x2xf32>,
    %cst_143 = arith.constant 0xFF800000 : f32
    %145 = vector.broadcast %cst_143 : f32 to vector<9x1x2xf32>
    %c0_144 = arith.constant 0 : index
    %c8_145 = arith.constant 8 : index
    %c0_146 = arith.constant 0 : index
    %146 = vector.load %arg12[%c0_144, %c8_145, %c0_146] : memref<9x9x2xf32, #tpu.memory_space<vmem>>, vector<9x1x2xf32>
    tpu.vector_store %arg12[%c0_144, %c8_145, %c0_146], %145 {strides = array<i32>} : memref<9x9x2xf32, #tpu.memory_space<vmem>>, vector<9x1x2xf32>,
    %c1_147 = arith.constant 1 : index
    %c1_148 = arith.constant 1 : index
    %c0_149 = arith.constant 0 : index
    %147 = vector.load %arg12[%c1_147, %c1_148, %c0_149] : memref<9x9x2xf32, #tpu.memory_space<vmem>>, vector<7x7x2xf32>
    tpu.vector_store %arg12[%c1_147, %c1_148, %c0_149], %136 {strides = array<i32>} : memref<9x9x2xf32, #tpu.memory_space<vmem>>, vector<7x7x2xf32>,
    %c0_i32_150 = arith.constant 0 : i32
    %148 = arith.cmpi sgt, %arg1, %c0_i32_150 : i32
    %149 = arith.extui %148 : i1 to i32
    %c0_i32_151 = arith.constant 0 : i32
    %150 = arith.cmpi ne, %149, %c0_i32_151 : i32
    scf.if %150 {
      %c0_192 = arith.constant 0 : index
      %c0_193 = arith.constant 0 : index
      %c0_194 = arith.constant 0 : index
      %c12_195 = arith.constant 12 : index
      %192 = vector.load %arg3[%c0_192, %c0_193, %c0_194, %c12_195] : memref<1x1x8x16xf32, #tpu.memory_space<vmem>>, vector<1x1x8x2xf32>
      %193 = vector.shape_cast %192 : vector<1x1x8x2xf32> to vector<1x8x2xf32>
      %c0_196 = arith.constant 0 : index
      %c0_197 = arith.constant 0 : index
      %c0_198 = arith.constant 0 : index
      %c14_199 = arith.constant 14 : index
      %194 = vector.load %arg3[%c0_196, %c0_197, %c0_198, %c14_199] : memref<1x1x8x16xf32, #tpu.memory_space<vmem>>, vector<1x1x8x2xf32>
      %195 = vector.shape_cast %194 : vector<1x1x8x2xf32> to vector<1x8x2xf32>
      %196 = arith.addf %193, %195 : vector<1x8x2xf32>
      %197 = vector.extract_strided_slice %98 {offsets = [0, 0, 0], sizes = [1, 8, 2], strides = [1, 1, 1]} : vector<8x8x2xf32> to vector<1x8x2xf32>
      %198 = arith.addf %196, %197 : vector<1x8x2xf32>
      %199 = vector.extract_strided_slice %100 {offsets = [0, 0, 0], sizes = [1, 8, 2], strides = [1, 1, 1]} : vector<8x8x2xf32> to vector<1x8x2xf32>
      %200 = arith.addf %198, %199 : vector<1x8x2xf32>
      %cst_200 = arith.constant 2.500000e-01 : f32
      %201 = vector.broadcast %cst_200 : f32 to vector<1x8x2xf32>
      %202 = arith.mulf %201, %200 : vector<1x8x2xf32>
      %c0_201 = arith.constant 0 : index
      %c0_202 = arith.constant 0 : index
      %c0_203 = arith.constant 0 : index
      %203 = vector.load %arg11[%c0_201, %c0_202, %c0_203] : memref<9x8x2xf32, #tpu.memory_space<vmem>>, vector<1x8x2xf32>
      tpu.vector_store %arg11[%c0_201, %c0_202, %c0_203], %202 {strides = array<i32>} : memref<9x8x2xf32, #tpu.memory_space<vmem>>, vector<1x8x2xf32>,
      %204 = vector.extract_strided_slice %195 {offsets = [0, 0, 0], sizes = [1, 7, 2], strides = [1, 1, 1]} : vector<1x8x2xf32> to vector<1x7x2xf32>
      %205 = vector.extract_strided_slice %193 {offsets = [0, 1, 0], sizes = [1, 7, 2], strides = [1, 1, 1]} : vector<1x8x2xf32> to vector<1x7x2xf32>
      %206 = arith.addf %204, %205 : vector<1x7x2xf32>
      %207 = vector.extract_strided_slice %100 {offsets = [0, 0, 0], sizes = [1, 7, 2], strides = [1, 1, 1]} : vector<8x8x2xf32> to vector<1x7x2xf32>
      %208 = arith.addf %206, %207 : vector<1x7x2xf32>
      %209 = vector.extract_strided_slice %98 {offsets = [0, 1, 0], sizes = [1, 7, 2], strides = [1, 1, 1]} : vector<8x8x2xf32> to vector<1x7x2xf32>
      %210 = arith.addf %208, %209 : vector<1x7x2xf32>
      %cst_204 = arith.constant 2.500000e-01 : f32
      %211 = vector.broadcast %cst_204 : f32 to vector<1x7x2xf32>
      %212 = arith.mulf %211, %210 : vector<1x7x2xf32>
      %c0_205 = arith.constant 0 : index
      %c1_206 = arith.constant 1 : index
      %c0_207 = arith.constant 0 : index
      %213 = vector.load %arg12[%c0_205, %c1_206, %c0_207] : memref<9x9x2xf32, #tpu.memory_space<vmem>>, vector<1x7x2xf32>
      tpu.vector_store %arg12[%c0_205, %c1_206, %c0_207], %212 {strides = array<i32>} : memref<9x9x2xf32, #tpu.memory_space<vmem>>, vector<1x7x2xf32>,
    } else {
    }
    %c0_i32_152 = arith.constant 0 : i32
    %151 = arith.cmpi eq, %arg1, %c0_i32_152 : i32
    %152 = arith.extui %151 : i1 to i32
    %c0_i32_153 = arith.constant 0 : i32
    %153 = arith.cmpi ne, %152, %c0_i32_153 : i32
    scf.if %153 {
      %cst_192 = arith.constant 0xFF800000 : f32
      %192 = vector.broadcast %cst_192 : f32 to vector<1x8x2xf32>
      %c0_193 = arith.constant 0 : index
      %c0_194 = arith.constant 0 : index
      %c0_195 = arith.constant 0 : index
      %193 = vector.load %arg11[%c0_193, %c0_194, %c0_195] : memref<9x8x2xf32, #tpu.memory_space<vmem>>, vector<1x8x2xf32>
      tpu.vector_store %arg11[%c0_193, %c0_194, %c0_195], %192 {strides = array<i32>} : memref<9x8x2xf32, #tpu.memory_space<vmem>>, vector<1x8x2xf32>,
      %cst_196 = arith.constant 0xFF800000 : f32
      %194 = vector.broadcast %cst_196 : f32 to vector<1x7x2xf32>
      %c0_197 = arith.constant 0 : index
      %c1_198 = arith.constant 1 : index
      %c0_199 = arith.constant 0 : index
      %195 = vector.load %arg12[%c0_197, %c1_198, %c0_199] : memref<9x9x2xf32, #tpu.memory_space<vmem>>, vector<1x7x2xf32>
      tpu.vector_store %arg12[%c0_197, %c1_198, %c0_199], %194 {strides = array<i32>} : memref<9x9x2xf32, #tpu.memory_space<vmem>>, vector<1x7x2xf32>,
    } else {
    }
    %c0_i32_154 = arith.constant 0 : i32
    %154 = arith.cmpi slt, %arg1, %c0_i32_154 : i32
    %155 = arith.extui %154 : i1 to i32
    %c0_i32_155 = arith.constant 0 : i32
    %156 = arith.cmpi ne, %155, %c0_i32_155 : i32
    scf.if %156 {
      %c0_192 = arith.constant 0 : index
      %c0_193 = arith.constant 0 : index
      %c0_194 = arith.constant 0 : index
      %c8_195 = arith.constant 8 : index
      %192 = vector.load %arg4[%c0_192, %c0_193, %c0_194, %c8_195] : memref<1x1x8x16xf32, #tpu.memory_space<vmem>>, vector<1x1x8x2xf32>
      %193 = vector.shape_cast %192 : vector<1x1x8x2xf32> to vector<1x8x2xf32>
      %c0_196 = arith.constant 0 : index
      %c0_197 = arith.constant 0 : index
      %c0_198 = arith.constant 0 : index
      %c10_199 = arith.constant 10 : index
      %194 = vector.load %arg4[%c0_196, %c0_197, %c0_198, %c10_199] : memref<1x1x8x16xf32, #tpu.memory_space<vmem>>, vector<1x1x8x2xf32>
      %195 = vector.shape_cast %194 : vector<1x1x8x2xf32> to vector<1x8x2xf32>
      %196 = vector.extract_strided_slice %102 {offsets = [7, 0, 0], sizes = [1, 8, 2], strides = [1, 1, 1]} : vector<8x8x2xf32> to vector<1x8x2xf32>
      %197 = vector.extract_strided_slice %104 {offsets = [7, 0, 0], sizes = [1, 8, 2], strides = [1, 1, 1]} : vector<8x8x2xf32> to vector<1x8x2xf32>
      %198 = arith.addf %196, %197 : vector<1x8x2xf32>
      %199 = arith.addf %198, %193 : vector<1x8x2xf32>
      %200 = arith.addf %199, %195 : vector<1x8x2xf32>
      %cst_200 = arith.constant 2.500000e-01 : f32
      %201 = vector.broadcast %cst_200 : f32 to vector<1x8x2xf32>
      %202 = arith.mulf %201, %200 : vector<1x8x2xf32>
      %c8_201 = arith.constant 8 : index
      %c0_202 = arith.constant 0 : index
      %c0_203 = arith.constant 0 : index
      %203 = vector.load %arg11[%c8_201, %c0_202, %c0_203] : memref<9x8x2xf32, #tpu.memory_space<vmem>>, vector<1x8x2xf32>
      tpu.vector_store %arg11[%c8_201, %c0_202, %c0_203], %202 {strides = array<i32>} : memref<9x8x2xf32, #tpu.memory_space<vmem>>, vector<1x8x2xf32>,
      %204 = vector.extract_strided_slice %104 {offsets = [7, 0, 0], sizes = [1, 7, 2], strides = [1, 1, 1]} : vector<8x8x2xf32> to vector<1x7x2xf32>
      %205 = vector.extract_strided_slice %102 {offsets = [7, 1, 0], sizes = [1, 7, 2], strides = [1, 1, 1]} : vector<8x8x2xf32> to vector<1x7x2xf32>
      %206 = arith.addf %204, %205 : vector<1x7x2xf32>
      %207 = vector.extract_strided_slice %195 {offsets = [0, 0, 0], sizes = [1, 7, 2], strides = [1, 1, 1]} : vector<1x8x2xf32> to vector<1x7x2xf32>
      %208 = arith.addf %206, %207 : vector<1x7x2xf32>
      %209 = vector.extract_strided_slice %193 {offsets = [0, 1, 0], sizes = [1, 7, 2], strides = [1, 1, 1]} : vector<1x8x2xf32> to vector<1x7x2xf32>
      %210 = arith.addf %208, %209 : vector<1x7x2xf32>
      %cst_204 = arith.constant 2.500000e-01 : f32
      %211 = vector.broadcast %cst_204 : f32 to vector<1x7x2xf32>
      %212 = arith.mulf %211, %210 : vector<1x7x2xf32>
      %c8_205 = arith.constant 8 : index
      %c1_206 = arith.constant 1 : index
      %c0_207 = arith.constant 0 : index
      %213 = vector.load %arg12[%c8_205, %c1_206, %c0_207] : memref<9x9x2xf32, #tpu.memory_space<vmem>>, vector<1x7x2xf32>
      tpu.vector_store %arg12[%c8_205, %c1_206, %c0_207], %212 {strides = array<i32>} : memref<9x9x2xf32, #tpu.memory_space<vmem>>, vector<1x7x2xf32>,
    } else {
    }
    %c0_i32_156 = arith.constant 0 : i32
    %157 = arith.cmpi eq, %arg1, %c0_i32_156 : i32
    %158 = arith.extui %157 : i1 to i32
    %c0_i32_157 = arith.constant 0 : i32
    %159 = arith.cmpi ne, %158, %c0_i32_157 : i32
    scf.if %159 {
      %cst_192 = arith.constant 0xFF800000 : f32
      %192 = vector.broadcast %cst_192 : f32 to vector<1x8x2xf32>
      %c8_193 = arith.constant 8 : index
      %c0_194 = arith.constant 0 : index
      %c0_195 = arith.constant 0 : index
      %193 = vector.load %arg11[%c8_193, %c0_194, %c0_195] : memref<9x8x2xf32, #tpu.memory_space<vmem>>, vector<1x8x2xf32>
      tpu.vector_store %arg11[%c8_193, %c0_194, %c0_195], %192 {strides = array<i32>} : memref<9x8x2xf32, #tpu.memory_space<vmem>>, vector<1x8x2xf32>,
      %cst_196 = arith.constant 0xFF800000 : f32
      %194 = vector.broadcast %cst_196 : f32 to vector<1x7x2xf32>
      %c8_197 = arith.constant 8 : index
      %c1_198 = arith.constant 1 : index
      %c0_199 = arith.constant 0 : index
      %195 = vector.load %arg12[%c8_197, %c1_198, %c0_199] : memref<9x9x2xf32, #tpu.memory_space<vmem>>, vector<1x7x2xf32>
      tpu.vector_store %arg12[%c8_197, %c1_198, %c0_199], %194 {strides = array<i32>} : memref<9x9x2xf32, #tpu.memory_space<vmem>>, vector<1x7x2xf32>,
    } else {
    }
    %c0_158 = arith.constant 0 : index
    %c0_159 = arith.constant 0 : index
    %c0_160 = arith.constant 0 : index
    %160 = vector.load %arg12[%c0_158, %c0_159, %c0_160] : memref<9x9x2xf32, #tpu.memory_space<vmem>>, vector<8x8x2xf32>
    %c0_161 = arith.constant 0 : index
    %c0_162 = arith.constant 0 : index
    %c0_163 = arith.constant 0 : index
    %161 = vector.load %arg11[%c0_161, %c0_162, %c0_163] : memref<9x8x2xf32, #tpu.memory_space<vmem>>, vector<8x8x2xf32>
    %162 = arith.maximumf %160, %161 : vector<8x8x2xf32>
    %c0_164 = arith.constant 0 : index
    %c1_165 = arith.constant 1 : index
    %c0_166 = arith.constant 0 : index
    %163 = vector.load %arg12[%c0_164, %c1_165, %c0_166] : memref<9x9x2xf32, #tpu.memory_space<vmem>>, vector<8x8x2xf32>
    %164 = arith.maximumf %162, %163 : vector<8x8x2xf32>
    %c0_167 = arith.constant 0 : index
    %c0_168 = arith.constant 0 : index
    %c0_169 = arith.constant 0 : index
    %165 = vector.load %arg10[%c0_167, %c0_168, %c0_169] : memref<8x9x2xf32, #tpu.memory_space<vmem>>, vector<8x8x2xf32>
    %166 = arith.maximumf %164, %165 : vector<8x8x2xf32>
    %167 = arith.maximumf %166, %109 : vector<8x8x2xf32>
    %c0_170 = arith.constant 0 : index
    %c1_171 = arith.constant 1 : index
    %c0_172 = arith.constant 0 : index
    %168 = vector.load %arg10[%c0_170, %c1_171, %c0_172] : memref<8x9x2xf32, #tpu.memory_space<vmem>>, vector<8x8x2xf32>
    %169 = arith.maximumf %167, %168 : vector<8x8x2xf32>
    %c1_173 = arith.constant 1 : index
    %c0_174 = arith.constant 0 : index
    %c0_175 = arith.constant 0 : index
    %170 = vector.load %arg12[%c1_173, %c0_174, %c0_175] : memref<9x9x2xf32, #tpu.memory_space<vmem>>, vector<8x8x2xf32>
    %171 = arith.maximumf %169, %170 : vector<8x8x2xf32>
    %c1_176 = arith.constant 1 : index
    %c0_177 = arith.constant 0 : index
    %c0_178 = arith.constant 0 : index
    %172 = vector.load %arg11[%c1_176, %c0_177, %c0_178] : memref<9x8x2xf32, #tpu.memory_space<vmem>>, vector<8x8x2xf32>
    %173 = arith.maximumf %171, %172 : vector<8x8x2xf32>
    %c1_179 = arith.constant 1 : index
    %c1_180 = arith.constant 1 : index
    %c0_181 = arith.constant 0 : index
    %174 = vector.load %arg12[%c1_179, %c1_180, %c0_181] : memref<9x9x2xf32, #tpu.memory_space<vmem>>, vector<8x8x2xf32>
    %175 = arith.maximumf %173, %174 : vector<8x8x2xf32>
    %176 = vector.shape_cast %175 : vector<8x8x2xf32> to vector<64x2xf32>
    %c0_182 = arith.constant 0 : index
    %c0_183 = arith.constant 0 : index
    %177 = vector.load %arg7[%c0_182, %c0_183] : memref<2x4xf32, #tpu.memory_space<vmem>>, vector<2x4xf32>
    %cst_184 = arith.constant dense<0.000000e+00> : vector<64x4xf32>
    %178 = tpu.matmul %176, %177, %cst_184 {dimension_numbers = #tpu.dot_dimension_numbers<[1], [0], [0], [1], [0, 0, 1, 1], [], []>} : vector<64x2xf32>, vector<2x4xf32>, vector<64x4xf32> -> vector<64x4xf32>
    %c0_185 = arith.constant 0 : index
    %c0_186 = arith.constant 0 : index
    %179 = vector.load %arg8[%c0_185, %c0_186] : memref<1x4xf32, #tpu.memory_space<vmem>>, vector<1x4xf32>
    %180 = vector.broadcast %179 : vector<1x4xf32> to vector<64x4xf32>
    %181 = arith.addf %178, %180 : vector<64x4xf32>
    %182 = arith.negf %181 : vector<64x4xf32>
    %183 = math.exp %182 : vector<64x4xf32>
    %cst_187 = arith.constant 1.000000e+00 : f32
    %184 = vector.broadcast %cst_187 : f32 to vector<64x4xf32>
    %185 = arith.addf %184, %183 : vector<64x4xf32>
    %186 = arith.divf %184, %185 : vector<64x4xf32>
    %187 = arith.mulf %181, %186 : vector<64x4xf32>
    %188 = vector.shape_cast %187 : vector<64x4xf32> to vector<8x8x4xf32>
    %c0_188 = arith.constant 0 : index
    %c0_189 = arith.constant 0 : index
    %c0_190 = arith.constant 0 : index
    %c4_191 = arith.constant 4 : index
    %189 = vector.load %arg9[%c0_188, %c0_189, %c0_190, %c4_191] : memref<1x8x8x8xf32, #tpu.memory_space<vmem>>, vector<1x8x8x4xf32>
    %190 = vector.shape_cast %189 : vector<1x8x8x4xf32> to vector<8x8x4xf32>
    %191 = vector.shape_cast %188 : vector<8x8x4xf32> to vector<1x8x8x4xf32>
    tpu.vector_store %arg9[%c0_188, %c0_189, %c0_190, %c4_191], %191 {strides = array<i32>} : memref<1x8x8x8xf32, #tpu.memory_space<vmem>>, vector<1x8x8x4xf32>,
    return
  }
  func.func @transform_0(%arg0: i32, %arg1: i32) -> (i32, i32, i32, i32) {
    %c0_i32 = arith.constant 0 : i32
    %c0_i32_0 = arith.constant 0 : i32
    %c0_i32_1 = arith.constant 0 : i32
    return %arg0, %arg1, %c0_i32, %c0_i32_0 : i32, i32, i32, i32
  }
  func.func @transform_1(%arg0: i32, %arg1: i32) -> (i32, i32, i32, i32) {
    %c8_i32 = arith.constant 8 : i32
    %0 = arith.muli %arg1, %c8_i32 : i32
    %c1_i32 = arith.constant 1 : i32
    %1 = arith.subi %0, %c1_i32 : i32
    %c0_i32 = arith.constant 0 : i32
    %2 = arith.maxsi %1, %c0_i32 : i32
    %c0_i32_0 = arith.constant 0 : i32
    %c0_i32_1 = arith.constant 0 : i32
    %c0_i32_2 = arith.constant 0 : i32
    return %arg0, %2, %c0_i32_0, %c0_i32_1 : i32, i32, i32, i32
  }
  func.func @transform_2(%arg0: i32, %arg1: i32) -> (i32, i32, i32, i32) {
    %c1_i32 = arith.constant 1 : i32
    %0 = arith.addi %arg1, %c1_i32 : i32
    %c8_i32 = arith.constant 8 : i32
    %1 = arith.muli %0, %c8_i32 : i32
    %c7_i32 = arith.constant 7 : i32
    %2 = arith.minsi %1, %c7_i32 : i32
    %c0_i32 = arith.constant 0 : i32
    %c0_i32_0 = arith.constant 0 : i32
    %c0_i32_1 = arith.constant 0 : i32
    return %arg0, %2, %c0_i32, %c0_i32_0 : i32, i32, i32, i32
  }
  func.func @transform_3(%arg0: i32, %arg1: i32) -> (i32, i32) {
    %c0_i32 = arith.constant 0 : i32
    %c0_i32_0 = arith.constant 0 : i32
    %c0_i32_1 = arith.constant 0 : i32
    return %c0_i32, %c0_i32_0 : i32, i32
  }
  func.func @transform_4(%arg0: i32, %arg1: i32) -> (i32, i32) {
    %c0_i32 = arith.constant 0 : i32
    %c0_i32_0 = arith.constant 0 : i32
    %c0_i32_1 = arith.constant 0 : i32
    return %c0_i32, %c0_i32_0 : i32, i32
  }
  func.func @transform_5(%arg0: i32, %arg1: i32) -> (i32, i32) {
    %c0_i32 = arith.constant 0 : i32
    %c0_i32_0 = arith.constant 0 : i32
    %c0_i32_1 = arith.constant 0 : i32
    return %c0_i32, %c0_i32_0 : i32, i32
  }
  func.func @transform_6(%arg0: i32, %arg1: i32) -> (i32, i32) {
    %c0_i32 = arith.constant 0 : i32
    %c0_i32_0 = arith.constant 0 : i32
    %c0_i32_1 = arith.constant 0 : i32
    return %c0_i32, %c0_i32_0 : i32, i32
  }
  func.func @transform_7(%arg0: i32, %arg1: i32) -> (i32, i32, i32, i32) {
    %c0_i32 = arith.constant 0 : i32
    %c0_i32_0 = arith.constant 0 : i32
    %c0_i32_1 = arith.constant 0 : i32
    return %arg0, %arg1, %c0_i32, %c0_i32_0 : i32, i32, i32, i32
  }
}

</mosaic_0001>

<bundles_post_ra>
// kernel: tpu_custom_call.1
= control target key start
LH: loop header
LB: loop body
LE: loop exit
PB: predicated region body
PF: predicated region fallthrough
CT: control target
= control target key end

     0   :  { %s4618_s0 = inlined_call_operand.hbm [shape: f32[2,8,8,16], index: 0, kind: input, shape index: {}]   ;;  %s4619_s1 = inlined_call_operand.hbm [shape: f32[2,8,8,16], index: 1, kind: input, shape index: {}]   ;;  %s4620_s2 = inlined_call_operand.hbm [shape: f32[2,8,8,16], index: 2, kind: input, shape index: {}]   ;;  %s4621_s3 = inlined_call_operand.vmem [shape: f32[18,4], index: 3, kind: input, shape index: {}]   ;;  %s4622_s4 = inlined_call_operand.vmem [shape: f32[1,4], index: 4, kind: input, shape index: {}]   ;;  %s4623_s5 = inlined_call_operand.vmem [shape: f32[2,4], index: 5, kind: input, shape index: {}]   ;;  %s4624_s6 = inlined_call_operand.vmem [shape: f32[1,4], index: 6, kind: input, shape index: {}]   ;;  %s4625_s7 = inlined_call_operand.hbm [shape: f32[2,8,8,8], index: 7, kind: output, shape index: {}]  }
   0x1   :  { %4634 = sst [smem:[#allocation23_spill]] %s4618_s0 }
   0x2   :  { %4635 = sst [smem:[#allocation24_spill]] %s4619_s1 }
   0x3   :  { %4636 = sst [smem:[#allocation25_spill]] %s4625_s7 }
   0x4   :  { %12 = vsyncpa [#allocation7], 0 }
   0x5   :  { %14 = vsyncpa [#allocation7 + $0x1], 0 }
   0x6   :  { %15 = vsyncpa [#allocation10], 0 }
   0x7   :  { %17 = vsyncpa [#allocation10 + $0x1], 0 }
   0x8   :  { %18 = vsyncpa [#allocation8], 0 }
   0x9   :  { %20 = vsyncpa [#allocation8 + $0x1], 0  ;;  %s3243_s24 = smov 0   ;;  %s3245_s25 = smov 0  }
   0xa   :  { %s3247_s26 = smov 0   ;;  %s3249_s27 = smov 0  }
   0xb   :  { %s3251_s28 = smov 0   ;;  %s3253_s29 = smov 0  }
   0xc LB: > { %4637 = sst [smem:[#allocation16_spill]] %s3161_s24  ;;  %s3274_s30 = sadd.s32 4294967295, %s3181_s29   ;;  %s3181_s29 = sphi %s3253_s29, %s26_s29   ;;  %s3177_s28 = sphi %s3251_s28, %s4661_s28   ;;  %s3173_s27 = sphi %s3249_s27, %s4660_s27   ;;  %s3169_s26 = sphi %s3247_s26, %s4659_s26   ;;  %s3165_s25 = sphi %s3245_s25, %s4663_s25   ;;  %s3161_s24 = sphi %s3243_s24, %s4662_s24  }
   0xd   : > { %4638 = sst [smem:[#allocation17_spill]] %s3169_s26  ;;  %s2781_s8 = sadd.s32 4294967294, %s3181_s29  }
   0xe   : > { %4639 = sst [smem:[#allocation18_spill]] %s3177_s28  ;;  %s38_s9 = sadd.s32 1, %s3177_s28 }
   0xf   : > { %4640 = sst [smem:[#allocation19_spill]] %s3181_s29  ;;  %s47_s10 = sadd.s32 1, %s3169_s26 }
  0x10   : > { %p40_p0 = scmp.ge.s32.totalorder %s38_s9, 2  ;;  %p54_p1 = scmp.ne.s32.totalorder %s3169_s26, %s3165_s25 }
  0x11   : > { %p55_p2 = scmp.eq.s32.totalorder %s3181_s29, 0  ;;  %p60_p3 = scmp.ne.s32.totalorder %s3165_s25, %s3161_s24 }
  0x12   : > { %s4665_s9 = smov (%p40_p0, %s38_s9), 0  ;;  %p61_p5 = scmp.eq.s32.totalorder %s3274_s30, 0 }
  0x13   : > { %4641 = sst [smem:[#allocation20_spill]] %s4665_s9  ;;  %p3286_p4 = por %p55_p2, %p54_p1 }
  0x14   : > { %s42_s12 = ssub.s32 %s3177_s28, %s4665_s9  ;;  %p242_p6 = scmp.eq.s32.totalorder %s3274_s30, 1 }
  0x15   : > { %p45_p7 = scmp.eq.s32.totalorder %s42_s12, 0  ;;  %p3294_p8 = por %p61_p5, %p60_p3 }
  0x16   : > { %p3298_p9 = por %p242_p6, %p54_p1  ;;  %p248_p10 = scmp.eq.s32.totalorder %s2781_s8, 1 }
  0x17   : > { %s3303_s15 = scalar_select %p45_p7, %s3169_s26, %s47_s10  }
  0x18   : > { %p3305_p11 = por %p248_p10, %p60_p3  ;;  %p2783_p12 = scmp.ge.s32.totalorder %s3181_s29, 2 }
  0x19   : > { %4645 = sst [smem:[#allocation21_spill]] %s3303_s15  ;;  %p2869_p13 = scmp.lt.s32.totalorder %s3181_s29, 2 }
  0x1a   : > { %s4646_s16 = scalar_select %p3305_p11, 1, 0 }
  0x1b   : > { %s3312_s17 = sand.u32 1, %s3169_s26   ;;  %s3315_s18 = sshll.u32 %s3177_s28, 6 }
  0x1c   : > { %4647 = sst [smem:[#allocation22_spill]] %s4646_s16  ;;  %s304_s19 = sand.u32 1, %s3181_s29  }
  0x1d   : > { %s4648_s0 = sld [smem:[#allocation23_spill]]  ;;  %p3324_p0 = pnand %p2869_p13, %p3286_p4 }
  0x1e   : > { %s2787_s8 = sshll.u32 %s3312_s17, 3  ;;  %s4650_s1 = sld [smem:[#allocation24_spill]] }
  0x1f   : > { %s308_s28 = scalar_lea.vmem [#allocation9], %s2787_s8  ;;  %s305_s20 = scalar_lea.sflag [#allocation10], %s304_s19 }
  0x20   : > { %s322_s15 = sshll.u32 %s308_s28, 4  ;;  %p2793_p1 = scmp.ge.s32.totalorder %s3181_s29, 1  ;;  %s323_s15 = int_to_ptr.vmem [resolvable:$true] %s322_s15 }
  0x21   : > { %p352_p2 = scmp.lt.s32.totalorder %s3181_s29, 3  ;;  %s2784_s21 = sshll.u32 %s3312_s17, 6 }
  0x22   : > { %s284_s12 = scalar_lea.vmem [#allocation6], %s2784_s21  ;;  %s2840_s19 = sadd.s32 56, %s3315_s18 }
  0x23   : > { %s291_s22 = scalar_lea.hbm %s4648_s0, %s3315_s18  ;;  %p3337_p3 = pnand %p2793_p1, %p352_p2 }
  0x24   : > { %s318_s9 = scalar_lea.hbm %s4650_s1, %s3315_s18  ;;  %s292_s10 = sshll.u32 %s291_s22, 4  ;;  %s293_s10 = int_to_ptr.hbm [resolvable:$true] %s292_s10 }
  0x25   : > { %s320_s26 = sshll.u32 %s318_s9, 4  ;;  %s294_s28 = sshll.u32 %s284_s12, 4  ;;  %s321_s26 = int_to_ptr.hbm [resolvable:$true] %s320_s26  ;;  %s295_s28 = int_to_ptr.vmem [resolvable:$true] %s294_s28 }
  0x26   : > { %2861 = dma.hbm_to_vmem [thread:$0]  (!%p3324_p0), %s321_s26, 128, %s323_s15, %s305_s20  }
  0x27   : > { %s281_s9 = scalar_lea.sflag [#allocation7], %s3312_s17  ;;  %s3183_s0 = smov 128  }
  0x28   : > { %s3184_s1 = smov 8   ;;  %s333_s26 = scalar_lea.vmem [#allocation11], %s2787_s8 }
  0x29   : > { %2858 = dma.hbm_to_vmem [thread:$0]  (!%p3324_p0), %s293_s10, 1024, %s295_s28, %s281_s9, %s3183_s0, %s3183_s0, %s3184_s1  }
  0x2a   : > { %s347_s15 = sshll.u32 %s333_s26, 4  ;;  %s343_s24 = scalar_lea.hbm %s4620_s2, %s2840_s19  ;;  %s348_s15 = int_to_ptr.vmem [resolvable:$true] %s347_s15 }
  0x2b   : > { %s345_s7 = sshll.u32 %s343_s24, 4  ;;  %356 = sbr.rel (%p3337_p3) target bundleno = 1220 (0x4c4), region = 48  ;;  %s346_s7 = int_to_ptr.hbm [resolvable:$true] %s345_s7 }
  0x2c   : > { %2864 = dma.hbm_to_vmem [thread:$0]  (!%p3324_p0), %s346_s7, 128, %s348_s15, %s305_s20  }
  0x2d   : > { %s3354_s17 = sand.u32 (!%p3337_p3), 1, %s3165_s25  }
  0x2e   : > { %s2794_s0 = sshll.u32 (!%p3337_p3), %s3354_s17, 6  ;;  %s359_s1 = scalar_lea.sflag (!%p3337_p3), [#allocation7], %s3354_s17 }
  0x2f   : > { %s3360_s29 = scalar_lea.vmem (!%p3337_p3), [#allocation6], %s2794_s0 }
  0x30   : > { %3148 = dma.done.wait (%p3294_p8), %s359_s1, 1024  }
  0x31   : > { %3150 = vsyncadd (%p3294_p8), %s359_s1, 4294966272  ;;  %s368_s7 = sand.u32 1, %s3274_s30  }
  0x32   : > { %s369_s24 = scalar_lea.sflag [#allocation10], %s368_s7 }
  0x33   : > { %3152 = dma.done.wait (%p3294_p8), %s369_s24, 256  }
  0x34   : > { %3154 = vsyncadd (%p3294_p8), %s369_s24, 4294967040  ;;  %v3372_v0 = vld [vmem:[%s3360_s29 + $0x20] sm:$0xff]  ;;  %v3375_v1 = vld [vmem:[%s3360_s29 + $0x10] sm:$0xff]  ;;  %s3185_s30 = smov 126   ;;  %s3186_s13 = smov 124   ;;  %vm803_vm0 = vcmask 14336  }
  0x35   : > { %v3378_v2 = vld [vmem:[%s3360_s29] sm:$0xff]  ;;  %458 = vrot.lane.b32.xlu2 %v3372_v0, %s3185_s30  ;;  %454 = vrot.lane.b32.xlu1 %v3375_v1, %s3185_s30  ;;  %v3387_v3 = vld [vmem:[%s3360_s29 + $0x28] sm:$0xff]  ;;  %s3187_s16 = smov 122   ;;  %v564_v9 = vrot.slane %v3375_v1, 1  ;;  %s3188_s18 = smov 2   ;;  %v566_v11 = vrot.slane %v3372_v0, 1 }
  0x36   : > { %450 = vrot.lane.b32.xlu0 %v3378_v2, %s3185_s30  ;;  %v3390_v4 = vld [vmem:[%s3360_s29 + $0x18] sm:$0xff]  ;;  %v3393_v5 = vld [vmem:[%s3360_s29 + $0x8] sm:$0xff]  ;;  %v3405_v7 = vld [vmem:[%s3360_s29 + $0x30] sm:$0xff]  ;;  %v562_v10 = vrot.slane %v3378_v2, 1  ;;  %v567_v12 = vrot.slane %v3387_v3, 1  ;;  %s3189_s22 = smov 4  }
  0x37   : > { %v3402_v6 = vld [vmem:[%s3360_s29 + $0x38] sm:$0xff]  ;;  %v563_v8 = vrot.slane %v3393_v5, 1  ;;  %v565_v13 = vrot.slane %v3390_v4, 1  ;;  %v568_v15 = vrot.slane %v3405_v7, 1  ;;  %s3190_s23 = smov 6   ;;  %vm754_vm1 = vcmask 8192  }
  0x38   : > { %v569_v14 = vrot.slane %v3402_v6, 1  ;;  %vm841_vm2 = vcmask 15360   ;;  %vm1047_vm3 = vcmask 31760   ;;  %s3193_s8 = smov 8   ;;  %s3194_s20 = smov 10   ;;  %vm1096_vm4 = vcmask 48160  }
  0x39   : > { %s3195_s11 = smov 12   ;;  %s3196_s21 = smov 14   ;;  %vm1145_vm5 = vcmask 64560   ;;  %vm1186_vm6 = vcmask 80960   ;;  %vm1235_vm7 = vcmask 97360   ;;  %vm1284_vm8 = vcmask 113760  }
  0x3a   : > { %vm1333_vm9 = vcmask 130160   ;;  %s3197_s10 = smov 118   ;;  %s3198_s12 = smov 116   ;;  %vm1431_vm10 = vcmask 1041408   ;;  %vm1382_vm11 = vcmask 146560   ;;  %vm1406_vm12 = vcmask 146432  }
  0x3b   : > { %s3199_s28 = smov 114   ;;  %s3200_s9 = smov 120  }
  0x3c   : > { %s3201_s19 = smov 16  }
  0x3d   : > { %460 = vrot.lane.b32.xlu2 %v3387_v3, %s3185_s30  ;;  %456 = vrot.lane.b32.xlu1 %v3390_v4, %s3185_s30 }
  0x3e   : > { %452 = vrot.lane.b32.xlu0 %v3393_v5, %s3185_s30 }
  0x45   : > { %464 = vrot.lane.b32.xlu1 %v3402_v6, %s3185_s30  ;;  %482 = vrot.lane.b32.xlu2 %v3378_v2, %s3186_s13 }
  0x46   : > { %462 = vrot.lane.b32.xlu0 %v3405_v7, %s3185_s30 }
  0x4d   : > { %486 = vrot.lane.b32.xlu1 %v3375_v1, %s3186_s13  ;;  %488 = vrot.lane.b32.xlu2 %v3390_v4, %s3186_s13 }
  0x4e   : > { %484 = vrot.lane.b32.xlu0 %v3393_v5, %s3186_s13 }
  0x55   : > { %492 = vrot.lane.b32.xlu1 %v3387_v3, %s3186_s13  ;;  %494 = vrot.lane.b32.xlu2 %v3405_v7, %s3186_s13 }
  0x56   : > { %490 = vrot.lane.b32.xlu0 %v3372_v0, %s3186_s13 }
  0x5d   : > { %514 = vrot.lane.b32.xlu1 %v3378_v2, %s3187_s16  ;;  %516 = vrot.lane.b32.xlu2 %v3393_v5, %s3187_s16 }
  0x5e   : > { %496 = vrot.lane.b32.xlu0 %v3402_v6, %s3186_s13 }
  0x65   : > { %520 = vrot.lane.b32.xlu1 %v3390_v4, %s3187_s16  ;;  %522 = vrot.lane.b32.xlu2 %v3372_v0, %s3187_s16 }
  0x66   : > { %518 = vrot.lane.b32.xlu0 %v3375_v1, %s3187_s16 }
  0x6d   : > { %526 = vrot.lane.b32.xlu1 %v3405_v7, %s3187_s16  ;;  %528 = vrot.lane.b32.xlu2 %v3402_v6, %s3187_s16 }
  0x6e   : > { %524 = vrot.lane.b32.xlu0 %v3387_v3, %s3187_s16 }
  0x75   : > { %572 = vrot.lane.b32.xlu1 %v563_v8, %s3188_s18  ;;  %574 = vrot.lane.b32.xlu2 %v564_v9, %s3188_s18 }
  0x76   : > { %570 = vrot.lane.b32.xlu0 %v562_v10, %s3188_s18 }
  0x7d   : > { %578 = vrot.lane.b32.xlu1 %v566_v11, %s3188_s18  ;;  %580 = vrot.lane.b32.xlu2 %v567_v12, %s3188_s18 }
  0x7e   : > { %576 = vrot.lane.b32.xlu0 %v565_v13, %s3188_s18 }
  0x85   : > { %584 = vrot.lane.b32.xlu1 %v569_v14, %s3188_s18  ;;  %602 = vrot.lane.b32.xlu2 %v562_v10, %s3185_s30 }
  0x86   : > { %582 = vrot.lane.b32.xlu0 %v568_v15, %s3188_s18 }
  0x8d   : > { %606 = vrot.lane.b32.xlu1 %v564_v9, %s3185_s30  ;;  %608 = vrot.lane.b32.xlu2 %v565_v13, %s3185_s30 }
  0x8e   : > { %604 = vrot.lane.b32.xlu0 %v563_v8, %s3185_s30 }
  0x8f   : > { %v3463_v16 = vpop.permute.xlu2 %458 }
  0x95   : > { %612 = vrot.lane.b32.xlu1 %v567_v12, %s3185_s30  ;;  %614 = vrot.lane.b32.xlu2 %v568_v15, %s3185_s30 }
  0x96   : > { %610 = vrot.lane.b32.xlu0 %v566_v11, %s3185_s30 }
  0x97   : > { %v3468_v17 = vpop.permute.xlu2 %460 }
  0x9d   : > { %642 = vrot.lane.b32.xlu1 %v3393_v5, %s3189_s22  ;;  %644 = vrot.lane.b32.xlu2 %v3375_v1, %s3189_s22 }
  0x9e   : > { %616 = vrot.lane.b32.xlu0 %v569_v14, %s3185_s30 }
  0x9f   : > { %v3475_v18 = vpop.permute.xlu2 %482 }
  0xa0   : > { %v554_v43 = vadd.f32 %v3475_v18, %v3378_v2 }
  0xa5   : > { %648 = vrot.lane.b32.xlu1 %v3372_v0, %s3189_s22  ;;  %650 = vrot.lane.b32.xlu2 %v3387_v3, %s3189_s22 }
  0xa6   : > { %646 = vrot.lane.b32.xlu0 %v3390_v4, %s3189_s22 }
  0xa7   : > { %v3483_v19 = vpop.permute.xlu1 %454  ;;  %v3485_v20 = vpop.permute.xlu2 %488 }
  0xa8   : > { %v3487_v21 = vpop.permute.xlu0 %450  ;;  %v557_v50 = vadd.f32 %v3485_v20, %v3390_v4 }
  0xad   : > { %654 = vrot.lane.b32.xlu1 %v3402_v6, %s3189_s22  ;;  %670 = vrot.lane.b32.xlu2 %v3393_v5, %s3188_s18 }
  0xae   : > { %652 = vrot.lane.b32.xlu0 %v3405_v7, %s3189_s22 }
  0xaf   : > { %v3495_v22 = vpop.permute.xlu1 %456  ;;  %v3497_v23 = vpop.permute.xlu2 %494 }
  0xb0   : > { %v3499_v24 = vpop.permute.xlu0 %452  ;;  %v560_v57 = vadd.f32 %v3497_v23, %v3405_v7 }
  0xb5   : > { %674 = vrot.lane.b32.xlu1 %v3390_v4, %s3188_s18  ;;  %676 = vrot.lane.b32.xlu2 %v3372_v0, %s3188_s18 }
  0xb6   : > { %672 = vrot.lane.b32.xlu0 %v3375_v1, %s3188_s18 }
  0xb7   : > { %v3507_v25 = vpop.permute.xlu1 %464  ;;  %v3509_v26 = vpop.permute.xlu2 %516 }
  0xb8   : > { %v3511_v27 = vpop.permute.xlu0 %462 }
  0xbd   : > { %680 = vrot.lane.b32.xlu1 %v3405_v7, %s3188_s18  ;;  %682 = vrot.lane.b32.xlu2 %v3402_v6, %s3188_s18 }
  0xbe   : > { %678 = vrot.lane.b32.xlu0 %v3387_v3, %s3188_s18 }
  0xbf   : > { %v3519_v28 = vpop.permute.xlu1 %486  ;;  %v3521_v29 = vpop.permute.xlu2 %522 }
  0xc0   : > { %v3523_v30 = vpop.permute.xlu0 %484  ;;  %v556_v63 = vadd.f32 %v3519_v28, %v3375_v1 }
  0xc5   : > { %721 = vrot.lane.b32.xlu1 %v564_v9, %s3190_s23  ;;  %723 = vrot.lane.b32.xlu2 %v565_v13, %s3190_s23 }
  0xc6   : > { %719 = vrot.lane.b32.xlu0 %v563_v8, %s3190_s23  ;;  %v555_v8 = vadd.f32 %v3523_v30, %v3393_v5 }
  0xc7   : > { %v3528_v31 = vpop.permute.xlu1 %492  ;;  %v3530_v32 = vpop.permute.xlu2 %528 }
  0xc8   : > { %v3532_v33 = vpop.permute.xlu0 %490 }
  0xcd   : > { %727 = vrot.lane.b32.xlu1 %v567_v12, %s3190_s23  ;;  %729 = vrot.lane.b32.xlu2 %v568_v15, %s3190_s23 }
  0xce   : > { %725 = vrot.lane.b32.xlu0 %v566_v11, %s3190_s23 }
  0xcf   : > { %v3537_v34 = vpop.permute.xlu1 %514  ;;  %v3539_v35 = vpop.permute.xlu2 %574 }
  0xd0   : > { %v3541_v36 = vpop.permute.xlu0 %496  ;;  %v596_v10 = vadd.f32 %v3539_v35, %v556_v63 }
  0xd1   : > { %v561_v63 = vadd.f32 %v3541_v36, %v3402_v6 }
  0xd6   : > { %731 = vrot.lane.b32.xlu0 %v569_v14, %s3190_s23 }
  0xd7   : > { %v3544_v37 = vpop.permute.xlu1 %520  ;;  %v3546_v38 = vpop.permute.xlu2 %580 }
  0xd8   : > { %v3548_v39 = vpop.permute.xlu0 %518 }
  0xdf   : > { %v3550_v40 = vpop.permute.xlu1 %526  ;;  %v603_v41 = vpop.permute.xlu2 %602 }
  0xe0   : > { %v3552_v42 = vpop.permute.xlu0 %524 }
  0xe7   : > { %v3556_v44 = vpop.permute.xlu1 %572  ;;  %v609_v45 = vpop.permute.xlu2 %608 }
  0xe8   : > { %v3558_v46 = vpop.permute.xlu0 %570  ;;  %v595_v11 = vadd.f32 %v3556_v44, %v555_v8  ;;  %v3600_v8 = vadd.f32 %v3487_v21, %v3378_v2 }
  0xe9   : > { %v594_v47 = vadd.f32 %v3558_v46, %v554_v43 }
  0xeb   : > { %v626_v48 = vadd.f32 %v603_v41, %v594_v47  ;;  %v559_v47 = vadd.f32 %v3528_v31, %v3387_v3 }
  0xed   : > { %v634_v49 = vmul.f32 0.25, %v626_v48  ;;  %v558_v48 = vadd.f32 %v3532_v33, %v3372_v0 }
  0xef   : > { %779 = vrot.lane.b32.xlu1 %v634_v49, %s3185_s30  ;;  %v3564_v51 = vpop.permute.xlu1 %578  ;;  %v615_v52 = vpop.permute.xlu2 %614  ;;  %v599_v49 = vadd.f32 %v3546_v38, %v559_v47  ;;  %v3606_v47 = vadd.f32 %v3495_v22, %v3390_v4 }
  0xf0   : > { %v3566_v53 = vpop.permute.xlu0 %576 }
  0xf1   : > { %v597_v54 = vadd.f32 %v3566_v53, %v557_v50  ;;  %v598_v50 = vadd.f32 %v3564_v51, %v558_v48 }
  0xf3   : > { %v629_v55 = vadd.f32 %v609_v45, %v597_v54 }
  0xf5   : > { %v637_v56 = vmul.f32 0.25, %v629_v55 }
  0xf7   : > { %785 = vrot.lane.b32.xlu1 %v637_v56, %s3185_s30  ;;  %v585_v58 = vpop.permute.xlu1 %584  ;;  %v3572_v59 = vpop.permute.xlu2 %644 }
  0xf8   : > { %v3574_v60 = vpop.permute.xlu0 %582 }
  0xf9   : > { %v600_v61 = vadd.f32 %v3574_v60, %v560_v57 }
  0xfb   : > { %v632_v62 = vadd.f32 %v615_v52, %v600_v61 }
  0xfd   : > { %v640_v9 = vmul.f32 0.25, %v632_v62 }
  0xff   : > { %791 = vrot.lane.b32.xlu1 %v640_v9, %s3185_s30  ;;  %v607_v12 = vpop.permute.xlu1 %606  ;;  %v3584_v13 = vpop.permute.xlu2 %650  ;;  %v601_v9 = vadd.f32 %v585_v58, %v561_v63  ;;  %v3622_v63 = vadd.f32 %v3483_v19, %v3375_v1 }
 0x100   : > { %v628_v14 = vadd.f32 %v607_v12, %v596_v10  ;;  %v605_v15 = vpop.permute.xlu0 %604 }
 0x101   : > { %v627_v41 = vadd.f32 %v605_v15, %v595_v11 }
 0x102   : > { %v636_v43 = vmul.f32 0.25, %v628_v14 }
 0x103   : > { %v635_v45 = vmul.f32 0.25, %v627_v41 }
 0x104   : > { %783 = vrot.lane.b32.xlu0 %v636_v43, %s3185_s30 }
 0x105   : > { %781 = vrot.lane.b32.xlu2 %v635_v45, %s3185_s30 }
 0x107   : > { %v613_v52 = vpop.permute.xlu1 %612  ;;  %v671_v54 = vpop.permute.xlu2 %670 }
 0x108   : > { %v631_v55 = vadd.f32 %v613_v52, %v599_v49  ;;  %v611_v56 = vpop.permute.xlu0 %610 }
 0x109   : > { %v630_v57 = vadd.f32 %v611_v56, %v598_v50 }
 0x10a   : > { %v639_v61 = vmul.f32 0.25, %v631_v55 }
 0x10b   : > { %v638_v62 = vmul.f32 0.25, %v630_v57 }
 0x10c   : > { %789 = vrot.lane.b32.xlu0 %v639_v61, %s3185_s30 }
 0x10d   : > { %787 = vrot.lane.b32.xlu2 %v638_v62, %s3185_s30 }
 0x10f   : > { %v643_v10 = vpop.permute.xlu1 %642  ;;  %v677_v11 = vpop.permute.xlu2 %676 }
 0x110   : > { %v663_v12 = vadd.f32 %v643_v10, %v3600_v8  ;;  %v617_v14 = vpop.permute.xlu0 %616 }
 0x111   : > { %v633_v15 = vadd.f32 %v617_v14, %v601_v9 }
 0x112   : > { %v691_v41 = vadd.f32 %v671_v54, %v663_v12  ;;  %v3612_v54 = vadd.f32 %v3511_v27, %v3405_v7  ;;  %v3626_v27 = vadd.f32 %v3499_v24, %v3393_v5  ;;  %v3636_v24 = vadd.f32 %v3468_v17, %v3387_v3 }
 0x113   : > { %v641_v43 = vmul.f32 0.25, %v633_v15 }
 0x114   : > { %v698_v45 = vmul.f32 0.25, %v691_v41  ;;  %v664_v14 = vadd.f32 %v3572_v59, %v3626_v27 }
 0x115   : > { %793 = vrot.lane.b32.xlu2 %v641_v43, %s3185_s30 }
 0x116   : > { %819 = vrot.lane.b32.xlu0 %v698_v45, %s3186_s13 }
 0x117   : > { %v649_v21 = vpop.permute.xlu1 %648  ;;  %v683_v49 = vpop.permute.xlu2 %682 }
 0x118   : > { %v666_v58 = vadd.f32 %v649_v21, %v3606_v47  ;;  %v647_v48 = vpop.permute.xlu0 %646 }
 0x119   : > { %v707_v57 = vadd.f32 %v647_v48, %v3375_v1 }
 0x11a   : > { %v694_v50 = vadd.f32 %v677_v11, %v666_v58  ;;  %v665_v11 = vadd.f32 %v647_v48, %v3622_v63 }
 0x11b   : > { %v714_v12 = vadd.f32 %v707_v57, %v3539_v35  ;;  %v3641_v35 = vadd.f32 %v3463_v16, %v3372_v0  ;;  %v706_v16 = vadd.f32 %v3572_v59, %v3393_v5  ;;  %v709_v5 = vadd.f32 %v3584_v13, %v3372_v0 }
 0x11c   : > { %v701_v52 = vmul.f32 0.25, %v694_v50  ;;  %v708_v59 = vadd.f32 %v649_v21, %v3390_v4 }
 0x11e   : > { %825 = vrot.lane.b32.xlu0 %v701_v52, %s3186_s13 }
 0x11f   : > { %v3615_v55 = vpop.permute.xlu1 %654  ;;  %v724_v62 = vpop.permute.xlu2 %723 }
 0x120   : > { %v669_v22 = vadd.f32 %v3615_v55, %v3612_v54  ;;  %v653_v56 = vpop.permute.xlu0 %652  ;;  %v742_v41 = vadd.f32 %v724_v62, %v714_v12  ;;  %v705_v12 = vadd.f32 %v643_v10, %v3378_v2 }
 0x121   : > { %v710_v19 = vadd.f32 %v653_v56, %v3387_v3  ;;  %v668_v52 = vadd.f32 %v653_v56, %v3636_v24  ;;  %v667_v3 = vadd.f32 %v3584_v13, %v3641_v35  ;;  %v711_v13 = vadd.f32 %v3615_v55, %v3405_v7 }
 0x122   : > { %v697_v61 = vadd.f32 %v683_v49, %v669_v22  ;;  %v749_v48 = vmul.f32 0.25, %v742_v41  ;;  %v712_v41 = vadd.f32 %v705_v12, %v3558_v46 }
 0x123   : > { %v717_v22 = vadd.f32 %v710_v19, %v3546_v38  ;;  %v713_v38 = vadd.f32 %v706_v16, %v3556_v44  ;;  %v716_v19 = vadd.f32 %v709_v5, %v3564_v51 }
 0x124   : > { %v704_v9 = vmul.f32 0.25, %v697_v61 }
 0x126   : > { %831 = vrot.lane.b32.xlu0 %v704_v9, %s3186_s13 }
 0x127   : > { %v675_v15 = vpop.permute.xlu1 %674  ;;  %v730_v50 = vpop.permute.xlu2 %729 }
 0x128   : > { %v693_v43 = vadd.f32 %v675_v15, %v665_v11  ;;  %v673_v45 = vpop.permute.xlu0 %672  ;;  %v745_v57 = vadd.f32 %v730_v50, %v717_v22 }
 0x129   : > { %v692_v1 = vadd.f32 %v673_v45, %v664_v14 }
 0x12a   : > { %v700_v58 = vmul.f32 0.25, %v693_v43  ;;  %v752_v56 = vmul.f32 0.25, %v745_v57 }
 0x12b   : > { %v699_v49 = vmul.f32 0.25, %v692_v1 }
 0x12c   : > { %823 = vrot.lane.b32.xlu2 %v700_v58, %s3186_s13  ;;  %v715_v58 = vadd.f32 %v708_v59, %v3566_v53  ;;  %v718_v53 = vadd.f32 %v711_v13, %v3574_v60 }
 0x12d   : > { %821 = vrot.lane.b32.xlu1 %v699_v49, %s3186_s13 }
 0x12e   : > { %878 = vrot.lane.b32.xlu0 %v749_v48, %s3187_s16  ;;  %v3191_v48 = vmov 0.0  }
 0x12f   : > { %v681_v17 = vpop.permute.xlu1 %680  ;;  %948 = vst.msk [vmem:[#allocation4 + $0x1] sm:$0x7f] %vm803_vm0, %v3191_v48 }
 0x130   : > { %v696_v61 = vadd.f32 %v681_v17, %v668_v52  ;;  %v679_v62 = vpop.permute.xlu0 %678  ;;  %990 = vst.msk [vmem:[#allocation4 + $0x81] sm:$0x7f] %vm803_vm0, %v3191_v48  ;;  %v3192_v17 = vmov -inf  }
 0x131   : > { %v695_v9 = vadd.f32 %v679_v62, %v667_v3  ;;  %858 = vst.msk [vmem:[#allocation4 + $0x8] sm:$0x1] %vm754_vm1, %v3191_v48 }
 0x132   : > { %v703_v11 = vmul.f32 0.25, %v696_v61  ;;  %755 = vst.msk [vmem:[#allocation2] sm:$0x1] %vm754_vm1, %v3191_v48 }
 0x133   : > { %v702_v14 = vmul.f32 0.25, %v695_v9  ;;  %756 = vst.msk [vmem:[#allocation2 + $0x10] sm:$0x1] %vm754_vm1, %v3191_v48 }
 0x134   : > { %829 = vrot.lane.b32.xlu2 %v703_v11, %s3186_s13  ;;  %757 = vst.msk [vmem:[#allocation2 + $0x20] sm:$0x1] %vm754_vm1, %v3191_v48 }
 0x135   : > { %827 = vrot.lane.b32.xlu1 %v702_v14, %s3186_s13  ;;  %758 = vst.msk [vmem:[#allocation2 + $0x30] sm:$0x1] %vm754_vm1, %v3191_v48 }
 0x136   : > { %884 = vrot.lane.b32.xlu0 %v752_v56, %s3187_s16  ;;  %759 = vst.msk [vmem:[#allocation2 + $0x40] sm:$0x1] %vm754_vm1, %v3191_v48 }
 0x137   : > { %v722_v15 = vpop.permute.xlu1 %721  ;;  %760 = vst.msk [vmem:[#allocation2 + $0x50] sm:$0x1] %vm754_vm1, %v3191_v48 }
 0x138   : > { %v741_v43 = vadd.f32 %v722_v15, %v713_v38  ;;  %v720_v45 = vpop.permute.xlu0 %719  ;;  %761 = vst.msk [vmem:[#allocation2 + $0x60] sm:$0x1] %vm754_vm1, %v3191_v48 }
 0x139   : > { %v740_v1 = vadd.f32 %v720_v45, %v712_v41  ;;  %762 = vst.msk [vmem:[#allocation2 + $0x70] sm:$0x1] %vm754_vm1, %v3191_v48 }
 0x13a   : > { %v748_v2 = vmul.f32 0.25, %v741_v43  ;;  %763 = vst.msk [vmem:[#allocation2 + $0x8] sm:$0x1] %vm754_vm1, %v3191_v48 }
 0x13b   : > { %v747_v10 = vmul.f32 0.25, %v740_v1  ;;  %764 = vst.msk [vmem:[#allocation2 + $0x18] sm:$0x1] %vm754_vm1, %v3191_v48 }
 0x13c   : > { %876 = vrot.lane.b32.xlu2 %v748_v2, %s3187_s16  ;;  %765 = vst.msk [vmem:[#allocation2 + $0x28] sm:$0x1] %vm754_vm1, %v3191_v48  ;;  %v1056_v2 = vld [vmem:[#allocation4 + $0x1] sm:$0xff] }
 0x13d   : > { %874 = vrot.lane.b32.xlu1 %v747_v10, %s3187_s16  ;;  %766 = vst.msk [vmem:[#allocation2 + $0x38] sm:$0x1] %vm754_vm1, %v3191_v48 }
 0x13e   : > { %767 = vst.msk [vmem:[#allocation2 + $0x48] sm:$0x1] %vm754_vm1, %v3191_v48 }
 0x13f   : > { %v728_v44 = vpop.permute.xlu1 %727  ;;  %768 = vst.msk [vmem:[#allocation2 + $0x58] sm:$0x1] %vm754_vm1, %v3191_v48 }
 0x140   : > { %v744_v46 = vadd.f32 %v728_v44, %v716_v19  ;;  %v726_v49 = vpop.permute.xlu0 %725  ;;  %769 = vst.msk [vmem:[#allocation2 + $0x68] sm:$0x1] %vm754_vm1, %v3191_v48 }
 0x141   : > { %v743_v0 = vadd.f32 %v726_v49, %v715_v58  ;;  %770 = vst.msk [vmem:[#allocation2 + $0x78] sm:$0x1] %vm754_vm1, %v3191_v48 }
 0x142   : > { %v751_v4 = vmul.f32 0.25, %v744_v46  ;;  %849 = vst.msk [vmem:[#allocation4] sm:$0x1] %vm754_vm1, %v3191_v48 }
 0x143   : > { %v750_v51 = vmul.f32 0.25, %v743_v0  ;;  %850 = vst.msk [vmem:[#allocation4 + $0x10] sm:$0x1] %vm754_vm1, %v3191_v48 }
 0x144   : > { %882 = vrot.lane.b32.xlu2 %v751_v4, %s3187_s16  ;;  %851 = vst.msk [vmem:[#allocation4 + $0x20] sm:$0x1] %vm754_vm1, %v3191_v48 }
 0x145   : > { %880 = vrot.lane.b32.xlu1 %v750_v51, %s3187_s16  ;;  %852 = vst.msk [vmem:[#allocation4 + $0x30] sm:$0x1] %vm754_vm1, %v3191_v48 }
 0x146   : > { %853 = vst.msk [vmem:[#allocation4 + $0x40] sm:$0x1] %vm754_vm1, %v3191_v48 }
 0x147   : > { %854 = vst.msk [vmem:[#allocation4 + $0x50] sm:$0x1] %vm754_vm1, %v3191_v48 }
 0x148   : > { %v732_v21 = vpop.permute.xlu0 %731  ;;  %855 = vst.msk [vmem:[#allocation4 + $0x60] sm:$0x1] %vm754_vm1, %v3191_v48 }
 0x149   : > { %v746_v7 = vadd.f32 %v732_v21, %v718_v53  ;;  %856 = vst.msk [vmem:[#allocation4 + $0x70] sm:$0x1] %vm754_vm1, %v3191_v48 }
 0x14a   : > { %857 = vst.msk [vmem:[#allocation4 + $0x80] sm:$0x1] %vm754_vm1, %v3191_v48 }
 0x14b   : > { %v753_v55 = vmul.f32 0.25, %v746_v7  ;;  %859 = vst.msk [vmem:[#allocation4 + $0x18] sm:$0x1] %vm754_vm1, %v3191_v48 }
 0x14c   : > { %860 = vst.msk [vmem:[#allocation4 + $0x28] sm:$0x1] %vm754_vm1, %v3191_v48 }
 0x14d   : > { %886 = vrot.lane.b32.xlu1 %v753_v55, %s3187_s16  ;;  %861 = vst.msk [vmem:[#allocation4 + $0x38] sm:$0x1] %vm754_vm1, %v3191_v48 }
 0x14e   : > { %862 = vst.msk [vmem:[#allocation4 + $0x48] sm:$0x1] %vm754_vm1, %v3191_v48 }
 0x14f   : > { %947 = vst.msk [vmem:[#allocation3] sm:$0xff] %vm841_vm2, %v3191_v48 }
 0x150   : > { %988 = vst.msk [vmem:[#allocation3 + $0x40] sm:$0xff] %vm841_vm2, %v3191_v48 }
 0x151   : > { %863 = vst.msk [vmem:[#allocation4 + $0x58] sm:$0x1] %vm754_vm1, %v3191_v48 }
 0x152   : > { %864 = vst.msk [vmem:[#allocation4 + $0x68] sm:$0x1] %vm754_vm1, %v3191_v48 }
 0x153   : > { %865 = vst.msk [vmem:[#allocation4 + $0x78] sm:$0x1] %vm754_vm1, %v3191_v48 }
 0x154   : > { %866 = vst.msk [vmem:[#allocation4 + $0x88] sm:$0x1] %vm754_vm1, %v3191_v48 }
 0x155   : > { %2065 = vst.msk [vmem:[#allocation4 + $0x8] sm:$0x1] %vm754_vm1, %v3192_v17  ;;  %1072 = vrot.lane.b32.xlu1 %v1056_v2, %s3189_s22 }
 0x156   : > { %v1007_v22 = vld [vmem:[#allocation3] sm:$0xff] }
 0x157   : > { %2151 = vst.msk [vmem:[#allocation3] sm:$0xff] %vm841_vm2, %v3192_v17  ;;  %1023 = vrot.lane.b32.xlu2 %v1007_v22, %s3188_s18 }
 0x15f   : > { %v782_v60 = vpop.permute.xlu2 %781 }
 0x160   : > { %805 = vst.msk [vmem:[#allocation2 + $0x11] sm:$0x7f] %vm803_vm0, %v782_v60 }
 0x161   : > { %v780_v50 = vpop.permute.xlu1 %779 }
 0x162   : > { %804 = vst.msk [vmem:[#allocation2 + $0x1] sm:$0x7f] %vm803_vm0, %v780_v50 }
 0x167   : > { %v788_v52 = vpop.permute.xlu2 %787  ;;  %v3719_v61 = vld [vmem:[#allocation2 + $0x10] sm:$0xff] }
 0x168   : > { %808 = vst.msk [vmem:[#allocation2 + $0x41] sm:$0x7f] %vm803_vm0, %v788_v52  ;;  %v3727_v9 = vld [vmem:[#allocation2 + $0x11] sm:$0xff] }
 0x169   : > { %v786_v3 = vpop.permute.xlu1 %785  ;;  %v3715_v57 = vld [vmem:[#allocation2] sm:$0xff]  ;;  %1966 = vst.msk [vmem:[#allocation2 + $0x10] sm:$0x1] %vm754_vm1, %v3192_v17 }
 0x16a   : > { %807 = vst.msk [vmem:[#allocation2 + $0x31] sm:$0x7f] %vm803_vm0, %v786_v3  ;;  %v3723_v62 = vld [vmem:[#allocation2 + $0x1] sm:$0xff] }
 0x16b   : > { %1965 = vst.msk [vmem:[#allocation2] sm:$0x1] %vm754_vm1, %v3192_v17 }
 0x16c   : > { %1973 = vst.msk [vmem:[#allocation2 + $0x8] sm:$0x1] %vm754_vm1, %v3192_v17 }
 0x16d   : > { %1974 = vst.msk [vmem:[#allocation2 + $0x18] sm:$0x1] %vm754_vm1, %v3192_v17 }
 0x16f   : > { %v794_v16 = vpop.permute.xlu2 %793  ;;  %v3732_v11 = vld [vmem:[#allocation2 + $0x40] sm:$0xff] }
 0x170   : > { %811 = vst.msk [vmem:[#allocation2 + $0x71] sm:$0x7f] %vm803_vm0, %v794_v16  ;;  %v3745_v38 = vld [vmem:[#allocation2 + $0x41] sm:$0xff] }
 0x171   : > { %v792_v12 = vpop.permute.xlu1 %791  ;;  %1969 = vst.msk [vmem:[#allocation2 + $0x40] sm:$0x1] %vm754_vm1, %v3192_v17  ;;  %v3737_v14 = vld [vmem:[#allocation2 + $0x30] sm:$0xff] }
 0x172   : > { %810 = vst.msk [vmem:[#allocation2 + $0x61] sm:$0x7f] %vm803_vm0, %v792_v12  ;;  %v3741_v56 = vld [vmem:[#allocation2 + $0x31] sm:$0xff] }
 0x173   : > { %1968 = vst.msk [vmem:[#allocation2 + $0x30] sm:$0x1] %vm754_vm1, %v3192_v17 }
 0x174   : > { %1976 = vst.msk [vmem:[#allocation2 + $0x38] sm:$0x1] %vm754_vm1, %v3192_v17 }
 0x175   : > { %1977 = vst.msk [vmem:[#allocation2 + $0x48] sm:$0x1] %vm754_vm1, %v3192_v17 }
 0x176   : > { %v784_v15 = vpop.permute.xlu0 %783 }
 0x177   : > { %806 = vst.msk [vmem:[#allocation2 + $0x21] sm:$0x7f] %vm803_vm0, %v784_v15  ;;  %v3750_v41 = vld [vmem:[#allocation2 + $0x70] sm:$0xff] }
 0x178   : > { %1972 = vst.msk [vmem:[#allocation2 + $0x70] sm:$0x1] %vm754_vm1, %v3192_v17  ;;  %v3754_v43 = vld [vmem:[#allocation2 + $0x71] sm:$0xff] }
 0x179   : > { %v3756_v45 = vld [vmem:[#allocation2 + $0x60] sm:$0xff]  ;;  %1980 = vst.msk [vmem:[#allocation2 + $0x78] sm:$0x1] %vm754_vm1, %v3192_v17 }
 0x17a   : > { %1971 = vst.msk [vmem:[#allocation2 + $0x60] sm:$0x1] %vm754_vm1, %v3192_v17  ;;  %v3762_v1 = vld [vmem:[#allocation2 + $0x61] sm:$0xff] }
 0x17b   : > { %1979 = vst.msk [vmem:[#allocation2 + $0x68] sm:$0x1] %vm754_vm1, %v3192_v17 }
 0x17e   : > { %v790_v5 = vpop.permute.xlu0 %789  ;;  %v3770_v59 = vld [vmem:[#allocation2 + $0x20] sm:$0xff] }
 0x17f   : > { %809 = vst.msk [vmem:[#allocation2 + $0x51] sm:$0x7f] %vm803_vm0, %v790_v5  ;;  %v3774_v10 = vld [vmem:[#allocation2 + $0x21] sm:$0xff] }
 0x180   : > { %1967 = vst.msk [vmem:[#allocation2 + $0x20] sm:$0x1] %vm754_vm1, %v3192_v17 }
 0x181   : > { %1975 = vst.msk [vmem:[#allocation2 + $0x28] sm:$0x1] %vm754_vm1, %v3192_v17 }
 0x186   : > { %v824_v19 = vpop.permute.xlu2 %823  ;;  %v3779_v44 = vld [vmem:[#allocation2 + $0x50] sm:$0xff] }
 0x187   : > { %844 = vst.msk [vmem:[#allocation3 + $0x18] sm:$0xff] %vm841_vm2, %v824_v19  ;;  %v3784_v46 = vld [vmem:[#allocation2 + $0x51] sm:$0xff] }
 0x188   : > { %v820_v58 = vpop.permute.xlu0 %819  ;;  %1970 = vst.msk [vmem:[#allocation2 + $0x50] sm:$0x1] %vm754_vm1, %v3192_v17 }
 0x189   : > { %842 = vst.msk [vmem:[#allocation3 + $0x8] sm:$0xff] %vm841_vm2, %v820_v58 }
 0x18a   : > { %1978 = vst.msk [vmem:[#allocation2 + $0x58] sm:$0x1] %vm754_vm1, %v3192_v17 }
 0x18e   : > { %v830_v49 = vpop.permute.xlu2 %829  ;;  %v3788_v48 = vld [vmem:[#allocation3 + $0x18] sm:$0xff] }
 0x18f   : > { %847 = vst.msk [vmem:[#allocation3 + $0x30] sm:$0xff] %vm841_vm2, %v830_v49  ;;  %1029 = vrot.lane.b32.xlu2 %v3788_v48, %s3188_s18 }
 0x190   : > { %v826_v0 = vpop.permute.xlu0 %825  ;;  %v3793_v4 = vld [vmem:[#allocation3 + $0x8] sm:$0xff] }
 0x191   : > { %845 = vst.msk [vmem:[#allocation3 + $0x20] sm:$0xff] %vm841_vm2, %v826_v0  ;;  %1025 = vrot.lane.b32.xlu0 %v3793_v4, %s3188_s18 }
 0x196   : > { %v877_v13 = vpop.permute.xlu2 %876  ;;  %v1013_v51 = vld [vmem:[#allocation3 + $0x30] sm:$0xff] }
 0x197   : > { %897 = vst.msk [vmem:[#allocation4 + $0x21] sm:$0x7f] %vm803_vm0, %v877_v13  ;;  %1035 = vrot.lane.b32.xlu2 %v1013_v51, %s3188_s18 }
 0x198   : > { %v832_v53 = vpop.permute.xlu0 %831  ;;  %v1011_v21 = vld [vmem:[#allocation3 + $0x20] sm:$0xff] }
 0x199   : > { %848 = vst.msk [vmem:[#allocation3 + $0x38] sm:$0xff] %vm841_vm2, %v832_v53  ;;  %1031 = vrot.lane.b32.xlu0 %v1011_v21, %s3188_s18 }
 0x19e   : > { %v883_v7 = vpop.permute.xlu2 %882  ;;  %v3803_v60 = vld [vmem:[#allocation4 + $0x20] sm:$0xff] }
 0x19f   : > { %900 = vst.msk [vmem:[#allocation4 + $0x51] sm:$0x7f] %vm803_vm0, %v883_v7  ;;  %v822_v55 = vpop.permute.xlu1 %821  ;;  %v1058_v22 = vld [vmem:[#allocation4 + $0x21] sm:$0xff] }
 0x1a0   : > { %843 = vst.msk [vmem:[#allocation3 + $0x10] sm:$0xff] %vm841_vm2, %v822_v55  ;;  %v879_v50 = vpop.permute.xlu0 %878  ;;  %v1014_v52 = vld [vmem:[#allocation3 + $0x38] sm:$0xff]  ;;  %v3812_v3 = vld [vmem:[#allocation4 + $0x21] sm:$0xff] }
 0x1a1   : > { %898 = vst.msk [vmem:[#allocation4 + $0x31] sm:$0x7f] %vm803_vm0, %v879_v50  ;;  %1037 = vrot.lane.b32.xlu0 %v1014_v52, %s3188_s18 }
 0x1a2   : > { %1001 = vst.msk [vmem:[#allocation5 + $0x10] sm:$0xff] %vm841_vm2, %v3803_v60 }
 0x1a3   : > { %2058 = vst.msk [vmem:[#allocation4 + $0x20] sm:$0x1] %vm754_vm1, %v3192_v17 }
 0x1a4   : > { %2067 = vst.msk [vmem:[#allocation4 + $0x28] sm:$0x1] %vm754_vm1, %v3192_v17 }
 0x1a6   : > { %v3816_v16 = vld [vmem:[#allocation4 + $0x50] sm:$0xff] }
 0x1a7   : > { %v828_v12 = vpop.permute.xlu1 %827  ;;  %v3818_v15 = vld [vmem:[#allocation3 + $0x10] sm:$0xff]  ;;  %1004 = vst.msk [vmem:[#allocation5 + $0x28] sm:$0xff] %vm841_vm2, %v3816_v16  ;;  %v1061_v19 = vld [vmem:[#allocation4 + $0x51] sm:$0xff] }
 0x1a8   : > { %846 = vst.msk [vmem:[#allocation3 + $0x28] sm:$0xff] %vm841_vm2, %v828_v12  ;;  %1027 = vrot.lane.b32.xlu1 %v3818_v15, %s3188_s18  ;;  %v885_v5 = vpop.permute.xlu0 %884  ;;  %v3825_v2 = vld [vmem:[#allocation4 + $0x30] sm:$0xff] }
 0x1a9   : > { %901 = vst.msk [vmem:[#allocation4 + $0x61] sm:$0x7f] %vm803_vm0, %v885_v5  ;;  %1076 = vrot.lane.b32.xlu0 %v1058_v22, %s3189_s22  ;;  %v3835_v58 = vld [vmem:[#allocation4 + $0x51] sm:$0xff] }
 0x1aa   : > { %1002 = vst.msk [vmem:[#allocation5 + $0x18] sm:$0xff] %vm841_vm2, %v3825_v2  ;;  %v1059_v49 = vld [vmem:[#allocation4 + $0x31] sm:$0xff] }
 0x1ab   : > { %2059 = vst.msk [vmem:[#allocation4 + $0x30] sm:$0x1] %vm754_vm1, %v3192_v17  ;;  %v3839_v0 = vld [vmem:[#allocation4 + $0x31] sm:$0xff] }
 0x1ac   : > { %2061 = vst.msk [vmem:[#allocation4 + $0x50] sm:$0x1] %vm754_vm1, %v3192_v17 }
 0x1ad   : > { %2070 = vst.msk [vmem:[#allocation4 + $0x58] sm:$0x1] %vm754_vm1, %v3192_v17 }
 0x1ae   : > { %2068 = vst.msk [vmem:[#allocation4 + $0x38] sm:$0x1] %vm754_vm1, %v3192_v17 }
 0x1af   : > { %v875_v13 = vpop.permute.xlu1 %874  ;;  %v1012_v51 = vld [vmem:[#allocation3 + $0x28] sm:$0xff] }
 0x1b0   : > { %896 = vst.msk [vmem:[#allocation4 + $0x11] sm:$0x7f] %vm803_vm0, %v875_v13  ;;  %1033 = vrot.lane.b32.xlu1 %v1012_v51, %s3188_s18  ;;  %v3845_v53 = vld [vmem:[#allocation4 + $0x60] sm:$0xff]  ;;  %v507_v13 = vadd.f32 %v3523_v30, %v3626_v27 }
 0x1b1   : > { %1082 = vrot.lane.b32.xlu0 %v1061_v19, %s3189_s22  ;;  %1005 = vst.msk [vmem:[#allocation5 + $0x30] sm:$0xff] %vm841_vm2, %v3845_v53  ;;  %v1062_v21 = vld [vmem:[#allocation4 + $0x61] sm:$0xff] }
 0x1b2   : > { %2062 = vst.msk [vmem:[#allocation4 + $0x60] sm:$0x1] %vm754_vm1, %v3192_v17  ;;  %v3852_v7 = vld [vmem:[#allocation4 + $0x61] sm:$0xff]  ;;  %v539_v27 = vadd.f32 %v3509_v26, %v507_v13 }
 0x1b3   : > { %2071 = vst.msk [vmem:[#allocation4 + $0x68] sm:$0x1] %vm754_vm1, %v3192_v17 }
 0x1b7   : > { %v881_v55 = vpop.permute.xlu1 %880  ;;  %v1057_v50 = vld [vmem:[#allocation4 + $0x11] sm:$0xff] }
 0x1b8   : > { %v3856_v52 = vld [vmem:[#allocation4 + $0x10] sm:$0xff]  ;;  %899 = vst.msk [vmem:[#allocation4 + $0x41] sm:$0x7f] %vm803_vm0, %v881_v55  ;;  %1074 = vrot.lane.b32.xlu2 %v1057_v50, %s3189_s22  ;;  %1078 = vrot.lane.b32.xlu1 %v1059_v49, %s3189_s22  ;;  %v1024_v49 = vpop.permute.xlu2 %1023  ;;  %v510_v55 = vadd.f32 %v3532_v33, %v3641_v35  ;;  %v481_v50 = vadd.f32 %v3507_v25, %v3402_v6 }
 0x1b9   : > { %1121 = vrot.lane.b32.xlu0 %v3715_v57, %s3190_s23  ;;  %1000 = vst.msk [vmem:[#allocation5 + $0x8] sm:$0xff] %vm841_vm2, %v3856_v52  ;;  %v3867_v22 = vld [vmem:[#allocation4 + $0x11] sm:$0xff]  ;;  %v991_v57 = vld [vmem:[#allocation4] sm:$0xff]  ;;  %v508_v33 = vadd.f32 %v3519_v28, %v3622_v63  ;;  %v506_v35 = vadd.f32 %v3475_v18, %v3600_v8  ;;  %v511_v18 = vadd.f32 %v3528_v31, %v3636_v24 }
 0x1ba   : > { %2057 = vst.msk [vmem:[#allocation4 + $0x10] sm:$0x1] %vm754_vm1, %v3192_v17  ;;  %v513_v26 = vadd.f32 %v3541_v36, %v481_v50  ;;  %v509_v8 = vadd.f32 %v3485_v20, %v3606_v47 }
 0x1bb   : > { %2066 = vst.msk [vmem:[#allocation4 + $0x18] sm:$0x1] %vm754_vm1, %v3192_v17  ;;  %v540_v6 = vadd.f32 %v3548_v39, %v508_v33  ;;  %v543_v39 = vadd.f32 %v3552_v42, %v511_v18 }
 0x1bc   : > { %999 = vst.msk [vmem:[#allocation5] sm:$0xff] %vm841_vm2, %v991_v57  ;;  %v545_v25 = vadd.f32 %v3530_v32, %v513_v26  ;;  %v4018_v57 = vld [vmem:[%s3360_s29 + $0x28] sm:$0xff]  ;;  %v4046_v26 = vld [vmem:[%s3360_s29 + $0x30] sm:$0xff] }
 0x1bd   : > { %2056 = vst.msk [vmem:[#allocation4] sm:$0x1] %vm754_vm1, %v3192_v17  ;;  %v551_v63 = vmul.f32 0.25, %v543_v39 }
 0x1be   : > { %2152 = vst.msk [vmem:[#allocation4 + $0x1] sm:$0x7f] %vm803_vm0, %v3192_v17  ;;  %v553_v28 = vmul.f32 0.25, %v545_v25 }
 0x1bf   : > { %v887_v12 = vpop.permute.xlu1 %886  ;;  %v1060_v5 = vld [vmem:[#allocation4 + $0x41] sm:$0xff]  ;;  %1048 = vst.msk [vmem:[#allocation5] sm:$0xff] %vm1047_vm3, %v1024_v49 }
 0x1c0   : > { %902 = vst.msk [vmem:[#allocation4 + $0x71] sm:$0x7f] %vm803_vm0, %v887_v12  ;;  %1080 = vrot.lane.b32.xlu2 %v1060_v5, %s3189_s22  ;;  %1084 = vrot.lane.b32.xlu1 %v1062_v21, %s3189_s22  ;;  %v3879_v19 = vld [vmem:[#allocation4 + $0x40] sm:$0xff] }
 0x1c1   : > { %1127 = vrot.lane.b32.xlu0 %v3737_v14, %s3190_s23  ;;  %1003 = vst.msk [vmem:[#allocation5 + $0x20] sm:$0xff] %vm841_vm2, %v3879_v19  ;;  %v3888_v14 = vld [vmem:[#allocation4 + $0x41] sm:$0xff] }
 0x1c2   : > { %2060 = vst.msk [vmem:[#allocation4 + $0x40] sm:$0x1] %vm754_vm1, %v3192_v17 }
 0x1c3   : > { %2069 = vst.msk [vmem:[#allocation4 + $0x48] sm:$0x1] %vm754_vm1, %v3192_v17 }
 0x1c7   : > { %v1063_v51 = vld [vmem:[#allocation4 + $0x71] sm:$0xff] }
 0x1c8   : > { %v3892_v21 = vld [vmem:[#allocation4 + $0x70] sm:$0xff]  ;;  %1086 = vrot.lane.b32.xlu2 %v1063_v51, %s3189_s22  ;;  %1123 = vrot.lane.b32.xlu1 %v3719_v61, %s3190_s23  ;;  %v547_v61 = vmul.f32 0.25, %v539_v27  ;;  %v1778_v51 = vrot.slane %v4018_v57, 1 }
 0x1c9   : > { %1006 = vst.msk [vmem:[#allocation5 + $0x38] sm:$0xff] %vm841_vm2, %v3892_v21  ;;  %1133 = vrot.lane.b32.xlu0 %v3756_v45, %s3190_s23  ;;  %v3905_v30 = vld [vmem:[#allocation4 + $0x71] sm:$0xff]  ;;  %v542_v45 = vadd.f32 %v3521_v29, %v510_v55  ;;  %v538_v29 = vadd.f32 %v3537_v34, %v506_v35  ;;  %v541_v34 = vadd.f32 %v3544_v37, %v509_v8  ;;  %v4054_v35 = vld [vmem:[%s3360_s29 + $0x10] sm:$0xff] }
 0x1ca   : > { %2063 = vst.msk [vmem:[#allocation4 + $0x70] sm:$0x1] %vm754_vm1, %v3192_v17 }
 0x1cb   : > { %2072 = vst.msk [vmem:[#allocation4 + $0x78] sm:$0x1] %vm754_vm1, %v3192_v17  ;;  %v550_v12 = vmul.f32 0.25, %v542_v45  ;;  %v546_v36 = vmul.f32 0.25, %v538_v29  ;;  %v549_v32 = vmul.f32 0.25, %v541_v34  ;;  %v1779_v34 = vrot.slane %v4046_v26, 1 }
 0x1d0   : > { %1125 = vrot.lane.b32.xlu2 %v3770_v59, %s3190_s23  ;;  %1129 = vrot.lane.b32.xlu1 %v3732_v11, %s3190_s23  ;;  %v548_v11 = vmul.f32 0.25, %v540_v6  ;;  %v3983_v59 = vld [vmem:[%s3360_s29 + $0x8] sm:$0xff]  ;;  %v1775_v6 = vrot.slane %v4054_v35, 1 }
 0x1d1   : > { %1164 = vrot.lane.b32.xlu0 %v547_v61, %s3193_s8 }
 0x1d8   : > { %1131 = vrot.lane.b32.xlu2 %v3779_v44, %s3190_s23  ;;  %1135 = vrot.lane.b32.xlu1 %v3750_v41, %s3190_s23  ;;  %v512_v41 = vadd.f32 %v3497_v23, %v3612_v54  ;;  %v1073_v23 = vpop.permute.xlu1 %1072 }
 0x1d9   : > { %1170 = vrot.lane.b32.xlu0 %v550_v12, %s3193_s8  ;;  %1097 = vst.msk [vmem:[#allocation5] sm:$0xff] %vm1096_vm4, %v1073_v23 }
 0x1da   : > { %v544_v31 = vadd.f32 %v3550_v40, %v512_v41  ;;  %v1251_v40 = vld [vmem:[#allocation4 + $0x80] sm:$0xff] }
 0x1db   : > { %2064 = vst.msk [vmem:[#allocation4 + $0x80] sm:$0x1] %vm754_vm1, %v3192_v17 }
 0x1dc   : > { %v552_v37 = vmul.f32 0.25, %v544_v31 }
 0x1e0   : > { %1162 = vrot.lane.b32.xlu2 %v546_v36, %s3193_s8  ;;  %1166 = vrot.lane.b32.xlu1 %v548_v11, %s3193_s8 }
 0x1e1   : > { %1176 = vrot.lane.b32.xlu0 %v553_v28, %s3193_s8 }
 0x1e8   : > { %1168 = vrot.lane.b32.xlu2 %v549_v32, %s3193_s8  ;;  %1172 = vrot.lane.b32.xlu1 %v551_v63, %s3193_s8 }
 0x1e9   : > { %v1030_v20 = vpop.permute.xlu2 %1029  ;;  %1215 = vrot.lane.b32.xlu0 %v3774_v10, %s3194_s20 }
 0x1ea   : > { %1051 = vst.msk [vmem:[#allocation5 + $0x18] sm:$0xff] %vm1047_vm3, %v1030_v20 }
 0x1f0   : > { %1174 = vrot.lane.b32.xlu2 %v552_v37, %s3193_s8  ;;  %1211 = vrot.lane.b32.xlu1 %v3723_v62, %s3194_s20  ;;  %v3972_v62 = vld [vmem:[%s3360_s29] sm:$0xff]  ;;  %v4093_v37 = vld [vmem:[%s3360_s29 + $0x38] sm:$0xff] }
 0x1f1   : > { %v1036_v42 = vpop.permute.xlu2 %1035  ;;  %1221 = vrot.lane.b32.xlu0 %v3784_v46, %s3194_s20 }
 0x1f2   : > { %1054 = vst.msk [vmem:[#allocation5 + $0x30] sm:$0xff] %vm1047_vm3, %v1036_v42 }
 0x1f8   : > { %1213 = vrot.lane.b32.xlu2 %v3727_v9, %s3194_s20  ;;  %1217 = vrot.lane.b32.xlu1 %v3741_v56, %s3194_s20  ;;  %v1773_v56 = vrot.slane %v3972_v62, 1 }
 0x1f9   : > { %1260 = vrot.lane.b32.xlu0 %v3856_v52, %s3195_s11 }
 0x200   : > { %1219 = vrot.lane.b32.xlu2 %v3745_v38, %s3194_s20  ;;  %1223 = vrot.lane.b32.xlu1 %v3762_v1, %s3194_s20 }
 0x201   : > { %1266 = vrot.lane.b32.xlu0 %v3879_v19, %s3195_s11 }
 0x203   : > { %v1026_v47 = vpop.permute.xlu0 %1025 }
 0x204   : > { %1049 = vst.msk [vmem:[#allocation5 + $0x8] sm:$0xff] %vm1047_vm3, %v1026_v47  ;;  %v4104_v47 = vld [vmem:[%s3360_s29 + $0x18] sm:$0xff] }
 0x208   : > { %1225 = vrot.lane.b32.xlu2 %v3754_v43, %s3194_s20  ;;  %1262 = vrot.lane.b32.xlu1 %v3803_v60, %s3195_s11 }
 0x209   : > { %1272 = vrot.lane.b32.xlu0 %v3892_v21, %s3195_s11 }
 0x20b   : > { %v1032_v54 = vpop.permute.xlu0 %1031 }
 0x20c   : > { %1052 = vst.msk [vmem:[#allocation5 + $0x20] sm:$0xff] %vm1047_vm3, %v1032_v54 }
 0x210   : > { %1264 = vrot.lane.b32.xlu2 %v3825_v2, %s3195_s11  ;;  %1268 = vrot.lane.b32.xlu1 %v3816_v16, %s3195_s11  ;;  %v4004_v16 = vld [vmem:[%s3360_s29 + $0x20] sm:$0xff] }
 0x211   : > { %1311 = vrot.lane.b32.xlu0 %v3818_v15, %s3196_s21  ;;  %v1774_v15 = vrot.slane %v3983_v59, 1  ;;  %v4014_v5 = vrot.slane %v4004_v16, 1 }
 0x212   : > { %v1075_v24 = vpop.permute.xlu2 %1074 }
 0x213   : > { %1098 = vst.msk [vmem:[#allocation5 + $0x8] sm:$0xff] %vm1096_vm4, %v1075_v24  ;;  %v1038_v9 = vpop.permute.xlu0 %1037 }
 0x214   : > { %1055 = vst.msk [vmem:[#allocation5 + $0x38] sm:$0xff] %vm1047_vm3, %v1038_v9 }
 0x218   : > { %1270 = vrot.lane.b32.xlu2 %v3845_v53, %s3195_s11  ;;  %1274 = vrot.lane.b32.xlu1 %v1251_v40, %s3195_s11  ;;  %s4452_s11 = scalar_lea.vmem [#allocation12], %s2794_s0  ;;  %s2841_s0 = sshll.u32 %s3173_s27, 6 }
 0x219   : > { %1781 = vrot.lane.b32.xlu0 %v1773_v56, %s3188_s18  ;;  %s2629_s27 = scalar_lea.sflag [#allocation8], %s3354_s17 }
 0x21a   : > { %v1081_v38 = vpop.permute.xlu2 %1080  ;;  %v1028_v43 = vpop.permute.xlu1 %1027 }
 0x21b   : > { %1101 = vst.msk [vmem:[#allocation5 + $0x20] sm:$0xff] %vm1096_vm4, %v1081_v38  ;;  %v1077_v1 = vpop.permute.xlu0 %1076 }
 0x21c   : > { %1050 = vst.msk [vmem:[#allocation5 + $0x10] sm:$0xff] %vm1047_vm3, %v1028_v43 }
 0x21d   : > { %1099 = vst.msk [vmem:[#allocation5 + $0x10] sm:$0xff] %vm1096_vm4, %v1077_v1 }
 0x220   : > { %1309 = vrot.lane.b32.xlu2 %v3793_v4, %s3196_s21  ;;  %1313 = vrot.lane.b32.xlu1 %v3788_v48, %s3196_s21 }
 0x221   : > { %1853 = vrot.lane.b32.xlu0 %v3983_v59, %s3189_s22 }
 0x222   : > { %v1087_v10 = vpop.permute.xlu2 %1086  ;;  %v1034_v44 = vpop.permute.xlu1 %1033 }
 0x223   : > { %1104 = vst.msk [vmem:[#allocation5 + $0x38] sm:$0xff] %vm1096_vm4, %v1087_v10  ;;  %v1083_v46 = vpop.permute.xlu0 %1082 }
 0x224   : > { %1053 = vst.msk [vmem:[#allocation5 + $0x28] sm:$0xff] %vm1047_vm3, %v1034_v44 }
 0x225   : > { %1102 = vst.msk [vmem:[#allocation5 + $0x28] sm:$0xff] %vm1096_vm4, %v1083_v46 }
 0x228   : > { %1693 = vrot.lane.b32.xlu2 %v3972_v62, %s3186_s13  ;;  %1661 = vrot.lane.b32.xlu1 %v3972_v62, %s3185_s30 }
 0x229   : > { %1695 = vrot.lane.b32.xlu0 %v3983_v59, %s3186_s13 }
 0x22a   : > { %v1126_v48 = vpop.permute.xlu2 %1125  ;;  %v1079_v4 = vpop.permute.xlu1 %1078 }
 0x22b   : > { %1148 = vst.msk [vmem:[#allocation5 + $0x10] sm:$0xff] %vm1145_vm5, %v1126_v48  ;;  %v1122_v60 = vpop.permute.xlu0 %1121 }
 0x22c   : > { %1100 = vst.msk [vmem:[#allocation5 + $0x18] sm:$0xff] %vm1096_vm4, %v1079_v4 }
 0x22d   : > { %1146 = vst.msk [vmem:[#allocation5] sm:$0xff] %vm1145_vm5, %v1122_v60 }
 0x230   : > { %1813 = vrot.lane.b32.xlu2 %v1773_v56, %s3185_s30  ;;  %1669 = vrot.lane.b32.xlu1 %v4004_v16, %s3185_s30  ;;  %v1776_v56 = vrot.slane %v4104_v47, 1 }
 0x231   : > { %1930 = vrot.lane.b32.xlu0 %v1774_v15, %s3190_s23 }
 0x232   : > { %v1132_v2 = vpop.permute.xlu2 %1131  ;;  %v1085_v53 = vpop.permute.xlu1 %1084 }
 0x233   : > { %1151 = vst.msk [vmem:[#allocation5 + $0x28] sm:$0xff] %vm1145_vm5, %v1132_v2  ;;  %v1128_v52 = vpop.permute.xlu0 %1127 }
 0x234   : > { %1103 = vst.msk [vmem:[#allocation5 + $0x30] sm:$0xff] %vm1096_vm4, %v1085_v53 }
 0x235   : > { %1149 = vst.msk [vmem:[#allocation5 + $0x18] sm:$0xff] %vm1145_vm5, %v1128_v52 }
 0x238   : > { %1861 = vrot.lane.b32.xlu2 %v4018_v57, %s3189_s22  ;;  %1789 = vrot.lane.b32.xlu1 %v4014_v5, %s3188_s18 }
 0x239   : > { %1889 = vrot.lane.b32.xlu0 %v4018_v57, %s3188_s18 }
 0x23a   : > { %v1163_v19 = vpop.permute.xlu2 %1162  ;;  %v1124_v49 = vpop.permute.xlu1 %1123 }
 0x23b   : > { %1187 = vst.msk [vmem:[#allocation5] sm:$0xff] %vm1186_vm6, %v1163_v19  ;;  %v1134_v13 = vpop.permute.xlu0 %1133 }
 0x23c   : > { %1147 = vst.msk [vmem:[#allocation5 + $0x8] sm:$0xff] %vm1145_vm5, %v1124_v49 }
 0x23d   : > { %1152 = vst.msk [vmem:[#allocation5 + $0x30] sm:$0xff] %vm1145_vm5, %v1134_v13 }
 0x240   : > { %1881 = vrot.lane.b32.xlu2 %v3983_v59, %s3188_s18  ;;  %1703 = vrot.lane.b32.xlu1 %v4018_v57, %s3186_s13 }
 0x241   : > { %1791 = vrot.lane.b32.xlu0 %v1778_v51, %s3188_s18 }
 0x242   : > { %v1169_v21 = vpop.permute.xlu2 %1168  ;;  %v1130_v27 = vpop.permute.xlu1 %1129 }
 0x243   : > { %1190 = vst.msk [vmem:[#allocation5 + $0x18] sm:$0xff] %vm1186_vm6, %v1169_v21  ;;  %v1165_v55 = vpop.permute.xlu0 %1164 }
 0x244   : > { %1150 = vst.msk [vmem:[#allocation5 + $0x20] sm:$0xff] %vm1145_vm5, %v1130_v27 }
 0x245   : > { %1188 = vst.msk [vmem:[#allocation5 + $0x8] sm:$0xff] %vm1186_vm6, %v1165_v55 }
 0x248   : > { %1783 = vrot.lane.b32.xlu2 %v1774_v15, %s3188_s18  ;;  %1938 = vrot.lane.b32.xlu1 %v1778_v51, %s3190_s23 }
 0x249   : > { %1671 = vrot.lane.b32.xlu0 %v4018_v57, %s3185_s30 }
 0x24a   : > { %v1175_v61 = vpop.permute.xlu2 %1174  ;;  %v1136_v45 = vpop.permute.xlu1 %1135 }
 0x24b   : > { %1193 = vst.msk [vmem:[#allocation5 + $0x30] sm:$0xff] %vm1186_vm6, %v1175_v61  ;;  %v1171_v50 = vpop.permute.xlu0 %1170 }
 0x24c   : > { %1153 = vst.msk [vmem:[#allocation5 + $0x38] sm:$0xff] %vm1145_vm5, %v1136_v45 }
 0x24d   : > { %1191 = vst.msk [vmem:[#allocation5 + $0x20] sm:$0xff] %vm1186_vm6, %v1171_v50 }
 0x250   : > { %1663 = vrot.lane.b32.xlu2 %v3983_v59, %s3185_s30  ;;  %1815 = vrot.lane.b32.xlu1 %v1774_v15, %s3185_s30  ;;  %v1780_v15 = vrot.slane %v4093_v37, 1 }
 0x251   : > { %1863 = vrot.lane.b32.xlu0 %v4046_v26, %s3189_s22 }
 0x252   : > { %v1214_v12 = vpop.permute.xlu2 %1213  ;;  %v1167_v33 = vpop.permute.xlu1 %1166 }
 0x253   : > { %1237 = vst.msk [vmem:[#allocation5 + $0x8] sm:$0xff] %vm1235_vm7, %v1214_v12  ;;  %v1177_v29 = vpop.permute.xlu0 %1176 }
 0x254   : > { %1189 = vst.msk [vmem:[#allocation5 + $0x10] sm:$0xff] %vm1186_vm6, %v1167_v33 }
 0x255   : > { %1194 = vst.msk [vmem:[#allocation5 + $0x38] sm:$0xff] %vm1186_vm6, %v1177_v29 }
 0x258   : > { %1855 = vrot.lane.b32.xlu2 %v4054_v35, %s3189_s22  ;;  %1725 = vrot.lane.b32.xlu1 %v3972_v62, %s3187_s16 }
 0x259   : > { %1932 = vrot.lane.b32.xlu0 %v1775_v6, %s3190_s23 }
 0x25a   : > { %v1220_v25 = vpop.permute.xlu2 %1219  ;;  %v1173_v36 = vpop.permute.xlu1 %1172 }
 0x25b   : > { %1240 = vst.msk [vmem:[#allocation5 + $0x20] sm:$0xff] %vm1235_vm7, %v1220_v25  ;;  %v1216_v11 = vpop.permute.xlu0 %1215 }
 0x25c   : > { %1192 = vst.msk [vmem:[#allocation5 + $0x28] sm:$0xff] %vm1186_vm6, %v1173_v36 }
 0x25d   : > { %1238 = vst.msk [vmem:[#allocation5 + $0x10] sm:$0xff] %vm1235_vm7, %v1216_v11 }
 0x260   : > { %1823 = vrot.lane.b32.xlu2 %v1778_v51, %s3185_s30  ;;  %1697 = vrot.lane.b32.xlu1 %v4054_v35, %s3186_s13 }
 0x261   : > { %1891 = vrot.lane.b32.xlu0 %v4046_v26, %s3188_s18 }
 0x262   : > { %v1226_v28 = vpop.permute.xlu2 %1225  ;;  %v1212_v18 = vpop.permute.xlu1 %1211 }
 0x263   : > { %1243 = vst.msk [vmem:[#allocation5 + $0x38] sm:$0xff] %vm1235_vm7, %v1226_v28  ;;  %v1222_v8 = vpop.permute.xlu0 %1221 }
 0x264   : > { %1236 = vst.msk [vmem:[#allocation5] sm:$0xff] %vm1235_vm7, %v1212_v18 }
 0x265   : > { %1241 = vst.msk [vmem:[#allocation5 + $0x28] sm:$0xff] %vm1235_vm7, %v1222_v8 }
 0x268   : > { %1883 = vrot.lane.b32.xlu2 %v4054_v35, %s3188_s18  ;;  %1705 = vrot.lane.b32.xlu1 %v4046_v26, %s3186_s13 }
 0x269   : > { %1793 = vrot.lane.b32.xlu0 %v1779_v34, %s3188_s18 }
 0x26a   : > { %v1265_v39 = vpop.permute.xlu2 %1264  ;;  %v1218_v32 = vpop.permute.xlu1 %1217 }
 0x26b   : > { %1287 = vst.msk [vmem:[#allocation5 + $0x10] sm:$0xff] %vm1284_vm8, %v1265_v39  ;;  %v1261_v63 = vpop.permute.xlu0 %1260 }
 0x26c   : > { %1239 = vst.msk [vmem:[#allocation5 + $0x18] sm:$0xff] %vm1235_vm7, %v1218_v32 }
 0x26d   : > { %1285 = vst.msk [vmem:[#allocation5] sm:$0xff] %vm1284_vm8, %v1261_v63 }
 0x270   : > { %1785 = vrot.lane.b32.xlu2 %v1775_v6, %s3188_s18  ;;  %1940 = vrot.lane.b32.xlu1 %v1779_v34, %s3190_s23 }
 0x271   : > { %1673 = vrot.lane.b32.xlu0 %v4046_v26, %s3185_s30 }
 0x272   : > { %v1271_v41 = vpop.permute.xlu2 %1270  ;;  %v1224_v20 = vpop.permute.xlu1 %1223 }
 0x273   : > { %1290 = vst.msk [vmem:[#allocation5 + $0x28] sm:$0xff] %vm1284_vm8, %v1271_v41  ;;  %v1267_v31 = vpop.permute.xlu0 %1266 }
 0x274   : > { %1242 = vst.msk [vmem:[#allocation5 + $0x30] sm:$0xff] %vm1235_vm7, %v1224_v20 }
 0x275   : > { %1288 = vst.msk [vmem:[#allocation5 + $0x18] sm:$0xff] %vm1284_vm8, %v1267_v31 }
 0x278   : > { %1665 = vrot.lane.b32.xlu2 %v4054_v35, %s3185_s30  ;;  %1817 = vrot.lane.b32.xlu1 %v1775_v6, %s3185_s30 }
 0x279   : > { %1865 = vrot.lane.b32.xlu0 %v4093_v37, %s3189_s22 }
 0x27a   : > { %v1310_v42 = vpop.permute.xlu2 %1309  ;;  %v1263_v23 = vpop.permute.xlu1 %1262 }
 0x27b   : > { %1334 = vst.msk [vmem:[#allocation5] sm:$0xff] %vm1333_vm9, %v1310_v42  ;;  %v1273_v40 = vpop.permute.xlu0 %1272 }
 0x27c   : > { %1286 = vst.msk [vmem:[#allocation5 + $0x8] sm:$0xff] %vm1284_vm8, %v1263_v23 }
 0x27d   : > { %1291 = vst.msk [vmem:[#allocation5 + $0x30] sm:$0xff] %vm1284_vm8, %v1273_v40 }
 0x280   : > { %1857 = vrot.lane.b32.xlu2 %v4104_v47, %s3189_s22  ;;  %1727 = vrot.lane.b32.xlu1 %v3983_v59, %s3187_s16 }
 0x281   : > { %1885 = vrot.lane.b32.xlu0 %v4104_v47, %s3188_s18 }
 0x282   : > { %v4112_v54 = vpop.permute.xlu2 %1693  ;;  %v1269_v24 = vpop.permute.xlu1 %1268 }
 0x283   : > { %1289 = vst.msk [vmem:[#allocation5 + $0x20] sm:$0xff] %vm1284_vm8, %v1269_v24  ;;  %v1312_v9 = vpop.permute.xlu0 %1311  ;;  %v1765_v13 = vadd.f32 %v4112_v54, %v3972_v62 }
 0x284   : > { %1335 = vst.msk [vmem:[#allocation5 + $0x8] sm:$0xff] %vm1333_vm9, %v1312_v9 }
 0x288   : > { %1825 = vrot.lane.b32.xlu2 %v1779_v34, %s3185_s30  ;;  %1699 = vrot.lane.b32.xlu1 %v4104_v47, %s3186_s13 }
 0x289   : > { %1787 = vrot.lane.b32.xlu0 %v1776_v56, %s3188_s18 }
 0x28a   : > { %v1814_v38 = vpop.permute.xlu2 %1813  ;;  %v1275_v43 = vpop.permute.xlu1 %1274 }
 0x28b   : > { %1292 = vst.msk [vmem:[#allocation5 + $0x38] sm:$0xff] %vm1284_vm8, %v1275_v43  ;;  %v4122_v1 = vpop.permute.xlu0 %1781 }
 0x28c   : > { %v1805_v21 = vadd.f32 %v4122_v1, %v1765_v13 }
 0x28e   : > { %v1837_v61 = vadd.f32 %v1814_v38, %v1805_v21 }
 0x290   : > { %1735 = vrot.lane.b32.xlu2 %v4018_v57, %s3187_s16  ;;  %1934 = vrot.lane.b32.xlu1 %v1776_v56, %s3190_s23  ;;  %v1845_v12 = vmul.f32 0.25, %v1837_v61 }
 0x291   : > { %1667 = vrot.lane.b32.xlu0 %v4104_v47, %s3185_s30 }
 0x292   : > { %v1862_v10 = vpop.permute.xlu2 %1861  ;;  %v1314_v44 = vpop.permute.xlu1 %1313 }
 0x293   : > { %1336 = vst.msk [vmem:[#allocation5 + $0x10] sm:$0xff] %vm1333_vm9, %v1314_v44  ;;  %v1854_v46 = vpop.permute.xlu0 %1853  ;;  %v1920_v42 = vadd.f32 %v1862_v10, %v4004_v16 }
 0x294   : > { %v1916_v31 = vadd.f32 %v1854_v46, %v3972_v62 }
 0x296   : > { %v1923_v24 = vadd.f32 %v1916_v31, %v4122_v1 }
 0x298   : > { %1707 = vrot.lane.b32.xlu2 %v4093_v37, %s3186_s13  ;;  %1893 = vrot.lane.b32.xlu1 %v4093_v37, %s3188_s18 }
 0x299   : > { %1859 = vrot.lane.b32.xlu0 %v4004_v16, %s3189_s22 }
 0x29a   : > { %v1882_v48 = vpop.permute.xlu2 %1881  ;;  %v1662_v4 = vpop.permute.xlu1 %1661 }
 0x29b   : > { %v4136_v60 = vpop.permute.xlu0 %1695  ;;  %v1685_v29 = vadd.f32 %v1662_v4, %v3972_v62 }
 0x29c   : > { %v1766_v1 = vadd.f32 %v4136_v60, %v3983_v59 }
 0x29d   : > { %v1874_v18 = vadd.f32 %v1854_v46, %v1685_v29  ;;  %v1717_v13 = vadd.f32 %v4112_v54, %v1685_v29 }
 0x29f   : > { %v1902_v39 = vadd.f32 %v1882_v48, %v1874_v18 }
 0x2a0   : > { %1942 = vrot.lane.b32.xlu2 %v1780_v15, %s3190_s23  ;;  %1795 = vrot.lane.b32.xlu1 %v1780_v15, %s3188_s18 }
 0x2a1   : > { %1701 = vrot.lane.b32.xlu0 %v4004_v16, %s3186_s13  ;;  %v1909_v23 = vmul.f32 0.25, %v1902_v39 }
 0x2a2   : > { %v4143_v2 = vpop.permute.xlu2 %1783  ;;  %v1670_v53 = vpop.permute.xlu1 %1669 }
 0x2a3   : > { %v1931_v52 = vpop.permute.xlu0 %1930  ;;  %v4169_v50 = vadd.f32 %v1670_v53, %v4004_v16  ;;  %v1806_v53 = vadd.f32 %v4143_v2, %v1766_v1 }
 0x2a5   : > { %v1878_v33 = vadd.f32 %v1862_v10, %v4169_v50 }
 0x2a8   : > { %1819 = vrot.lane.b32.xlu2 %v1776_v56, %s3185_s30  ;;  %1729 = vrot.lane.b32.xlu1 %v4054_v35, %s3187_s16  ;;  %v1951_v56 = vadd.f32 %v1931_v52, %v1923_v24 }
 0x2a9   : > { %1936 = vrot.lane.b32.xlu0 %v4014_v5, %s3190_s23 }
 0x2aa   : > { %v4150_v19 = vpop.permute.xlu2 %1663  ;;  %v4152_v49 = vpop.permute.xlu1 %1789  ;;  %v1958_v48 = vmul.f32 0.25, %v1951_v56 }
 0x2ab   : > { %v1890_v51 = vpop.permute.xlu0 %1889  ;;  %v1927_v9 = vadd.f32 %v1920_v42, %v4152_v49 }
 0x2ac   : > { %v1906_v36 = vadd.f32 %v1890_v51, %v1878_v33  ;;  %v1686_v33 = vadd.f32 %v4150_v19, %v3983_v59 }
 0x2ae   : > { %v1913_v8 = vmul.f32 0.25, %v1906_v36 }
 0x2b0   : > { %1827 = vrot.lane.b32.xlu2 %v1780_v15, %s3185_s30  ;;  %1737 = vrot.lane.b32.xlu1 %v4046_v26, %s3187_s16 }
 0x2b1   : > { %1731 = vrot.lane.b32.xlu0 %v4104_v47, %s3187_s16 }
 0x2b2   : > { %v4162_v27 = vpop.permute.xlu2 %1855  ;;  %v4164_v55 = vpop.permute.xlu1 %1703 }
 0x2b3   : > { %v4166_v45 = vpop.permute.xlu0 %1791  ;;  %v1770_v28 = vadd.f32 %v4164_v55, %v4018_v57  ;;  %v1875_v29 = vadd.f32 %v4162_v27, %v1686_v33 }
 0x2b5   : > { %v1810_v34 = vadd.f32 %v4166_v45, %v1770_v28 }
 0x2b8   : > { %1887 = vrot.lane.b32.xlu2 %v4004_v16, %s3188_s18  ;;  %1675 = vrot.lane.b32.xlu1 %v4093_v37, %s3185_s30 }
 0x2b9   : > { %1989 = vrot.lane.b32.xlu0 %v1845_v12, %s3197_s10 }
 0x2ba   : > { %v1824_v6 = vpop.permute.xlu2 %1823  ;;  %v1939_v25 = vpop.permute.xlu1 %1938 }
 0x2bb   : > { %v1672_v11 = vpop.permute.xlu0 %1671  ;;  %v1842_v41 = vadd.f32 %v1824_v6, %v1810_v34  ;;  %v1955_v62 = vadd.f32 %v1939_v25, %v1927_v9 }
 0x2bd   : > { %v1850_v40 = vmul.f32 0.25, %v1842_v41  ;;  %v1962_v4 = vmul.f32 0.25, %v1955_v62 }
 0x2c0   : > { %1821 = vrot.lane.b32.xlu2 %v4014_v5, %s3185_s30  ;;  %1739 = vrot.lane.b32.xlu1 %v4093_v37, %s3187_s16  ;;  %v1917_v5 = vadd.f32 %v4162_v27, %v3983_v59 }
 0x2c1   : > { %2036 = vrot.lane.b32.xlu0 %v1913_v8, %s3198_s12 }
 0x2c2   : > { %v1884_v32 = vpop.permute.xlu2 %1883  ;;  %v1816_v63 = vpop.permute.xlu1 %1815  ;;  %v1924_v10 = vadd.f32 %v1917_v5, %v4143_v2  ;;  %v1690_v2 = vadd.f32 %v1672_v11, %v4018_v57 }
 0x2c3   : > { %v1864_v20 = vpop.permute.xlu0 %1863  ;;  %v1838_v52 = vadd.f32 %v1816_v63, %v1806_v53  ;;  %v1903_v36 = vadd.f32 %v1884_v32, %v1875_v29 }
 0x2c4   : > { %v1879_v25 = vadd.f32 %v1864_v20, %v1690_v2  ;;  %v1921_v59 = vadd.f32 %v1864_v20, %v4018_v57 }
 0x2c5   : > { %v1846_v6 = vmul.f32 0.25, %v1838_v52  ;;  %v1910_v11 = vmul.f32 0.25, %v1903_v36  ;;  %v1722_v52 = vadd.f32 %v4164_v55, %v1690_v2 }
 0x2c6   : > { %v1928_v63 = vadd.f32 %v1921_v59, %v4166_v45 }
 0x2c8   : > { %1733 = vrot.lane.b32.xlu2 %v4004_v16, %s3187_s16  ;;  %2028 = vrot.lane.b32.xlu1 %v1909_v23, %s3198_s12 }
 0x2c9   : > { %1999 = vrot.lane.b32.xlu0 %v1850_v40, %s3197_s10 }
 0x2ca   : > { %v4196_v38 = vpop.permute.xlu2 %1785  ;;  %v1726_v43 = vpop.permute.xlu1 %1725 }
 0x2cb   : > { %v1933_v44 = vpop.permute.xlu0 %1932  ;;  %v1749_v51 = vadd.f32 %v1726_v43, %v1717_v13 }
 0x2cc   : > { %v1952_v46 = vadd.f32 %v1933_v44, %v1924_v10  ;;  %v1718_v10 = vadd.f32 %v4136_v60, %v1686_v33 }
 0x2cd   : > { %v1757_v54 = vmul.f32 0.25, %v1749_v51 }
 0x2ce   : > { %v1959_v15 = vmul.f32 0.25, %v1952_v46 }
 0x2d0   : > { %2089 = vrot.lane.b32.xlu1 %v1962_v4, %s3199_s28  ;;  %2081 = vrot.lane.b32.xlu2 %v1958_v48, %s3199_s28 }
 0x2d1   : > { %2083 = vrot.lane.b32.xlu0 %v1959_v15, %s3199_s28 }
 0x2d2   : > { %v1666_v21 = vpop.permute.xlu2 %1665  ;;  %v4206_v61 = vpop.permute.xlu1 %1697 }
 0x2d3   : > { %v1892_v12 = vpop.permute.xlu0 %1891  ;;  %v1767_v57 = vadd.f32 %v4206_v61, %v4054_v35  ;;  %v1687_v43 = vadd.f32 %v1666_v21, %v4054_v35 }
 0x2d4   : > { %v1907_v28 = vadd.f32 %v1892_v12, %v1879_v25 }
 0x2d5   : > { %v1807_v40 = vadd.f32 %v4196_v38, %v1767_v57 }
 0x2d6   : > { %v1914_v39 = vmul.f32 0.25, %v1907_v28 }
 0x2d8   : > { %2258 = vrot.lane.b32.xlu1 %v1757_v54, %s3200_s9  ;;  %1991 = vrot.lane.b32.xlu2 %v1846_v6, %s3197_s10 }
 0x2da   : > { %v1858_v18 = vpop.permute.xlu2 %1857  ;;  %v4214_v8 = vpop.permute.xlu1 %1705 }
 0x2db   : > { %v1794_v34 = vpop.permute.xlu0 %1793  ;;  %v1771_v19 = vadd.f32 %v4214_v8, %v4046_v26  ;;  %v1876_v44 = vadd.f32 %v1858_v18, %v1687_v43  ;;  %v1918_v33 = vadd.f32 %v1858_v18, %v4054_v35 }
 0x2dd   : > { %v1811_v27 = vadd.f32 %v1794_v34, %v1771_v19  ;;  %v1925_v55 = vadd.f32 %v1918_v33, %v4196_v38 }
 0x2e0   : > { %2030 = vrot.lane.b32.xlu2 %v1910_v11, %s3198_s12  ;;  %2038 = vrot.lane.b32.xlu1 %v1914_v39, %s3198_s12 }
 0x2e2   : > { %v1826_v32 = vpop.permute.xlu2 %1825  ;;  %v1941_v41 = vpop.permute.xlu1 %1940 }
 0x2e3   : > { %v1843_v31 = vadd.f32 %v1826_v32, %v1811_v27  ;;  %v1956_v42 = vadd.f32 %v1941_v41, %v1928_v63  ;;  %v1674_v23 = vpop.permute.xlu0 %1673 }
 0x2e4   : > { %v1691_v35 = vadd.f32 %v1674_v23, %v4046_v26 }
 0x2e5   : > { %v1851_v20 = vmul.f32 0.25, %v1843_v31  ;;  %v1963_v5 = vmul.f32 0.25, %v1956_v42 }
 0x2e8   : > { %2091 = vrot.lane.b32.xlu2 %v1963_v5, %s3199_s28  ;;  %2001 = vrot.lane.b32.xlu1 %v1851_v20, %s3197_s10 }
 0x2ea   : > { %v1736_v24 = vpop.permute.xlu2 %1735  ;;  %v1818_v9 = vpop.permute.xlu1 %1817 }
 0x2eb   : > { %v1839_v56 = vadd.f32 %v1818_v9, %v1807_v40  ;;  %v1866_v45 = vpop.permute.xlu0 %1865  ;;  %v1754_v51 = vadd.f32 %v1736_v24, %v1722_v52 }
 0x2ec   : > { %v1922_v36 = vadd.f32 %v1866_v45, %v4046_v26  ;;  %v1880_v27 = vadd.f32 %v1866_v45, %v1691_v35 }
 0x2ed   : > { %v1847_v62 = vmul.f32 0.25, %v1839_v56  ;;  %v1762_v6 = vmul.f32 0.25, %v1754_v51 }
 0x2ee   : > { %v1929_v18 = vadd.f32 %v1922_v36, %v1794_v34 }
 0x2ef   : > { %1993 = vrot.lane.b32.xlu0 %v1847_v62, %s3197_s10 }
 0x2f2   : > { %v4230_v46 = vpop.permute.xlu2 %1707  ;;  %v1728_v1 = vpop.permute.xlu1 %1727 }
 0x2f3   : > { %v1750_v48 = vadd.f32 %v1728_v1, %v1718_v10  ;;  %v1886_v4 = vpop.permute.xlu0 %1885  ;;  %v1772_v26 = vadd.f32 %v4230_v46, %v4093_v37  ;;  %v1719_v1 = vadd.f32 %v4206_v61, %v1687_v43 }
 0x2f4   : > { %v1904_v15 = vadd.f32 %v1886_v4, %v1876_v44 }
 0x2f5   : > { %v1758_v53 = vmul.f32 0.25, %v1750_v48 }
 0x2f6   : > { %v1911_v13 = vmul.f32 0.25, %v1904_v15 }
 0x2f7   : > { %2260 = vrot.lane.b32.xlu2 %v1758_v53, %s3200_s9 }
 0x2f8   : > { %2032 = vrot.lane.b32.xlu0 %v1911_v13, %s3198_s12 }
 0x2fa   : > { %v1943_v12 = vpop.permute.xlu2 %1942  ;;  %v4235_v21 = vpop.permute.xlu1 %1699 }
 0x2fb   : > { %v1788_v60 = vpop.permute.xlu0 %1787  ;;  %v1768_v54 = vadd.f32 %v4235_v21, %v4104_v47  ;;  %v1957_v63 = vadd.f32 %v1943_v12, %v1929_v18 }
 0x2fd   : > { %v1808_v29 = vadd.f32 %v1788_v60, %v1768_v54  ;;  %v1964_v42 = vmul.f32 0.25, %v1957_v63 }
 0x2ff   : > { %2268 = vrot.lane.b32.xlu2 %v1762_v6, %s3200_s9 }
 0x302   : > { %v1820_v2 = vpop.permute.xlu2 %1819  ;;  %v1935_v25 = vpop.permute.xlu1 %1934 }
 0x303   : > { %v1840_v28 = vadd.f32 %v1820_v2, %v1808_v29  ;;  %v1953_v59 = vadd.f32 %v1935_v25, %v1925_v55  ;;  %v1668_v19 = vpop.permute.xlu0 %1667 }
 0x304   : > { %v1688_v20 = vadd.f32 %v1668_v19, %v4104_v47 }
 0x305   : > { %v1848_v11 = vmul.f32 0.25, %v1840_v28  ;;  %v1960_v39 = vmul.f32 0.25, %v1953_v59 }
 0x307   : > { %2085 = vrot.lane.b32.xlu1 %v1960_v39, %s3199_s28  ;;  %1995 = vrot.lane.b32.xlu2 %v1848_v11, %s3197_s10  ;;  %v1297_v11 = vld [vmem:[#allocation3 + $0x28] sm:$0xff] }
 0x30a   : > { %v1828_v32 = vpop.permute.xlu2 %1827  ;;  %v1894_v38 = vpop.permute.xlu1 %1893 }
 0x30b   : > { %v1908_v41 = vadd.f32 %v1894_v38, %v1880_v27  ;;  %v1860_v31 = vpop.permute.xlu0 %1859 }
 0x30c   : > { %v1877_v34 = vadd.f32 %v1860_v31, %v1688_v20  ;;  %v1919_v10 = vadd.f32 %v1860_v31, %v4104_v47  ;;  %v2194_v31 = vld [vmem:[#allocation4] sm:$0xff] }
 0x30d   : > { %v1915_v57 = vmul.f32 0.25, %v1908_v41 }
 0x30e   : > { %v1926_v53 = vadd.f32 %v1919_v10, %v1788_v60  ;;  %v1720_v60 = vadd.f32 %v4235_v21, %v1688_v20 }
 0x30f   : > { %2093 = vrot.lane.b32.xlu1 %v1964_v42, %s3199_s28  ;;  %2040 = vrot.lane.b32.xlu0 %v1915_v57, %s3198_s12  ;;  %v2202_v42 = vld [vmem:[#allocation3] sm:$0xff] }
 0x310   : > { %v2210_v57 = vmax.f32 %v2194_v31, %v2202_v42 }
 0x312   : > { %v1888_v23 = vpop.permute.xlu2 %1887  ;;  %v1796_v5 = vpop.permute.xlu1 %1795 }
 0x313   : > { %v1905_v40 = vadd.f32 %v1888_v23, %v1877_v34  ;;  %v1812_v24 = vadd.f32 %v1796_v5, %v1772_v26  ;;  %v1702_v9 = vpop.permute.xlu0 %1701  ;;  %v2218_v34 = vld [vmem:[#allocation4 + $0x1] sm:$0xff] }
 0x314   : > { %v1769_v62 = vadd.f32 %v1702_v9, %v4004_v16  ;;  %v1721_v47 = vadd.f32 %v1702_v9, %v4169_v50  ;;  %v1300_v50 = vld [vmem:[#allocation3 + $0x40] sm:$0xff]  ;;  %v2226_v5 = vmax.f32 %v2210_v57, %v2218_v34 }
 0x315   : > { %v1912_v56 = vmul.f32 0.25, %v1905_v40  ;;  %v1844_v45 = vadd.f32 %v1828_v32, %v1812_v24  ;;  %2191 = vst.msk [vmem:[#allocation3 + $0x40] sm:$0xff] %vm841_vm2, %v3192_v17 }
 0x316   : > { %v1809_v48 = vadd.f32 %v4152_v49, %v1769_v62  ;;  %v1723_v49 = vadd.f32 %v4214_v8, %v1691_v35 }
 0x317   : > { %v1852_v44 = vmul.f32 0.25, %v1844_v45  ;;  %2034 = vrot.lane.b32.xlu2 %v1912_v56, %s3198_s12 }
 0x319   : > { %2003 = vrot.lane.b32.xlu0 %v1852_v44, %s3197_s10 }
 0x31a   : > { %v1822_v4 = vpop.permute.xlu2 %1821  ;;  %v1730_v15 = vpop.permute.xlu1 %1729 }
 0x31b   : > { %v1841_v13 = vadd.f32 %v1822_v4, %v1809_v48  ;;  %v1751_v52 = vadd.f32 %v1730_v15, %v1719_v1  ;;  %v1937_v51 = vpop.permute.xlu0 %1936 }
 0x31c   : > { %v1954_v12 = vadd.f32 %v1937_v51, %v1926_v53 }
 0x31d   : > { %v1849_v33 = vmul.f32 0.25, %v1841_v13  ;;  %v1759_v16 = vmul.f32 0.25, %v1751_v52 }
 0x31e   : > { %v1961_v6 = vmul.f32 0.25, %v1954_v12 }
 0x31f   : > { %2262 = vrot.lane.b32.xlu1 %v1759_v16, %s3200_s9  ;;  %1997 = vrot.lane.b32.xlu2 %v1849_v33, %s3197_s10  ;;  %s4654_s10 = sld [smem:[#allocation25_spill]] }
 0x321   : > { %2087 = vrot.lane.b32.xlu0 %v1961_v6, %s3199_s28  ;;  %s2643_s28 = sshll.u32 %s4452_s11, 4  ;;  %s2644_s28 = int_to_ptr.vmem [resolvable:$true] %s2643_s28 }
 0x322   : > { %v1734_v61 = vpop.permute.xlu2 %1733  ;;  %v1738_v43 = vpop.permute.xlu1 %1737 }
 0x323   : > { %v1753_v54 = vadd.f32 %v1734_v61, %v1721_v47  ;;  %v1755_v29 = vadd.f32 %v1738_v43, %v1723_v49  ;;  %v1732_v55 = vpop.permute.xlu0 %1731 }
 0x324   : > { %v1752_v2 = vadd.f32 %v1732_v55, %v1720_v60 }
 0x325   : > { %v1761_v25 = vmul.f32 0.25, %v1753_v54  ;;  %v1763_v36 = vmul.f32 0.25, %v1755_v29  ;;  %s2642_s12 = scalar_lea.hbm %s4654_s10, %s2841_s0  ;;  %s3115_s29 = scalar_lea.hbm %s4654_s10, 128 }
 0x326   : > { %v1760_v28 = vmul.f32 0.25, %v1752_v2 }
 0x327   : > { %2270 = vrot.lane.b32.xlu1 %v1763_v36, %s3200_s9  ;;  %2266 = vrot.lane.b32.xlu2 %v1761_v25, %s3200_s9 }
 0x329   : > { %2264 = vrot.lane.b32.xlu0 %v1760_v28, %s3200_s9 }
 0x32a   : > { %v1676_v8 = vpop.permute.xlu1 %1675  ;;  %v2082_v59 = vpop.permute.xlu2 %2081 }
 0x32b   : > { %v1990_v21 = vpop.permute.xlu0 %1989  ;;  %2102 = vst.msk [vmem:[#allocation4 + $0x11] sm:$0x7f] %vm803_vm0, %v2082_v59  ;;  %v1692_v19 = vadd.f32 %v1676_v8, %v4093_v37  ;;  %v2354_v37 = vld [vmem:[%s4623_s5] sm:$0x3] }
 0x32c   : > { %2013 = vst.msk [vmem:[#allocation2 + $0x1] sm:$0x7f] %vm803_vm0, %v1990_v21  ;;  %2815 = vmatpush.msk.msra.mxu1 %vm1431_vm10, %v2354_v37  ;;  %2846 = vmatpush.msk.msra.mxu3 %vm1431_vm10, %v2354_v37 }
 0x32d   : > { %v1724_v39 = vadd.f32 %v4230_v46, %v1692_v19 }
 0x32f   : > { %1358 = vrot.lane.b32.xlu2 %v3867_v22, %s3201_s19  ;;  %v1298_v22 = vld [vmem:[#allocation3 + $0x30] sm:$0xff] }
 0x331   : > { %1317 = vrot.lane.b32.xlu0 %v1297_v11, %s3196_s21 }
 0x332   : > { %v1740_v35 = vpop.permute.xlu1 %1739  ;;  %v1992_v18 = vpop.permute.xlu2 %1991  ;;  %v2219_v10 = vld [vmem:[#allocation4 + $0x11] sm:$0xff] }
 0x333   : > { %v1756_v27 = vadd.f32 %v1740_v35, %v1724_v39  ;;  %2014 = vst.msk [vmem:[#allocation2 + $0x11] sm:$0x7f] %vm803_vm0, %v1992_v18  ;;  %v2037_v63 = vpop.permute.xlu0 %2036  ;;  %v2234_v24 = vld [vmem:[#allocation2] sm:$0xff] }
 0x334   : > { %2053 = vst.msk [vmem:[#allocation3 + $0x28] sm:$0xff] %vm841_vm2, %v2037_v63  ;;  %v2242_v56 = vmax.f32 %v2226_v5, %v2234_v24  ;;  %v2290_v44 = vld [vmem:[#allocation2 + $0x1] sm:$0xff] }
 0x335   : > { %v1764_v32 = vmul.f32 0.25, %v1756_v27 }
 0x337   : > { %2272 = vrot.lane.b32.xlu1 %v1764_v32, %s3200_s9  ;;  %1360 = vrot.lane.b32.xlu2 %v3812_v3, %s3201_s19  ;;  %v1299_v3 = vld [vmem:[#allocation3 + $0x38] sm:$0xff]  ;;  %v1349_v32 = vld [vmem:[#allocation4 + $0x81] sm:$0xff]  ;;  %s2645_s9 = sshll.u32 %s2642_s12, 4  ;;  %s2646_s9 = int_to_ptr.hbm [resolvable:$true] %s2645_s9 }
 0x338   : > { %2073 = vst.msk [vmem:[#allocation4 + $0x88] sm:$0x1] %vm754_vm1, %v3192_v17 }
 0x339   : > { %1319 = vrot.lane.b32.xlu0 %v1298_v22, %s3196_s21  ;;  %2193 = vst.msk [vmem:[#allocation4 + $0x81] sm:$0x7f] %vm803_vm0, %v3192_v17  ;;  %v1401_v22 = vld [vmem:[%s4621_s3 + $0x10] sm:$0x3] }
 0x33a   : > { %v2029_v46 = vpop.permute.xlu1 %2028  ;;  %v2031_v38 = vpop.permute.xlu2 %2030  ;;  %v2291_v6 = vld [vmem:[#allocation2 + $0x11] sm:$0xff]  ;;  %2798 = vmatpush.msk.msra.mxu0 %vm1431_vm10, %v1401_v22  ;;  %2843 = vmatpush.msk.msra.mxu2 %vm1431_vm10, %v1401_v22 }
 0x33b   : > { %2049 = vst.msk [vmem:[#allocation3 + $0x8] sm:$0xff] %vm841_vm2, %v2029_v46  ;;  %v2000_v41 = vpop.permute.xlu0 %1999  ;;  %v4305_v53 = vld [vmem:[#allocation3 + $0x28] sm:$0xff] }
 0x33c   : > { %2050 = vst.msk [vmem:[#allocation3 + $0x10] sm:$0xff] %vm841_vm2, %v2031_v38  ;;  %v1400_v46 = vld [vmem:[%s4621_s3 + $0x8] sm:$0xff]  ;;  %v1399_v38 = vld [vmem:[%s4621_s3] sm:$0xff] }
 0x33d   : > { %2018 = vst.msk [vmem:[#allocation2 + $0x51] sm:$0x7f] %vm803_vm0, %v2000_v41  ;;  %1449 = vmatpush.msra.mxu0 %v1400_v46  ;;  %2844 = vmatpush.msra.mxu2 %v1400_v46 }
 0x33f   : > { %1366 = vrot.lane.b32.xlu1 %v3835_v58, %s3201_s19  ;;  %1362 = vrot.lane.b32.xlu2 %v3839_v0, %s3201_s19  ;;  %v1296_v58 = vld [vmem:[#allocation3 + $0x20] sm:$0xff]  ;;  %v2306_v0 = vld [vmem:[#allocation4 + $0x10] sm:$0xff] }
 0x340   : > { %1450 = vmatpush.msra.mxu0 %v1399_v38  ;;  %2845 = vmatpush.msra.mxu2 %v1399_v38 }
 0x341   : > { %1321 = vrot.lane.b32.xlu0 %v1299_v3, %s3196_s21 }
 0x342   : > { %v2090_v20 = vpop.permute.xlu1 %2089  ;;  %v2092_v26 = vpop.permute.xlu2 %2091  ;;  %v2203_v40 = vld [vmem:[#allocation3 + $0x8] sm:$0xff] }
 0x343   : > { %2106 = vst.msk [vmem:[#allocation4 + $0x51] sm:$0x7f] %vm803_vm0, %v2090_v20  ;;  %v2084_v23 = vpop.permute.xlu0 %2083  ;;  %v2211_v9 = vmax.f32 %v2306_v0, %v2203_v40  ;;  %v2323_v29 = vld [vmem:[#allocation3 + $0x10] sm:$0xff] }
 0x344   : > { %2103 = vst.msk [vmem:[#allocation4 + $0x21] sm:$0x7f] %vm803_vm0, %v2084_v23  ;;  %v2239_v54 = vld [vmem:[#allocation2 + $0x50] sm:$0xff] }
 0x345   : > { %2107 = vst.msk [vmem:[#allocation4 + $0x61] sm:$0x7f] %vm803_vm0, %v2092_v26  ;;  %v2227_v1 = vmax.f32 %v2211_v9, %v2219_v10  ;;  %v2295_v8 = vld [vmem:[#allocation2 + $0x51] sm:$0xff] }
 0x347   : > { %1368 = vrot.lane.b32.xlu1 %v3852_v7, %s3201_s19  ;;  %1315 = vrot.lane.b32.xlu2 %v1296_v58, %s3196_s21  ;;  %v2235_v7 = vld [vmem:[#allocation2 + $0x10] sm:$0xff] }
 0x348   : > { %v2243_v13 = vmax.f32 %v2227_v1, %v2235_v7 }
 0x349   : > { %1323 = vrot.lane.b32.xlu0 %v1300_v50, %s3196_s21 }
 0x34a   : > { %v2259_v45 = vpop.permute.xlu1 %2258  ;;  %v4301_v4 = vld [vmem:[#allocation4 + $0x50] sm:$0xff] }
 0x34b   : > { %v2282_v62 = vmax.f32 %v2242_v56, %v2259_v45  ;;  %v2215_v52 = vmax.f32 %v4301_v4, %v4305_v53  ;;  %v4312_v49 = vld [vmem:[#allocation4 + $0x51] sm:$0xff]  ;;  %v2307_v43 = vld [vmem:[#allocation4 + $0x20] sm:$0xff] }
 0x34c   : > { %v2339_v25 = vld [vmem:[#allocation4 + $0x21] sm:$0xff]  ;;  %v2212_v26 = vmax.f32 %v2307_v43, %v2323_v29 }
 0x34d   : > { %v2298_v48 = vmax.f32 %v2282_v62, %v2290_v44  ;;  %v2231_v61 = vmax.f32 %v2215_v52, %v4312_v49  ;;  %v4317_v21 = vld [vmem:[#allocation4 + $0x60] sm:$0xff] }
 0x34e   : > { %v2343_v27 = vld [vmem:[#allocation4 + $0x61] sm:$0xff]  ;;  %v2228_v5 = vmax.f32 %v2212_v26, %v2339_v25 }
 0x34f   : > { %v2314_v15 = vmax.f32 %v2298_v48, %v2306_v0  ;;  %1370 = vrot.lane.b32.xlu1 %v3905_v30, %s3201_s19  ;;  %v2247_v55 = vmax.f32 %v2231_v61, %v2239_v54 }
 0x351   : > { %v2261_v51 = vpop.permute.xlu2 %2260  ;;  %1364 = vrot.lane.b32.xlu0 %v3888_v14, %s3201_s19  ;;  %v2330_v12 = vmax.f32 %v2314_v15, %v2203_v40 }
 0x352   : > { %v2283_v33 = vmax.f32 %v2243_v13, %v2261_v51  ;;  %v2039_v16 = vpop.permute.xlu1 %2038 }
 0x353   : > { %2054 = vst.msk [vmem:[#allocation3 + $0x30] sm:$0xff] %vm841_vm2, %v2039_v16  ;;  %v2346_v47 = vmax.f32 %v2330_v12, %v2219_v10 }
 0x354   : > { %v2299_v30 = vmax.f32 %v2283_v33, %v2291_v6 }
 0x355   : > { %2816 = vmatmul.msk.f32.vlgmr.msra.gmra.mxu1 %vm841_vm2, %v2346_v47 }
 0x356   : > { %v2315_v60 = vmax.f32 %v2299_v30, %v2307_v43 }
 0x357   : > { %1372 = vrot.lane.b32.xlu1 %v1349_v32, %s3201_s19  ;;  %s3109_s19 = sshra.s32 %s2646_s9, 4  ;;  %s3110_s19 = int_to_ptr.hbm [resolvable:$true] %s3109_s19 }
 0x358   : > { %v2331_v14 = vmax.f32 %v2315_v60, %v2323_v29  ;;  %s3111_s26 = scalar_lea.hbm %s3110_s19, 64  ;;  %p3116_p7 = scmp.lt.s32.totalorder %s3110_s19, %s4654_s10 }
 0x359   : > { %v2269_v2 = vpop.permute.xlu2 %2268  ;;  %p3112_p4 = scmp.ne.s32.totalorder %s3110_s19, %s3111_s26  ;;  %p3117_p8 = scmp.lt.s32.totalorder %s3115_s29, %s3111_s26 }
 0x35a   : > { %v2287_v36 = vmax.f32 %v2247_v55, %v2269_v2  ;;  %v2002_v28 = vpop.permute.xlu1 %2001  ;;  %v2347_v50 = vmax.f32 %v2331_v14, %v2339_v25  ;;  %v4321_v11 = vld [vmem:[#allocation3 + $0x30] sm:$0xff] }
 0x35b   : > { %2019 = vst.msk [vmem:[#allocation2 + $0x61] sm:$0x7f] %vm803_vm0, %v2002_v28  ;;  %v2216_v62 = vmax.f32 %v4317_v21, %v4321_v11  ;;  %p3113_p5 = pnand %p3112_p4, %p3298_p9  ;;  %p3118_p10 = por %p3117_p8, %p3116_p7 }
 0x35c   : > { %v2303_v59 = vmax.f32 %v2287_v36, %v2295_v8 }
 0x35d   : > { %2817 = vmatmul.msk.f32.gmra.mxu1 %vm841_vm2, %v2347_v50  ;;  %v2232_v52 = vmax.f32 %v2216_v62, %v2343_v27  ;;  %p3114_p6 = pneg %p3113_p5 }
 0x35e   : > { %v2319_v19 = vmax.f32 %v2303_v59, %v4317_v21 }
 0x35f   : > { %p3119_p13 = pnand %p3118_p10, %p3114_p6 }
 0x360   : > { %v2335_v39 = vmax.f32 %v2319_v19, %v4321_v11 }
 0x361   : > { %v1996_v35 = vpop.permute.xlu2 %1995  ;;  %v1994_v18 = vpop.permute.xlu0 %1993 }
 0x362   : > { %2016 = vst.msk [vmem:[#allocation2 + $0x31] sm:$0x7f] %vm803_vm0, %v1996_v35  ;;  %v2351_v63 = vmax.f32 %v2335_v39, %v2343_v27  ;;  %v2240_v15 = vld [vmem:[#allocation2 + $0x60] sm:$0xff] }
 0x363   : > { %2015 = vst.msk [vmem:[#allocation2 + $0x21] sm:$0x7f] %vm803_vm0, %v1994_v18  ;;  %v2248_v12 = vmax.f32 %v2232_v52, %v2240_v15  ;;  %v2296_v54 = vld [vmem:[#allocation2 + $0x61] sm:$0xff] }
 0x364   : > { %2821 = vmatmul.msk.f32.vlgmr.msra.gmra.mxu3 %vm841_vm2, %v2351_v63 }
 0x369   : > { %v2237_v30 = vld [vmem:[#allocation2 + $0x30] sm:$0xff] }
 0x36a   : > { %v2033_v37 = vpop.permute.xlu0 %2032  ;;  %v2236_v23 = vld [vmem:[#allocation2 + $0x20] sm:$0xff]  ;;  %v2293_v50 = vld [vmem:[#allocation2 + $0x31] sm:$0xff] }
 0x36b   : > { %2051 = vst.msk [vmem:[#allocation3 + $0x18] sm:$0xff] %vm841_vm2, %v2033_v37  ;;  %v2244_v58 = vmax.f32 %v2228_v5, %v2236_v23  ;;  %v2292_v44 = vld [vmem:[#allocation2 + $0x21] sm:$0xff] }
 0x371   : > { %v2035_v17 = vpop.permute.xlu2 %2034 }
 0x372   : > { %2052 = vst.msk [vmem:[#allocation3 + $0x20] sm:$0xff] %vm841_vm2, %v2035_v17  ;;  %v2205_v56 = vld [vmem:[#allocation3 + $0x18] sm:$0xff] }
 0x379   : > { %v2086_v41 = vpop.permute.xlu1 %2085  ;;  %v1998_v31 = vpop.permute.xlu2 %1997  ;;  %v2325_v14 = vld [vmem:[#allocation3 + $0x20] sm:$0xff] }
 0x37a   : > { %2104 = vst.msk [vmem:[#allocation4 + $0x31] sm:$0x7f] %vm803_vm0, %v2086_v41 }
 0x37b   : > { %2017 = vst.msk [vmem:[#allocation2 + $0x41] sm:$0x7f] %vm803_vm0, %v1998_v31 }
 0x381   : > { %v2094_v42 = vpop.permute.xlu1 %2093  ;;  %v4347_v3 = vpop.permute.xlu2 %2266  ;;  %v2308_v40 = vld [vmem:[#allocation4 + $0x30] sm:$0xff] }
 0x382   : > { %2108 = vst.msk [vmem:[#allocation4 + $0x71] sm:$0x7f] %vm803_vm0, %v2094_v42  ;;  %v2041_v57 = vpop.permute.xlu0 %2040  ;;  %v2213_v10 = vmax.f32 %v2308_v40, %v2205_v56  ;;  %v2221_v7 = vld [vmem:[#allocation4 + $0x31] sm:$0xff]  ;;  %v2294_v31 = vld [vmem:[#allocation2 + $0x41] sm:$0xff] }
 0x383   : > { %2055 = vst.msk [vmem:[#allocation3 + $0x38] sm:$0xff] %vm841_vm2, %v2041_v57  ;;  %v2238_v39 = vld [vmem:[#allocation2 + $0x40] sm:$0xff] }
 0x384   : > { %v2229_v51 = vmax.f32 %v2213_v10, %v2221_v7  ;;  %v2345_v10 = vld [vmem:[#allocation4 + $0x81] sm:$0xff] }
 0x386   : > { %v2245_v43 = vmax.f32 %v2229_v51, %v2237_v30 }
 0x389   : > { %v1359_v20 = vpop.permute.xlu2 %1358  ;;  %v2312_v28 = vld [vmem:[#allocation4 + $0x70] sm:$0xff] }
 0x38a   : > { %1383 = vst.msk [vmem:[#allocation5] sm:$0xff] %vm1382_vm11, %v1359_v20  ;;  %v2328_v19 = vld [vmem:[#allocation3 + $0x38] sm:$0xff] }
 0x38b   : > { %v2004_v34 = vpop.permute.xlu0 %2003  ;;  %v2344_v37 = vld [vmem:[#allocation4 + $0x71] sm:$0xff]  ;;  %v2217_v22 = vmax.f32 %v2312_v28, %v2328_v19 }
 0x38c   : > { %2020 = vst.msk [vmem:[#allocation2 + $0x71] sm:$0x7f] %vm803_vm0, %v2004_v34 }
 0x38d   : > { %v2233_v26 = vmax.f32 %v2217_v22, %v2344_v37 }
 0x391   : > { %v2263_v24 = vpop.permute.xlu1 %2262  ;;  %v1361_v0 = vpop.permute.xlu2 %1360  ;;  %v1391_v9 = vld [vmem:[#allocation5] sm:$0xff] }
 0x392   : > { %v2284_v45 = vmax.f32 %v2244_v58, %v2263_v24  ;;  %1384 = vst.msk [vmem:[#allocation5 + $0x8] sm:$0xff] %vm1382_vm11, %v1361_v0  ;;  %2799 = vmatmul.msk.f32.vlgmr.msra.gmra.mxu0 %vm1406_vm12, %v1391_v9 }
 0x393   : > { %v2088_v1 = vpop.permute.xlu0 %2087  ;;  %v2241_v20 = vld [vmem:[#allocation2 + $0x70] sm:$0xff] }
 0x394   : > { %v2300_v48 = vmax.f32 %v2284_v45, %v2292_v44  ;;  %2105 = vst.msk [vmem:[#allocation4 + $0x41] sm:$0x7f] %vm803_vm0, %v2088_v1  ;;  %v2249_v23 = vmax.f32 %v2233_v26, %v2241_v20  ;;  %v2297_v24 = vld [vmem:[#allocation2 + $0x71] sm:$0xff]  ;;  %v2329_v45 = vld [vmem:[#allocation3 + $0x40] sm:$0xff] }
 0x395   : > { %v4401_v26 = vld [vmem:[%s4622_s4] ss:$0 sm:$0xff] }
 0x396   : > { %v2316_v13 = vmax.f32 %v2300_v48, %v2308_v40 }
 0x398   : > { %v2332_v33 = vmax.f32 %v2316_v13, %v2205_v56 }
 0x399   : > { %v2271_v16 = vpop.permute.xlu1 %2270  ;;  %v1363_v6 = vpop.permute.xlu2 %1362  ;;  %v1392_v47 = vld [vmem:[#allocation5 + $0x8] sm:$0xff] }
 0x39a   : > { %v2288_v61 = vmax.f32 %v2248_v12, %v2271_v16  ;;  %1385 = vst.msk [vmem:[#allocation5 + $0x10] sm:$0xff] %vm1382_vm11, %v1363_v6  ;;  %2800 = vmatmul.msk.f32.gmra.mxu0 %vm1406_vm12, %v1392_v47  ;;  %v2348_v60 = vmax.f32 %v2332_v33, %v2221_v7  ;;  %v4386_v33 = vld [vmem:[%s4624_s6] ss:$0 sm:$0xff] }
 0x39b   : > { %v2309_v29 = vld [vmem:[#allocation4 + $0x40] sm:$0xff]  ;;  %v2265_v55 = vpop.permute.xlu0 %2264 }
 0x39c   : > { %v2304_v2 = vmax.f32 %v2288_v61, %v2296_v54  ;;  %v2285_v25 = vmax.f32 %v2245_v43, %v2265_v55  ;;  %2818 = vmatmul.msk.f32.gmra.mxu1 %vm841_vm2, %v2348_v60  ;;  %v2214_v36 = vmax.f32 %v2309_v29, %v2325_v14  ;;  %v2341_v8 = vld [vmem:[#allocation4 + $0x41] sm:$0xff] }
 0x39e   : > { %v2320_v59 = vmax.f32 %v2304_v2, %v2312_v28  ;;  %v2301_v21 = vmax.f32 %v2285_v25, %v2293_v50  ;;  %v2230_v11 = vmax.f32 %v2214_v36, %v2341_v8 }
 0x3a0   : > { %v2317_v35 = vmax.f32 %v2301_v21, %v2309_v29  ;;  %v2336_v18 = vmax.f32 %v2320_v59, %v2328_v19  ;;  %v2246_v27 = vmax.f32 %v2230_v11, %v2238_v39 }
 0x3a1   : > { %v1316_v63 = vpop.permute.xlu2 %1315  ;;  %v1393_v32 = vld [vmem:[#allocation5 + $0x10] sm:$0xff] }
 0x3a2   : > { %1337 = vst.msk [vmem:[#allocation5 + $0x18] sm:$0xff] %vm1333_vm9, %v1316_v63  ;;  %2801 = vmatmul.msk.f32.gmra.mxu0 %vm1406_vm12, %v1393_v32  ;;  %v2352_v46 = vmax.f32 %v2336_v18, %v2344_v37  ;;  %v2333_v38 = vmax.f32 %v2317_v35, %v2325_v14  ;;  %v2286_v17 = vmax.f32 %v2246_v27, %v4347_v3  ;;  %v2313_v3 = vld [vmem:[#allocation4 + $0x80] sm:$0xff] }
 0x3a3   : > { %v1318_v41 = vpop.permute.xlu0 %1317 }
 0x3a4   : > { %1338 = vst.msk [vmem:[#allocation5 + $0x20] sm:$0xff] %vm1333_vm9, %v1318_v41  ;;  %2822 = vmatmul.msk.f32.gmra.mxu3 %vm841_vm2, %v2352_v46  ;;  %v2349_v42 = vmax.f32 %v2333_v38, %v2341_v8  ;;  %v2302_v57 = vmax.f32 %v2286_v17, %v2294_v31 }
 0x3a6   : > { %2819 = vmatmul.msk.f32.gmra.mxu1 %vm841_vm2, %v2349_v42  ;;  %v2318_v34 = vmax.f32 %v2302_v57, %v4301_v4 }
 0x3a8   : > { %v2334_v5 = vmax.f32 %v2318_v34, %v4305_v53 }
 0x3a9   : > { %v2273_v40 = vpop.permute.xlu1 %2272 }
 0x3aa   : > { %v2289_v58 = vmax.f32 %v2249_v23, %v2273_v40  ;;  %v2350_v56 = vmax.f32 %v2334_v5, %v4312_v49 }
 0x3ab   : > { %v1320_v0 = vpop.permute.xlu0 %1319 }
 0x3ac   : > { %v2305_v9 = vmax.f32 %v2289_v58, %v2297_v24  ;;  %1339 = vst.msk [vmem:[#allocation5 + $0x28] sm:$0xff] %vm1333_vm9, %v1320_v0 }
 0x3ae   : > { %v2321_v62 = vmax.f32 %v2305_v9, %v2313_v3  ;;  %2820 = vmatmul.msk.f32.gmra.mxu1 %vm841_vm2, %v2350_v56 }
 0x3b0   : > { %v2337_v44 = vmax.f32 %v2321_v62, %v2329_v45 }
 0x3b1   : > { %v1367_v4 = vpop.permute.xlu1 %1366 }
 0x3b2   : > { %1387 = vst.msk [vmem:[#allocation5 + $0x20] sm:$0xff] %vm1382_vm11, %v1367_v4  ;;  %v2353_v53 = vmax.f32 %v2337_v44, %v2345_v10 }
 0x3b3   : > { %v1322_v1 = vpop.permute.xlu0 %1321 }
 0x3b4   : > { %1340 = vst.msk [vmem:[#allocation5 + $0x30] sm:$0xff] %vm1333_vm9, %v1322_v1  ;;  %2823 = vmatmul.msk.f32.gmra.mxu3 %vm841_vm2, %v2353_v53 }
 0x3b9   : > { %v1369_v48 = vpop.permute.xlu1 %1368  ;;  %v1395_v15 = vld [vmem:[#allocation5 + $0x20] sm:$0xff] }
 0x3ba   : > { %1388 = vst.msk [vmem:[#allocation5 + $0x28] sm:$0xff] %vm1382_vm11, %v1369_v48  ;;  %2803 = vmatmul.msk.f32.vlgmr.msra.gmra.mxu2 %vm1406_vm12, %v1395_v15 }
 0x3bb   : > { %v1324_v49 = vpop.permute.xlu0 %1323 }
 0x3bc   : > { %1341 = vst.msk [vmem:[#allocation5 + $0x38] sm:$0xff] %vm1333_vm9, %v1324_v49  ;;  %vm1636_vm9 = vcmask 31744  }
 0x3c1   : > { %v1371_v7 = vpop.permute.xlu1 %1370  ;;  %v1396_v13 = vld [vmem:[#allocation5 + $0x28] sm:$0xff] }
 0x3c2   : > { %1389 = vst.msk [vmem:[#allocation5 + $0x30] sm:$0xff] %vm1382_vm11, %v1371_v7  ;;  %2804 = vmatmul.msk.f32.gmra.mxu2 %vm1406_vm12, %v1396_v13 }
 0x3c3   : > { %v1365_v52 = vpop.permute.xlu0 %1364 }
 0x3c4   : > { %1386 = vst.msk [vmem:[#allocation5 + $0x18] sm:$0xff] %vm1382_vm11, %v1365_v52 }
 0x3c9   : > { %v1397_v51 = vld [vmem:[#allocation5 + $0x30] sm:$0xff]  ;;  %v1373_v61 = vpop.permute.xlu1 %1372 }
 0x3ca   : > { %2805 = vmatmul.msk.f32.gmra.mxu2 %vm1406_vm12, %v1397_v51  ;;  %1390 = vst.msk [vmem:[#allocation5 + $0x38] sm:$0xff] %vm1382_vm11, %v1373_v61 }
 0x3cb   : > { %v1394_v12 = vld [vmem:[#allocation5 + $0x18] sm:$0xff] }
 0x3cc   : > { %2802 = vmatmul.msk.f32.gmra.mxu0 %vm1406_vm12, %v1394_v12 }
 0x3d1   : > { %v1398_v55 = vld [vmem:[#allocation5 + $0x38] sm:$0xff] }
 0x3d2   : > { %v2403_v16 = vpop.f32.mrf.mxu1  ;;  %2806 = vmatmul.msk.f32.gmra.mxu2 %vm1406_vm12, %v1398_v55 }
 0x3d3   : > { %v2404_v6 = vadd.f32 %v4386_v33, %v2403_v16 }
 0x3d5   : > { %v2824_v47 = vmul.f32 -1.442695, %v2404_v6 }
 0x3d7   : > { %2941 = vpow2.f32 %v2824_v47 }
 0x3da   : > { %v2406_v30 = vpop.f32.mrf.mxu1 }
 0x3db   : > { %v2407_v43 = vadd.f32 %v4386_v33, %v2406_v30 }
 0x3dd   : > { %v2942_v60 = vpop.eup %2941  ;;  %v2825_v54 = vmul.f32 -1.442695, %v2407_v43 }
 0x3de   : > { %v2451_v29 = vadd.f32 1.0, %v2942_v60 }
 0x3df   : > { %2943 = vpow2.f32 %v2825_v54 }
 0x3e0   : > { %2945 = vrcp.f32 %v2451_v29  ;;  %v2470_v50 = vand.u32 2147483648, %v2451_v29  ;;  %v2468_v59 = vand.u32 2147483647, %v2451_v29  ;;  %vm2464_vm14 = vweird.f32 %v2451_v29 }
 0x3e2   : > { %v2471_v11 = vor.u32 1.1754944e-38, %v2470_v50  ;;  %vm2469_vm0 = vcmp.eq.f32.partialorder %v2468_v59, 8.507059e+37 }
 0x3e5   : > { %v2944_v14 = vpop.eup %2943 }
 0x3e6   : > { %v2946_v2 = vpop.eup %2945  ;;  %v2452_v25 = vadd.f32 1.0, %v2944_v14 }
 0x3e7   : > { %v2460_v36 = vmul.f32 %v2946_v2, %v2451_v29  ;;  %vm2465_vm13 = vweird.f32 %v2946_v2  ;;  %v2418_v42 = vpop.f32.mrf.mxu3 }
 0x3e8   : > { %2947 = vrcp.f32 %v2452_v25  ;;  %vm2466_vm15 = vmor %vm2464_vm14, %vm2465_vm13  ;;  %v2485_v32 = vand.u32 2147483648, %v2452_v25  ;;  %v2483_v22 = vand.u32 2147483647, %v2452_v25  ;;  %vm2479_vm2 = vweird.f32 %v2452_v25 }
 0x3e9   : > { %v2461_v28 = vsub.f32 1.0, %v2460_v36  ;;  %v4395_v57 = vadd.f32 %v4386_v33, %v2418_v42 }
 0x3ea   : > { %v2486_v38 = vor.u32 1.1754944e-38, %v2485_v32  ;;  %vm2484_vm4 = vcmp.eq.f32.partialorder %v2483_v22, 8.507059e+37 }
 0x3eb   : > { %v2462_v8 = vmul.f32 %v2946_v2, %v2461_v28  ;;  %v2829_v20 = vmul.f32 -1.442695, %v4395_v57 }
 0x3ed   : > { %v2463_v21 = vadd.f32 %v2946_v2, %v2462_v8  ;;  %2949 = vpow2.f32 %v2829_v20 }
 0x3ee   : > { %v2948_v19 = vpop.eup %2947 }
 0x3ef   : > { %v2467_v39 = vsel %vm2466_vm15, %v2946_v2, %v2463_v21  ;;  %v2475_v35 = vmul.f32 %v2948_v19, %v2452_v25  ;;  %vm2480_vm1 = vweird.f32 %v2948_v19 }
 0x3f0   : > { %v2472_v18 = vsel %vm2469_vm0, %v2471_v11, %v2467_v39  ;;  %vm2481_vm3 = vmor %vm2479_vm2, %vm2480_vm1 }
 0x3f1   : > { %v2579_v27 = vmul.f32 %v2472_v18, %v2404_v6  ;;  %v2476_v63 = vsub.f32 1.0, %v2475_v35 }
 0x3f3   : > { %v2477_v37 = vmul.f32 %v2948_v19, %v2476_v63  ;;  %2595 = vrot.lane.b32.xlu1 %v2579_v27, %s3189_s22  ;;  %v2950_v40 = vpop.eup %2949 }
 0x3f4   : > { %v4404_v58 = vadd.f32 1.0, %v2950_v40 }
 0x3f5   : > { %v2478_v46 = vadd.f32 %v2948_v19, %v2477_v37 }
 0x3f6   : > { %v2543_v39 = vand.u32 2147483647, %v4404_v58  ;;  %vm2539_vm10 = vweird.f32 %v4404_v58 }
 0x3f7   : > { %v2482_v17 = vsel %vm2481_vm3, %v2948_v19, %v2478_v46 }
 0x3f8   : > { %v2487_v41 = vsel %vm2484_vm4, %v2486_v38, %v2482_v17 }
 0x3f9   : > { %v2580_v31 = vmul.f32 %v2487_v41, %v2407_v43  ;;  %v2545_v41 = vand.u32 2147483648, %v4404_v58 }
 0x3fb   : > { %2597 = vrot.lane.b32.xlu2 %v2580_v31, %s3189_s22 }
 0x40f   : > { %v1452_v34 = vpop.f32.mrf.mxu0 }
 0x410   : > { %v1453_v23 = vadd.f32 %v4401_v26, %v1452_v34 }
 0x412   : > { %v2807_v5 = vmul.f32 -1.442695, %v1453_v23 }
 0x414   : > { %2951 = vpow2.f32 %v2807_v5 }
 0x415   : > { %2953 = vrcp.f32 %v4404_v58 }
 0x417   : > { %v1455_v3 = vpop.f32.mrf.mxu0 }
 0x418   : > { %v4407_v24 = vadd.f32 %v4401_v26, %v1455_v3 }
 0x419   : > { %v2409_v0 = vpop.f32.mrf.mxu1 }
 0x41a   : > { %v2952_v9 = vpop.eup %2951  ;;  %v2808_v56 = vmul.f32 -1.442695, %v4407_v24  ;;  %v4411_v45 = vadd.f32 %v4386_v33, %v2409_v0 }
 0x41b   : > { %v1500_v62 = vadd.f32 1.0, %v2952_v9  ;;  %v4418_v53 = vpop.eup %2953 }
 0x41c   : > { %2955 = vpow2.f32 %v2808_v56  ;;  %v2826_v10 = vmul.f32 -1.442695, %v4411_v45  ;;  %v2535_v47 = vmul.f32 %v4418_v53, %v4404_v58  ;;  %vm2540_vm13 = vweird.f32 %v4418_v53 }
 0x41d   : > { %2957 = vrcp.f32 %v1500_v62  ;;  %v1519_v30 = vand.u32 2147483648, %v1500_v62  ;;  %v1517_v60 = vand.u32 2147483647, %v1500_v62  ;;  %vm1513_vm6 = vweird.f32 %v1500_v62  ;;  %vm4478_vm4 = vmor %vm2539_vm10, %vm2540_vm13 }
 0x41e   : > { %2959 = vpow2.f32 %v2826_v10  ;;  %v2536_v2 = vsub.f32 1.0, %v2535_v47 }
 0x41f   : > { %v1458_v44 = vpop.f32.mrf.mxu0  ;;  %v1520_v25 = vor.u32 1.1754944e-38, %v1519_v30  ;;  %vm1518_vm8 = vcmp.eq.f32.partialorder %v1517_v60, 8.507059e+37 }
 0x420   : > { %v4416_v4 = vadd.f32 %v4401_v26, %v1458_v44  ;;  %v2537_v63 = vmul.f32 %v4418_v53, %v2536_v2 }
 0x422   : > { %v2956_v1 = vpop.eup %2955  ;;  %v2809_v48 = vmul.f32 -1.442695, %v4416_v4  ;;  %v2538_v0 = vadd.f32 %v4418_v53, %v2537_v63 }
 0x423   : > { %v2958_v15 = vpop.eup %2957  ;;  %v4421_v49 = vadd.f32 1.0, %v2956_v1  ;;  %v2412_v7 = vpop.f32.mrf.mxu1 }
 0x424   : > { %v2960_v13 = vpop.eup %2959  ;;  %v1509_v52 = vmul.f32 %v2958_v15, %v1500_v62  ;;  %2961 = vpow2.f32 %v2809_v48  ;;  %v4424_v51 = vadd.f32 %v4386_v33, %v2412_v7  ;;  %vm1514_vm5 = vweird.f32 %v2958_v15 }
 0x425   : > { %2963 = vrcp.f32 %v4421_v49  ;;  %v4427_v16 = vadd.f32 1.0, %v2960_v13  ;;  %vm1515_vm7 = vmor %vm1513_vm6, %vm1514_vm5  ;;  %v1534_v32 = vand.u32 2147483648, %v4421_v49  ;;  %v1532_v38 = vand.u32 2147483647, %v4421_v49 }
 0x426   : > { %v1510_v12 = vsub.f32 1.0, %v1509_v52  ;;  %v2827_v6 = vmul.f32 -1.442695, %v4424_v51  ;;  %vm1528_vm12 = vweird.f32 %v4421_v49 }
 0x427   : > { %v2421_v61 = vpop.f32.mrf.mxu3  ;;  %2965 = vrcp.f32 %v4427_v16  ;;  %v2498_v20 = vand.u32 2147483647, %v4427_v16  ;;  %v2500_v34 = vand.u32 2147483648, %v4427_v16  ;;  %v1535_v5 = vor.u32 1.1754944e-38, %v1534_v32 }
 0x428   : > { %v1511_v43 = vmul.f32 %v2958_v15, %v1510_v12  ;;  %2967 = vpow2.f32 %v2827_v6  ;;  %v4434_v54 = vadd.f32 %v4386_v33, %v2421_v61  ;;  %vm1533_vm0 = vcmp.eq.f32.partialorder %v1532_v38, 8.507059e+37 }
 0x429   : > { %vm2494_vm1 = vweird.f32 %v4427_v16  ;;  %vm2499_vm3 = vcmp.eq.f32.partialorder %v2498_v20, 8.507059e+37  ;;  %v2501_v48 = vor.u32 1.1754944e-38, %v2500_v34  ;;  %v2542_v61 = vsel %vm4478_vm4, %v4418_v53, %v2538_v0 }
 0x42a   : > { %v2962_v29 = vpop.eup %2961  ;;  %v1512_v55 = vadd.f32 %v2958_v15, %v1511_v43  ;;  %v2830_v28 = vmul.f32 -1.442695, %v4434_v54 }
 0x42b   : > { %v2964_v14 = vpop.eup %2963  ;;  %v4436_v36 = vadd.f32 1.0, %v2962_v29  ;;  %v2415_v50 = vpop.f32.mrf.mxu1  ;;  %v2546_v29 = vor.u32 1.1754944e-38, %v2545_v41 }
 0x42c   : > { %v1516_v8 = vsel %vm1515_vm7, %v2958_v15, %v1512_v55  ;;  %v1524_v59 = vmul.f32 %v2964_v14, %v4421_v49  ;;  %v4441_v21 = vadd.f32 %v4386_v33, %v2415_v50  ;;  %vm1529_vm11 = vweird.f32 %v2964_v14 }
 0x42d   : > { %v1521_v19 = vsel %vm1518_vm8, %v1520_v25, %v1516_v8  ;;  %2969 = vrcp.f32 %v4436_v36  ;;  %v2966_v11 = vpop.eup %2965  ;;  %vm1530_vm14 = vmor %vm1528_vm12, %vm1529_vm11  ;;  %v1547_v13 = vand.u32 2147483647, %v4436_v36  ;;  %v1549_v52 = vand.u32 2147483648, %v4436_v36 }
 0x42e   : > { %v1628_v35 = vmul.f32 %v1521_v19, %v1453_v23  ;;  %v1525_v18 = vsub.f32 1.0, %v1524_v59  ;;  %2971 = vpow2.f32 %v2830_v28  ;;  %v2968_v27 = vpop.eup %2967  ;;  %v2490_v37 = vmul.f32 %v2966_v11, %v4427_v16 }
 0x42f   : > { %v2828_v22 = vmul.f32 -1.442695, %v4441_v21  ;;  %v4457_v17 = vadd.f32 1.0, %v2968_v27  ;;  %vm2495_vm15 = vweird.f32 %v2966_v11  ;;  %vm1543_vm6 = vweird.f32 %v4436_v36 }
 0x430   : > { %1637 = vst.msk [vmem:[%s4452_s11] sm:$0xff] %vm1636_vm9, %v1628_v35  ;;  %v1526_v46 = vmul.f32 %v2964_v14, %v1525_v18  ;;  %v2491_v31 = vsub.f32 1.0, %v2490_v37  ;;  %vm2496_vm2 = vmor %vm2494_vm1, %vm2495_vm15  ;;  %vm2544_vm7 = vcmp.eq.f32.partialorder %v2543_v39, 8.507059e+37  ;;  %vm1548_vm10 = vcmp.eq.f32.partialorder %v1547_v13, 8.507059e+37 }
 0x431   : > { %2973 = vpow2.f32 %v2828_v22  ;;  %v2515_v28 = vand.u32 2147483648, %v4457_v17  ;;  %v2513_v58 = vand.u32 2147483647, %v4457_v17  ;;  %vm2509_vm12 = vweird.f32 %v4457_v17 }
 0x432   : > { %v1527_v42 = vadd.f32 %v2964_v14, %v1526_v46  ;;  %2975 = vrcp.f32 %v4457_v17  ;;  %v2492_v40 = vmul.f32 %v2966_v11, %v2491_v31 }
 0x433   : > { %v2970_v23 = vpop.eup %2969  ;;  %v2516_v63 = vor.u32 1.1754944e-38, %v2515_v28 }
 0x434   : > { %v2972_v3 = vpop.eup %2971  ;;  %v1531_v9 = vsel %vm1530_vm14, %v2964_v14, %v1527_v42  ;;  %v1539_v56 = vmul.f32 %v2970_v23, %v4436_v36  ;;  %v2493_v10 = vadd.f32 %v2966_v11, %v2492_v40  ;;  %vm1544_vm5 = vweird.f32 %v2970_v23 }
 0x435   : > { %v1536_v62 = vsel %vm1533_vm0, %v1535_v5, %v1531_v9  ;;  %v4468_v44 = vadd.f32 1.0, %v2972_v3  ;;  %vm1545_vm8 = vmor %vm1543_vm6, %vm1544_vm5  ;;  %v1550_v14 = vor.u32 1.1754944e-38, %v1549_v52  ;;  %vm2514_vm14 = vcmp.eq.f32.partialorder %v2513_v58, 8.507059e+37 }
 0x436   : > { %v1629_v1 = vmul.f32 %v1536_v62, %v4407_v24  ;;  %v1540_v15 = vsub.f32 1.0, %v1539_v56  ;;  %v2497_v7 = vsel %vm2496_vm2, %v2966_v11, %v2493_v10 }
 0x437   : > { %v2974_v49 = vpop.eup %2973  ;;  %2977 = vrcp.f32 %v4468_v44  ;;  %v2502_v24 = vsel %vm2499_vm3, %v2501_v48, %v2497_v7  ;;  %v2424_v30 = vpop.f32.mrf.mxu3  ;;  %vm2554_vm0 = vweird.f32 %v4468_v44 }
 0x438   : > { %v2976_v12 = vpop.eup %2975  ;;  %1638 = vst.msk [vmem:[%s4452_s11 + $0x8] sm:$0xff] %vm1636_vm9, %v1629_v1  ;;  %v1541_v6 = vmul.f32 %v2970_v23, %v1540_v15  ;;  %v4484_v47 = vadd.f32 1.0, %v2974_v49  ;;  %v2581_v43 = vmul.f32 %v2502_v24, %v4411_v45  ;;  %v4496_v25 = vadd.f32 %v4386_v33, %v2424_v30 }
 0x439   : > { %v2505_v60 = vmul.f32 %v2976_v12, %v4457_v17  ;;  %v2547_v45 = vsel %vm2544_vm7, %v2546_v29, %v2542_v61  ;;  %vm2510_vm11 = vweird.f32 %v2976_v12  ;;  %v2560_v17 = vand.u32 2147483648, %v4468_v44 }
 0x43a   : > { %v1542_v55 = vadd.f32 %v2970_v23, %v1541_v6  ;;  %2979 = vrcp.f32 %v4484_v47  ;;  %2599 = vrot.lane.b32.xlu0 %v2581_v43, %s3189_s22  ;;  %v2831_v11 = vmul.f32 -1.442695, %v4496_v25  ;;  %v2584_v27 = vmul.f32 %v2547_v45, %v4395_v57  ;;  %vm2511_vm13 = vmor %vm2509_vm12, %vm2510_vm11 }
 0x43b   : > { %v2506_v2 = vsub.f32 1.0, %v2505_v60  ;;  %v2558_v57 = vand.u32 2147483647, %v4468_v44  ;;  %v2530_v20 = vand.u32 2147483648, %v4484_v47  ;;  %v2561_v3 = vor.u32 1.1754944e-38, %v2560_v17 }
 0x43c   : > { %v1546_v53 = vsel %vm1545_vm8, %v2970_v23, %v1542_v55  ;;  %2981 = vpow2.f32 %v2831_v11  ;;  %v2528_v23 = vand.u32 2147483647, %v4484_v47  ;;  %vm2524_vm4 = vweird.f32 %v4484_v47 }
 0x43d   : > { %v2978_v36 = vpop.eup %2977  ;;  %v1551_v50 = vsel %vm1548_vm10, %v1550_v14, %v1546_v53  ;;  %v2507_v8 = vmul.f32 %v2976_v12, %v2506_v2  ;;  %v1464_v59 = vpop.f32.mrf.mxu2  ;;  %vm2559_vm3 = vcmp.eq.f32.partialorder %v2558_v57, 8.507059e+37  ;;  %v2531_v10 = vor.u32 1.1754944e-38, %v2530_v20 }
 0x43e   : > { %v1630_v19 = vmul.f32 %v1551_v50, %v4416_v4  ;;  %v2550_v33 = vmul.f32 %v2978_v36, %v4468_v44  ;;  %v4506_v35 = vadd.f32 %v4401_v26, %v1464_v59  ;;  %vm2555_vm15 = vweird.f32 %v2978_v36 }
 0x43f   : > { %v2508_v39 = vadd.f32 %v2976_v12, %v2507_v8  ;;  %vm2556_vm1 = vmor %vm2554_vm0, %vm2555_vm15  ;;  %vm2529_vm6 = vcmp.eq.f32.partialorder %v2528_v23, 8.507059e+37  ;;  %vm2619_vm7 = vcmask 64544  }
 0x440   : > { %v2980_v18 = vpop.eup %2979  ;;  %1639 = vst.msk [vmem:[%s4452_s11 + $0x10] sm:$0xff] %vm1636_vm9, %v1630_v19  ;;  %v2551_v32 = vsub.f32 1.0, %v2550_v33  ;;  %v2811_v22 = vmul.f32 -1.442695, %v4506_v35 }
 0x441   : > { %v2512_v4 = vsel %vm2511_vm13, %v2976_v12, %v2508_v39  ;;  %v2520_v37 = vmul.f32 %v2980_v18, %v4484_v47  ;;  %vm2525_vm2 = vweird.f32 %v2980_v18 }
 0x442   : > { %v2517_v46 = vsel %vm2514_vm14, %v2516_v63, %v2512_v4  ;;  %v2552_v38 = vmul.f32 %v2978_v36, %v2551_v32  ;;  %2983 = vpow2.f32 %v2811_v22  ;;  %2605 = vrot.lane.b32.xlu0 %v2584_v27, %s3189_s22  ;;  %vm2526_vm5 = vmor %vm2524_vm4, %vm2525_vm2 }
 0x443   : > { %v2582_v41 = vmul.f32 %v2517_v46, %v4424_v51  ;;  %v2521_v31 = vsub.f32 1.0, %v2520_v37  ;;  %v2982_v51 = vpop.eup %2981 }
 0x444   : > { %v2553_v42 = vadd.f32 %v2978_v36, %v2552_v38  ;;  %v2458_v56 = vadd.f32 1.0, %v2982_v51 }
 0x445   : > { %v2522_v34 = vmul.f32 %v2980_v18, %v2521_v31  ;;  %2601 = vrot.lane.b32.xlu1 %v2582_v41, %s3189_s22  ;;  %v1467_v5 = vpop.f32.mrf.mxu2 }
 0x446   : > { %v2557_v40 = vsel %vm2556_vm1, %v2978_v36, %v2553_v42  ;;  %v4522_v0 = vadd.f32 %v4401_v26, %v1467_v5  ;;  %2985 = vrcp.f32 %v2458_v56  ;;  %v2575_v29 = vand.u32 2147483648, %v2458_v56 }
 0x447   : > { %v2523_v9 = vadd.f32 %v2980_v18, %v2522_v34  ;;  %v2562_v62 = vsel %vm2559_vm3, %v2561_v3, %v2557_v40  ;;  %v2573_v2 = vand.u32 2147483647, %v2458_v56  ;;  %vm2569_vm10 = vweird.f32 %v2458_v56 }
 0x448   : > { %v2812_v44 = vmul.f32 -1.442695, %v4522_v0  ;;  %v2984_v1 = vpop.eup %2983  ;;  %v2585_v13 = vmul.f32 %v2562_v62, %v4434_v54  ;;  %v2576_v58 = vor.u32 1.1754944e-38, %v2575_v29 }
 0x449   : > { %v2527_v48 = vsel %vm2526_vm5, %v2980_v18, %v2523_v9  ;;  %v1461_v15 = vpop.f32.mrf.mxu0  ;;  %v1504_v7 = vadd.f32 1.0, %v2984_v1  ;;  %vm2574_vm13 = vcmp.eq.f32.partialorder %v2573_v2, 8.507059e+37 }
 0x44a   : > { %v2532_v49 = vsel %vm2529_vm6, %v2531_v10, %v2527_v48  ;;  %2987 = vpow2.f32 %v2812_v44  ;;  %v4529_v12 = vadd.f32 %v4401_v26, %v1461_v15 }
 0x44b   : > { %v2583_v52 = vmul.f32 %v2532_v49, %v4441_v21  ;;  %2989 = vrcp.f32 %v1504_v7  ;;  %v1579_v50 = vand.u32 2147483648, %v1504_v7  ;;  %v1577_v19 = vand.u32 2147483647, %v1504_v7 }
 0x44c   : > { %v2810_v16 = vmul.f32 -1.442695, %v4529_v12  ;;  %v2986_v47 = vpop.eup %2985  ;;  %vm1573_vm14 = vweird.f32 %v1504_v7 }
 0x44d   : > { %2603 = vrot.lane.b32.xlu2 %v2583_v52, %s3189_s22  ;;  %2607 = vrot.lane.b32.xlu1 %v2585_v13, %s3189_s22  ;;  %v1470_v24 = vpop.f32.mrf.mxu2  ;;  %v2565_v54 = vmul.f32 %v2986_v47, %v2458_v56  ;;  %vm2570_vm8 = vweird.f32 %v2986_v47  ;;  %v1580_v4 = vor.u32 1.1754944e-38, %v1579_v50  ;;  %vm1578_vm0 = vcmp.eq.f32.partialorder %v1577_v19, 8.507059e+37 }
 0x44e   : > { %v4535_v6 = vadd.f32 %v4401_v26, %v1470_v24  ;;  %2991 = vpow2.f32 %v2810_v16  ;;  %vm2571_vm11 = vmor %vm2569_vm10, %vm2570_vm8 }
 0x44f   : > { %v2566_v60 = vsub.f32 1.0, %v2565_v54 }
 0x450   : > { %v2988_v30 = vpop.eup %2987  ;;  %v2813_v21 = vmul.f32 -1.442695, %v4535_v6 }
 0x451   : > { %v1505_v61 = vadd.f32 1.0, %v2988_v30  ;;  %v2990_v43 = vpop.eup %2989  ;;  %v2567_v14 = vmul.f32 %v2986_v47, %v2566_v60 }
 0x452   : > { %2993 = vpow2.f32 %v2813_v21  ;;  %v1569_v55 = vmul.f32 %v2990_v43, %v1504_v7  ;;  %vm1574_vm12 = vweird.f32 %v2990_v43 }
 0x453   : > { %2995 = vrcp.f32 %v1505_v61  ;;  %v2568_v36 = vadd.f32 %v2986_v47, %v2567_v14  ;;  %vm1575_vm15 = vmor %vm1573_vm14, %vm1574_vm12  ;;  %v1594_v41 = vand.u32 2147483648, %v1505_v61  ;;  %v1592_v42 = vand.u32 2147483647, %v1505_v61 }
 0x454   : > { %v2992_v45 = vpop.eup %2991  ;;  %v1570_v53 = vsub.f32 1.0, %v1569_v55  ;;  %vm1588_vm2 = vweird.f32 %v1505_v61 }
 0x455   : > { %v2598_v28 = vpop.permute.xlu2 %2597  ;;  %v4538_v8 = vadd.f32 1.0, %v2992_v45  ;;  %v2572_v11 = vsel %vm2571_vm11, %v2986_v47, %v2568_v36  ;;  %v1595_v23 = vor.u32 1.1754944e-38, %v1594_v41  ;;  %vm1593_vm4 = vcmp.eq.f32.partialorder %v1592_v42, 8.507059e+37  ;;  %v1473_v13 = vpop.f32.mrf.mxu2 }
 0x456   : > { %2621 = vst.msk [vmem:[%s4452_s11 + $0x8] sm:$0xff] %vm2619_vm7, %v2598_v28  ;;  %v1571_v59 = vmul.f32 %v2990_v43, %v1570_v53  ;;  %v2577_v18 = vsel %vm2574_vm13, %v2576_v58, %v2572_v11 }
 0x457   : > { %2997 = vrcp.f32 %v4538_v8  ;;  %v2586_v32 = vmul.f32 %v2577_v18, %v4496_v25  ;;  %v1562_v56 = vand.u32 2147483647, %v4538_v8  ;;  %vm1558_vm6 = vweird.f32 %v4538_v8 }
 0x458   : > { %v2994_v33 = vpop.eup %2993  ;;  %v1572_v27 = vadd.f32 %v2990_v43, %v1571_v59 }
 0x459   : > { %v2996_v39 = vpop.eup %2995  ;;  %v1506_v63 = vadd.f32 1.0, %v2994_v33  ;;  %2609 = vrot.lane.b32.xlu2 %v2586_v32, %s3189_s22  ;;  %vm1563_vm11 = vcmp.eq.f32.partialorder %v1562_v56, 8.507059e+37 }
 0x45a   : > { %v1584_v37 = vmul.f32 %v2996_v39, %v1505_v61  ;;  %v1576_v22 = vsel %vm1575_vm15, %v2990_v43, %v1572_v27  ;;  %vm1589_vm1 = vweird.f32 %v2996_v39 }
 0x45b   : > { %2999 = vrcp.f32 %v1506_v63  ;;  %v1581_v46 = vsel %vm1578_vm0, %v1580_v4, %v1576_v22  ;;  %vm1590_vm3 = vmor %vm1588_vm2, %vm1589_vm1  ;;  %v1609_v1 = vand.u32 2147483648, %v1506_v63  ;;  %v1607_v7 = vand.u32 2147483647, %v1506_v63 }
 0x45c   : > { %v1585_v38 = vsub.f32 1.0, %v1584_v37  ;;  %v1632_v17 = vmul.f32 %v1581_v46, %v4506_v35  ;;  %v1564_v35 = vand.u32 2147483648, %v4538_v8  ;;  %vm1603_vm12 = vweird.f32 %v1506_v63 }
 0x45d   : > { %v2998_v57 = vpop.eup %2997  ;;  %v1610_v30 = vor.u32 1.1754944e-38, %v1609_v1  ;;  %vm1608_vm14 = vcmp.eq.f32.partialorder %v1607_v7, 8.507059e+37 }
 0x45e   : > { %v1586_v31 = vmul.f32 %v2996_v39, %v1585_v38  ;;  %1641 = vst.msk [vmem:[%s4452_s11 + $0x20] sm:$0xff] %vm1636_vm9, %v1632_v17  ;;  %v1554_v25 = vmul.f32 %v2998_v57, %v4538_v8  ;;  %vm1559_vm5 = vweird.f32 %v2998_v57  ;;  %v1565_v15 = vor.u32 1.1754944e-38, %v1564_v35 }
 0x45f   : > { %vm1560_vm8 = vmor %vm1558_vm6, %vm1559_vm5 }
 0x460   : > { %v1587_v20 = vadd.f32 %v2996_v39, %v1586_v31  ;;  %v1555_v5 = vsub.f32 1.0, %v1554_v25 }
 0x461   : > { %v3000_v34 = vpop.eup %2999 }
 0x462   : > { %v1591_v51 = vsel %vm1590_vm3, %v2996_v39, %v1587_v20  ;;  %v1599_v40 = vmul.f32 %v3000_v34, %v1506_v63  ;;  %v1556_v9 = vmul.f32 %v2998_v57, %v1555_v5  ;;  %vm1604_vm10 = vweird.f32 %v3000_v34 }
 0x463   : > { %v1596_v3 = vsel %vm1593_vm4, %v1595_v23, %v1591_v51  ;;  %vm1605_vm13 = vmor %vm1603_vm12, %vm1604_vm10 }
 0x464   : > { %v1633_v62 = vmul.f32 %v1596_v3, %v4522_v0  ;;  %v1600_v10 = vsub.f32 1.0, %v1599_v40  ;;  %v1557_v44 = vadd.f32 %v2998_v57, %v1556_v9  ;;  %v1474_v0 = vadd.f32 %v4401_v26, %v1473_v13 }
 0x465   : > { %v2596_v48 = vpop.permute.xlu1 %2595 }
 0x466   : > { %1642 = vst.msk [vmem:[%s4452_s11 + $0x28] sm:$0xff] %vm1636_vm9, %v1633_v62  ;;  %v1601_v49 = vmul.f32 %v3000_v34, %v1600_v10  ;;  %v1561_v52 = vsel %vm1560_vm8, %v2998_v57, %v1557_v44  ;;  %v2814_v54 = vmul.f32 -1.442695, %v1474_v0 }
 0x467   : > { %2620 = vst.msk [vmem:[%s4452_s11] sm:$0xff] %vm2619_vm7, %v2596_v48  ;;  %v1566_v16 = vsel %vm1563_vm11, %v1565_v15, %v1561_v52 }
 0x468   : > { %v1602_v24 = vadd.f32 %v3000_v34, %v1601_v49  ;;  %v1631_v47 = vmul.f32 %v1566_v16, %v4529_v12  ;;  %3001 = vpow2.f32 %v2814_v54 }
 0x46a   : > { %v1606_v21 = vsel %vm1605_vm13, %v3000_v34, %v1602_v24  ;;  %1640 = vst.msk [vmem:[%s4452_s11 + $0x18] sm:$0xff] %vm1636_vm9, %v1631_v47 }
 0x46b   : > { %v1611_v61 = vsel %vm1608_vm14, %v1610_v30, %v1606_v21 }
 0x46c   : > { %v1634_v43 = vmul.f32 %v1611_v61, %v4535_v6 }
 0x46e   : > { %1643 = vst.msk [vmem:[%s4452_s11 + $0x30] sm:$0xff] %vm1636_vm9, %v1634_v43  ;;  %v3002_v60 = vpop.eup %3001 }
 0x46f   : > { %v1507_v26 = vadd.f32 1.0, %v3002_v60 }
 0x471   : > { %3003 = vrcp.f32 %v1507_v26  ;;  %v1624_v12 = vand.u32 2147483648, %v1507_v26  ;;  %vm1618_vm15 = vweird.f32 %v1507_v26  ;;  %v1622_v2 = vand.u32 2147483647, %v1507_v26 }
 0x473   : > { %v1625_v6 = vor.u32 1.1754944e-38, %v1624_v12  ;;  %vm1623_vm2 = vcmp.eq.f32.partialorder %v1622_v2, 8.507059e+37 }
 0x477   : > { %v3004_v29 = vpop.eup %3003 }
 0x478   : > { %v1614_v55 = vmul.f32 %v3004_v29, %v1507_v26  ;;  %vm1619_vm0 = vweird.f32 %v3004_v29 }
 0x479   : > { %vm1620_vm1 = vmor %vm1618_vm15, %vm1619_vm0 }
 0x47a   : > { %v1615_v14 = vsub.f32 1.0, %v1614_v55 }
 0x47c   : > { %v1616_v45 = vmul.f32 %v3004_v29, %v1615_v14 }
 0x47e   : > { %v1617_v53 = vadd.f32 %v3004_v29, %v1616_v45 }
 0x480   : > { %v1621_v28 = vsel %vm1620_vm1, %v3004_v29, %v1617_v53 }
 0x481   : > { %v1626_v36 = vsel %vm1623_vm2, %v1625_v6, %v1621_v28 }
 0x482   : > { %v1635_v50 = vmul.f32 %v1626_v36, %v1474_v0 }
 0x484   : > { %1644 = vst.msk [vmem:[%s4452_s11 + $0x38] sm:$0xff] %vm1636_vm9, %v1635_v50 }
 0x4a7   : > { %v2604_v8 = vpop.permute.xlu2 %2603 }
 0x4a8   : > { %2624 = vst.msk [vmem:[%s4452_s11 + $0x20] sm:$0xff] %vm2619_vm7, %v2604_v8 }
 0x4ac   : > { %v2600_v58 = vpop.permute.xlu0 %2599 }
 0x4ad   : > { %2622 = vst.msk [vmem:[%s4452_s11 + $0x10] sm:$0xff] %vm2619_vm7, %v2600_v58 }
 0x4b3   : > { %v2610_v19 = vpop.permute.xlu2 %2609 }
 0x4b4   : > { %v2606_v59 = vpop.permute.xlu0 %2605  ;;  %2627 = vst.msk [vmem:[%s4452_s11 + $0x38] sm:$0xff] %vm2619_vm7, %v2610_v19 }
 0x4b5   : > { %2625 = vst.msk [vmem:[%s4452_s11 + $0x28] sm:$0xff] %vm2619_vm7, %v2606_v59 }
 0x4b7   : > { %v2602_v33 = vpop.permute.xlu1 %2601 }
 0x4b8   : > { %2623 = vst.msk [vmem:[%s4452_s11 + $0x18] sm:$0xff] %vm2619_vm7, %v2602_v33 }
 0x4bf   : > { %v2608_v11 = vpop.permute.xlu1 %2607 }
 0x4c0   : > { %2626 = vst.msk [vmem:[%s4452_s11 + $0x30] sm:$0xff] %vm2619_vm7, %v2608_v11 }
 0x4c1   : > { %3122 = shalt.err (!%p3119_p13)
}
 0x4c2   : > { %s3202_s17 = smov 128  }
 0x4c3   : > { %2853 = dma.vmem_to_hbm [thread:$0]  (%p3298_p9), %s2644_s28, 1024, %s2646_s9, %s2629_s27, %s3202_s17, %s3202_s17, %s3193_s8  }
 0x4c4 PF: > { %s4655_s30 = sld [smem:[#allocation16_spill]]  ;;  %p2866_p0 = pnand %p2783_p12, %p3305_p11 }
 0x4c5   : > { %s4657_s16 = sld [smem:[#allocation19_spill]] }
 0x4c6   : > { %p2867_p1 = pneg %p2866_p0 }
 0x4ca   : > { %s2660_s18 = sand.u32 1, %s4655_s30  }
 0x4cb   : > { %s2661_s23 = scalar_lea.sflag [#allocation8], %s2660_s18 }
 0x4cc   : > { %3156 = dma.done.wait (%p2867_p1), %s2661_s23, 1024  }
 0x4cd   : > { %3158 = vsyncadd (%p2867_p1), %s2661_s23, 4294966272  ;;  %s26_s29 = sadd.s32 1, %s4657_s16   ;;  %s4658_s20 = sld [smem:[#allocation17_spill]] }
 0x4ce   : > { %p23_p2 = scmp.ge.s32.totalorder %s26_s29, 4   ;;  %s4659_s26 = sld [smem:[#allocation21_spill]] }
 0x4cf   : > { %s4660_s27 = sld [smem:[#allocation18_spill]]  ;;  %s4662_s24 = smov %s3165_s25 }
 0x4d0   : > { %s4661_s28 = sld [smem:[#allocation20_spill]]  ;;  %25 = sbr.rel (!%p23_p2) target bundleno = 12 (0xc), region = 159 }
 0x4d3   : > { %s4663_s25 = smov %s4658_s20 }
 0x4d5   :  { %2667 = vsyncpa [#allocation7], 1 }
 0x4d6   :  { %2669 = vsyncpa [#allocation7 + $0x1], 1 }
 0x4d7   :  { %2670 = vsyncpa [#allocation10], 1 }
 0x4d8   :  { %2672 = vsyncpa [#allocation10 + $0x1], 1 }
 0x4d9   :  { %2673 = vsyncpa [#allocation8], 1 }
 0x4da   :  { %2675 = vsyncpa [#allocation8 + $0x1], 1 }

</bundles_post_ra>
